<compile_context>
chip_gen: v7x
topology: tpu7x:2x2x1
jax: 0.10.0
libtpu: 0.0.40
codegen_flags: <defaults>
</compile_context>

<pallas_src>
import jax
import jax.numpy as jnp
from jax import lax
from jax.experimental import pallas as pl
from jax.experimental.pallas import tpu as pltpu

N_NODES = 8        # number of graph nodes (seq length)
COORD = 2          # seq1 feature dim (interpreted as coordinates for the tour cost)
EXTRA = 2          # seq2 feature dim
FEAT = COORD + EXTRA
HIDDEN = 32        # encoder hidden dim
FF_HIDDEN = 128    # encoder FFN hidden dim
CLUSTER_K = 3      # cluster_k of the module
MAX_TB = 128       # graphs processed per grid step (batch tile -> decoder lane dim)

# Python float constants only (jnp scalars would become captured consts).
NEG_INF = -1e9
SCALE = 1.0 / float(HIDDEN) ** 0.5


# ------------------------- fused encoder+decoder kernel -------------------------- #
def _graph_transformer_kernel(x_ref, adj_ref, eadj_ref, clsT_ref, xyT_ref,
                              wemb_ref, bemb_ref, wq_ref, wk_ref, wv_ref, wo_ref,
                              w1_ref, b1_ref, w2_ref, b2_ref,
                              cost_ref, ll_ref, pi_ref):
    tb = x_ref.shape[0]

    x3 = x_ref[...]        # (TB, N, FEAT)
    adj3 = adj_ref[...]    # (TB, N, N)
    eadj3 = eadj_ref[...]  # (TB, N, N)
    cls_t = clsT_ref[...]  # (N, TB)   float cluster ids, batch on lanes
    xy_t = xyT_ref[...]    # (COORD, N, TB) coordinates, batch on lanes

    # ------------------------------- encoder --------------------------------- #
    # Fold batch*nodes into the matmul M dimension so the MXU sees tall tiles.
    x2 = x3.reshape(tb * N_NODES, FEAT)
    h0 = jnp.dot(x2, wemb_ref[...], preferred_element_type=jnp.float32) + bemb_ref[...]
    q = jnp.dot(h0, wq_ref[...], preferred_element_type=jnp.float32)
    k = jnp.dot(h0, wk_ref[...], preferred_element_type=jnp.float32)
    v = jnp.dot(h0, wv_ref[...], preferred_element_type=jnp.float32)

    q3 = q.reshape(tb, N_NODES, HIDDEN)
    k3 = k.reshape(tb, N_NODES, HIDDEN)
    v3 = v.reshape(tb, N_NODES, HIDDEN)

    # adjacency-masked single-head self-attention (edge_adj as additive bias)
    scores = jnp.einsum("bnd,bmd->bnm", q3, k3,
                        preferred_element_type=jnp.float32) * SCALE + eadj3
    scores = jnp.where(adj3 > 0.0, scores, NEG_INF)
    m = jnp.max(scores, axis=-1, keepdims=True)
    e = jnp.exp(scores - m)
    p = e / jnp.sum(e, axis=-1, keepdims=True)
    attn = jnp.einsum("bnm,bmd->bnd", p, v3, preferred_element_type=jnp.float32)

    h1 = h0 + jnp.dot(attn.reshape(tb * N_NODES, HIDDEN), wo_ref[...],
                      preferred_element_type=jnp.float32)
    ff = jnp.maximum(
        jnp.dot(h1, w1_ref[...], preferred_element_type=jnp.float32) + b1_ref[...], 0.0)
    h2 = h1 + jnp.dot(ff, w2_ref[...], preferred_element_type=jnp.float32) + b2_ref[...]
    h3 = h2.reshape(tb, N_NODES, HIDDEN)      # encoder output, stays in VMEM

    # -------------------- decoder prep: Gram matrix, batch-on-lanes ---------- #
    # Pointer logits are (graph + prev_emb)·h3[n].  Both terms are rows/means of
    # the per-graph Gram matrix G[b,m,n] = h3[b,m]·h3[b,n], so compute it ONCE and
    # relayout to batch-on-lanes; the per-step loop never touches h3 again.
    G = jnp.einsum("bmh,bnh->bmn", h3, h3, preferred_element_type=jnp.float32)  # (TB,N,N)
    g_rows = [jnp.transpose(G[:, mm, :]) for mm in range(N_NODES)]  # g_rows[m]: (N, TB)
    g_sum = g_rows[0]
    for mm in range(1, N_NODES):
        g_sum = g_sum + g_rows[mm]
    glog = g_sum * (1.0 / float(N_NODES))       # (N, TB)  graph·h3[n] per batch lane

    x_t = xy_t[0]                               # (N, TB)
    y_t = xy_t[1]                               # (N, TB)

    row_i = lax.broadcasted_iota(jnp.int32, (N_NODES, tb), 0)   # node id per sublane row
    row_f = row_i.astype(jnp.float32)

    # ------------------------------- decoder --------------------------------- #
    visited = jnp.zeros((N_NODES, tb), jnp.float32)
    # uniform selection weights == "previous embedding is the graph embedding"
    prev_sel = jnp.full((N_NODES, tb), 1.0 / float(N_NODES), jnp.float32)
    prev_cls = jnp.full((1, tb), -1.0, jnp.float32)
    prev_x = jnp.zeros((1, tb), jnp.float32)
    prev_y = jnp.zeros((1, tb), jnp.float32)
    first_x = jnp.zeros((1, tb), jnp.float32)
    first_y = jnp.zeros((1, tb), jnp.float32)
    ll = jnp.zeros((1, tb), jnp.float32)
    cost = jnp.zeros((1, tb), jnp.float32)
    pi = jnp.zeros((N_NODES, tb), jnp.int32)

    # Fully-unrolled autoregressive pointer loop (N_NODES small & static),
    # every op below is a full-lane (<=8 vreg) VPU/XLU/EUP op over the batch tile.
    for step in range(N_NODES):
        # prev_emb·h3[n]  ==  sum_m prev_sel[m] * G[m, n]   (all batch-on-lanes)
        g_sel = prev_sel[0:1, :] * g_rows[0]
        for mm in range(1, N_NODES):
            g_sel = g_sel + prev_sel[mm:mm + 1, :] * g_rows[mm]

        logits = (glog + g_sel) * SCALE                                   # (N, TB)
        # penalize switching clusters (uses `cls`, cluster_k bounded)
        switch = jnp.where((cls_t != prev_cls) & (prev_cls >= 0.0), 2.0, 0.0)
        logits = logits - switch
        logits = jnp.where(visited > 0.5, NEG_INF, logits)

        mx = jnp.max(logits, axis=0, keepdims=True)                        # (1, TB)
        lse = mx + jnp.log(jnp.sum(jnp.exp(logits - mx), axis=0, keepdims=True))
        # greedy argmax => chosen logit == mx, so chosen logp == mx - lse
        ll = ll + (mx - lse)

        # TODO(synk): decode_type='sampling' would need pltpu.prng_*; greedy argmax
        # (lowest index on ties) is used deterministically for both decode types.
        cand = jnp.where(logits >= mx, row_f, float(N_NODES))
        idx_f = jnp.min(cand, axis=0, keepdims=True)                       # (1, TB)
        onehot = (row_f == idx_f).astype(jnp.float32)                      # (N, TB)

        cx = jnp.sum(onehot * x_t, axis=0, keepdims=True)                  # (1, TB)
        cy = jnp.sum(onehot * y_t, axis=0, keepdims=True)                  # (1, TB)
        ccls = jnp.sum(onehot * cls_t, axis=0, keepdims=True)              # (1, TB)

        if step == 0:
            first_x, first_y = cx, cy
        else:
            cost = cost + jnp.sqrt((cx - prev_x) ** 2 + (cy - prev_y) ** 2)

        pi = jnp.where(row_i == step, idx_f.astype(jnp.int32), pi)
        visited = visited + onehot
        prev_sel = onehot
        prev_cls = ccls
        prev_x, prev_y = cx, cy

    # close the tour
    cost = cost + jnp.sqrt((first_x - prev_x) ** 2 + (first_y - prev_y) ** 2)

    cost_ref[...] = cost        # (1, TB)  lane-dense store
    ll_ref[...] = ll            # (1, TB)
    pi_ref[...] = pi            # (N, TB)


# ------------------------------- host wrapper ------------------------------------ #
def _rep_spec(shape):
    nd = len(shape)
    return pl.BlockSpec(shape, lambda b, _nd=nd: (0,) * _nd)


def _pad_batch(arr, bp):
    pad = bp - arr.shape[0]
    if pad == 0:
        return arr
    tail = jnp.broadcast_to(arr[-1:], (pad,) + arr.shape[1:])
    return jnp.concatenate([arr, tail], axis=0)


def graph_transformer_forward(params, seq1, seq2, number, adj, edge_adj, sparse, cls,
                              decode_type="sampling", return_pi=True, cluster_k=CLUSTER_K):
    """Mirrors Graph_Transformer.forward: returns (cost, ll, pi)."""
    # TODO(synk): `number` and `sparse` are merely forwarded to the external encoder
    # in the reference wrapper (no defined semantics); unused here.
    del number, sparse, decode_type, cluster_k

    B = seq1.shape[0]
    x = jnp.concatenate([seq1, seq2], axis=-1).astype(jnp.float32)   # (B, N, FEAT)
    adjf = adj.astype(jnp.float32)
    eadjf = edge_adj.astype(jnp.float32)
    clsf = cls.astype(jnp.float32).reshape(B, N_NODES)

    # Batch tiling: TB graphs per grid step; "parallel" shards blocks across cores.
    tb = min(B, MAX_TB)
    bp = ((B + tb - 1) // tb) * tb
    x, adjf, eadjf, clsf = (_pad_batch(a, bp) for a in (x, adjf, eadjf, clsf))
    nblk = bp // tb

    # Decoder-side inputs pre-transposed on host to batch-on-lanes layout.
    cls_t = jnp.transpose(clsf)                        # (N, bp)
    xy_t = jnp.transpose(x[:, :, :COORD], (2, 1, 0))   # (COORD, N, bp)

    weight_order = ["wemb", "bemb", "wq", "wk", "wv", "wo", "w1", "b1", "w2", "b2"]
    weights = [params[name] for name in weight_order]

    in_specs = [
        pl.BlockSpec((tb, N_NODES, FEAT), lambda b: (b, 0, 0)),
        pl.BlockSpec((tb, N_NODES, N_NODES), lambda b: (b, 0, 0)),
        pl.BlockSpec((tb, N_NODES, N_NODES), lambda b: (b, 0, 0)),
        pl.BlockSpec((N_NODES, tb), lambda b: (0, b)),
        pl.BlockSpec((COORD, N_NODES, tb), lambda b: (0, 0, b)),
    ] + [_rep_spec(w.shape) for w in weights]

    out_specs = (
        pl.BlockSpec((1, tb), lambda b: (0, b)),
        pl.BlockSpec((1, tb), lambda b: (0, b)),
        pl.BlockSpec((N_NODES, tb), lambda b: (0, b)),
    )
    out_shape = (
        jax.ShapeDtypeStruct((1, bp), jnp.float32),
        jax.ShapeDtypeStruct((1, bp), jnp.float32),
        jax.ShapeDtypeStruct((N_NODES, bp), jnp.int32),
    )

    # Advisory cost estimate so XLA schedules/overlaps the custom call sensibly.
    weight_bytes = sum(int(w.size) * 4 for w in weights)
    enc_flops = (2 * N_NODES * (FEAT * HIDDEN + 4 * HIDDEN * HIDDEN + 2 * HIDDEN * FF_HIDDEN)
                 + 4 * N_NODES * N_NODES * HIDDEN)
    dec_flops = 2 * N_NODES * N_NODES * HIDDEN + N_NODES * (6 * N_NODES)
    cost_est = pl.CostEstimate(
        flops=int(bp * (enc_flops + dec_flops)),
        transcendentals=int(bp * 3 * N_NODES * N_NODES),
        bytes_accessed=int(bp * 4 * N_NODES * (FEAT + 2 * N_NODES + 1 + COORD + 2)
                           + nblk * weight_bytes),
    )

    cost_o, ll_o, pi_o = pl.pallas_call(
        _graph_transformer_kernel,
        out_shape=out_shape,
        grid=(nblk,),
        in_specs=in_specs,
        out_specs=out_specs,
        compiler_params=pltpu.CompilerParams(dimension_semantics=("parallel",)),
        cost_estimate=cost_est,
    )(x, adjf, eadjf, cls_t, xy_t, *weights)

    cost = cost_o[0, :B]
    ll = ll_o[0, :B]
    pi = jnp.transpose(pi_o)[:B]
    if return_pi:
        return cost, ll, pi
    return cost, ll, None


def init_params(key):
    ks = jax.random.split(key, 10)
    s = 0.1
    return {
        "wemb": s * jax.random.normal(ks[0], (FEAT, HIDDEN), jnp.float32),
        "bemb": jnp.zeros((1, HIDDEN), jnp.float32),
        "wq": s * jax.random.normal(ks[1], (HIDDEN, HIDDEN), jnp.float32),
        "wk": s * jax.random.normal(ks[2], (HIDDEN, HIDDEN), jnp.float32),
        "wv": s * jax.random.normal(ks[3], (HIDDEN, HIDDEN), jnp.float32),
        "wo": s * jax.random.normal(ks[4], (HIDDEN, HIDDEN), jnp.float32),
        "w1": s * jax.random.normal(ks[5], (HIDDEN, FF_HIDDEN), jnp.float32),
        "b1": jnp.zeros((1, FF_HIDDEN), jnp.float32),
        "w2": s * jax.random.normal(ks[6], (FF_HIDDEN, HIDDEN), jnp.float32),
        "b2": jnp.zeros((1, HIDDEN), jnp.float32),
    }


if __name__ == "__main__":
    B = 2
    key = jax.random.PRNGKey(0)
    k1, k2, k3, k4, k5 = jax.random.split(key, 5)

    seq1 = jax.random.uniform(k1, (B, N_NODES, COORD), jnp.float32)      # node coords
    seq2 = jax.random.normal(k2, (B, N_NODES, EXTRA), jnp.float32)       # extra node feats
    number = N_NODES
    adj = (jax.random.uniform(k3, (B, N_NODES, N_NODES)) > 0.4).astype(jnp.float32)
    adj = jnp.maximum(adj, jnp.eye(N_NODES, dtype=jnp.float32)[None])    # self loops
    edge_adj = 0.1 * jax.random.normal(k4, (B, N_NODES, N_NODES), jnp.float32)
    sparse = False
    cls = jax.random.randint(k5, (B, N_NODES), 0, CLUSTER_K)

    params = init_params(jax.random.PRNGKey(42))

    cost, ll, pi = graph_transformer_forward(
        params, seq1, seq2, number, adj, edge_adj, sparse, cls, decode_type="sampling")
    jax.block_until_ready((cost, ll, pi))

    assert cost.shape == (B,) and ll.shape == (B,) and pi.shape == (B, N_NODES)
    # each decoded tour must be a permutation of the nodes
    assert bool(jnp.all(jnp.sort(pi, axis=-1) == jnp.arange(N_NODES)[None, :]))
    print("KERNEL_OK")
</pallas_src>

<mosaic_0001>
module attributes {stable_mosaic.version = 11 : i64} {
  func.func @_graph_transformer_kernel(%arg0: i32, %arg1: memref<2x8x4xf32, #tpu.memory_space<vmem>>, %arg2: memref<2x8x8xf32, #tpu.memory_space<vmem>>, %arg3: memref<2x8x8xf32, #tpu.memory_space<vmem>>, %arg4: memref<8x2xf32, #tpu.memory_space<vmem>>, %arg5: memref<2x8x2xf32, #tpu.memory_space<vmem>>, %arg6: memref<4x32xf32, #tpu.memory_space<vmem>>, %arg7: memref<1x32xf32, #tpu.memory_space<vmem>>, %arg8: memref<32x32xf32, #tpu.memory_space<vmem>>, %arg9: memref<32x32xf32, #tpu.memory_space<vmem>>, %arg10: memref<32x32xf32, #tpu.memory_space<vmem>>, %arg11: memref<32x32xf32, #tpu.memory_space<vmem>>, %arg12: memref<32x128xf32, #tpu.memory_space<vmem>>, %arg13: memref<1x128xf32, #tpu.memory_space<vmem>>, %arg14: memref<128x32xf32, #tpu.memory_space<vmem>>, %arg15: memref<1x32xf32, #tpu.memory_space<vmem>>, %arg16: memref<1x2xf32, #tpu.memory_space<vmem>>, %arg17: memref<1x2xf32, #tpu.memory_space<vmem>>, %arg18: memref<8x2xi32, #tpu.memory_space<vmem>>) attributes {dimension_semantics = [#tpu.dimension_semantics<parallel>], iteration_bounds = array<i64: 1>, scalar_prefetch = 0 : i64, scratch_operands = 0 : i64, tpu.core_type = #tpu.core_type<tc>, window_params = [{transform_indices = @transform_0, window_bounds = array<i64: 2, 8, 4>}, {transform_indices = @transform_1, window_bounds = array<i64: 2, 8, 8>}, {transform_indices = @transform_2, window_bounds = array<i64: 2, 8, 8>}, {transform_indices = @transform_3, window_bounds = array<i64: 8, 2>}, {transform_indices = @transform_4, window_bounds = array<i64: 2, 8, 2>}, {pipeline_mode = #tpu.pipeline_mode<synchronous>, transform_indices = @transform_5, window_bounds = array<i64: 4, 32>}, {pipeline_mode = #tpu.pipeline_mode<synchronous>, transform_indices = @transform_6, window_bounds = array<i64: 1, 32>}, {pipeline_mode = #tpu.pipeline_mode<synchronous>, transform_indices = @transform_7, window_bounds = array<i64: 32, 32>}, {pipeline_mode = #tpu.pipeline_mode<synchronous>, transform_indices = @transform_8, window_bounds = array<i64: 32, 32>}, {pipeline_mode = #tpu.pipeline_mode<synchronous>, transform_indices = @transform_9, window_bounds = array<i64: 32, 32>}, {pipeline_mode = #tpu.pipeline_mode<synchronous>, transform_indices = @transform_10, window_bounds = array<i64: 32, 32>}, {pipeline_mode = #tpu.pipeline_mode<synchronous>, transform_indices = @transform_11, window_bounds = array<i64: 32, 128>}, {pipeline_mode = #tpu.pipeline_mode<synchronous>, transform_indices = @transform_12, window_bounds = array<i64: 1, 128>}, {pipeline_mode = #tpu.pipeline_mode<synchronous>, transform_indices = @transform_13, window_bounds = array<i64: 128, 32>}, {pipeline_mode = #tpu.pipeline_mode<synchronous>, transform_indices = @transform_14, window_bounds = array<i64: 1, 32>}, {transform_indices = @transform_15, window_bounds = array<i64: 1, 2>}, {transform_indices = @transform_16, window_bounds = array<i64: 1, 2>}, {transform_indices = @transform_17, window_bounds = array<i64: 8, 2>}]} {
    %c0 = arith.constant 0 : index
    %c0_0 = arith.constant 0 : index
    %c0_1 = arith.constant 0 : index
    %0 = vector.load %arg1[%c0, %c0_0, %c0_1] : memref<2x8x4xf32, #tpu.memory_space<vmem>>, vector<2x8x4xf32>
    %c0_2 = arith.constant 0 : index
    %c0_3 = arith.constant 0 : index
    %c0_4 = arith.constant 0 : index
    %1 = vector.load %arg2[%c0_2, %c0_3, %c0_4] : memref<2x8x8xf32, #tpu.memory_space<vmem>>, vector<2x8x8xf32>
    %c0_5 = arith.constant 0 : index
    %c0_6 = arith.constant 0 : index
    %c0_7 = arith.constant 0 : index
    %2 = vector.load %arg3[%c0_5, %c0_6, %c0_7] : memref<2x8x8xf32, #tpu.memory_space<vmem>>, vector<2x8x8xf32>
    %c0_8 = arith.constant 0 : index
    %c0_9 = arith.constant 0 : index
    %3 = vector.load %arg4[%c0_8, %c0_9] : memref<8x2xf32, #tpu.memory_space<vmem>>, vector<8x2xf32>
    %c0_10 = arith.constant 0 : index
    %c0_11 = arith.constant 0 : index
    %c0_12 = arith.constant 0 : index
    %4 = vector.load %arg5[%c0_10, %c0_11, %c0_12] : memref<2x8x2xf32, #tpu.memory_space<vmem>>, vector<2x8x2xf32>
    %5 = vector.shape_cast %0 : vector<2x8x4xf32> to vector<16x4xf32>
    %c0_13 = arith.constant 0 : index
    %c0_14 = arith.constant 0 : index
    %6 = vector.load %arg6[%c0_13, %c0_14] : memref<4x32xf32, #tpu.memory_space<vmem>>, vector<4x32xf32>
    %cst = arith.constant dense<0.000000e+00> : vector<16x32xf32>
    %7 = tpu.matmul %5, %6, %cst {dimension_numbers = #tpu.dot_dimension_numbers<[1], [0], [0], [1], [0, 0, 1, 1], [], []>} : vector<16x4xf32>, vector<4x32xf32>, vector<16x32xf32> -> vector<16x32xf32>
    %c0_15 = arith.constant 0 : index
    %c0_16 = arith.constant 0 : index
    %8 = vector.load %arg7[%c0_15, %c0_16] : memref<1x32xf32, #tpu.memory_space<vmem>>, vector<1x32xf32>
    %9 = vector.broadcast %8 : vector<1x32xf32> to vector<16x32xf32>
    %10 = arith.addf %7, %9 : vector<16x32xf32>
    %c0_17 = arith.constant 0 : index
    %c0_18 = arith.constant 0 : index
    %11 = vector.load %arg8[%c0_17, %c0_18] : memref<32x32xf32, #tpu.memory_space<vmem>>, vector<32x32xf32>
    %cst_19 = arith.constant dense<0.000000e+00> : vector<16x32xf32>
    %12 = tpu.matmul %10, %11, %cst_19 {dimension_numbers = #tpu.dot_dimension_numbers<[1], [0], [0], [1], [0, 0, 1, 1], [], []>} : vector<16x32xf32>, vector<32x32xf32>, vector<16x32xf32> -> vector<16x32xf32>
    %c0_20 = arith.constant 0 : index
    %c0_21 = arith.constant 0 : index
    %13 = vector.load %arg9[%c0_20, %c0_21] : memref<32x32xf32, #tpu.memory_space<vmem>>, vector<32x32xf32>
    %cst_22 = arith.constant dense<0.000000e+00> : vector<16x32xf32>
    %14 = tpu.matmul %10, %13, %cst_22 {dimension_numbers = #tpu.dot_dimension_numbers<[1], [0], [0], [1], [0, 0, 1, 1], [], []>} : vector<16x32xf32>, vector<32x32xf32>, vector<16x32xf32> -> vector<16x32xf32>
    %c0_23 = arith.constant 0 : index
    %c0_24 = arith.constant 0 : index
    %15 = vector.load %arg10[%c0_23, %c0_24] : memref<32x32xf32, #tpu.memory_space<vmem>>, vector<32x32xf32>
    %cst_25 = arith.constant dense<0.000000e+00> : vector<16x32xf32>
    %16 = tpu.matmul %10, %15, %cst_25 {dimension_numbers = #tpu.dot_dimension_numbers<[1], [0], [0], [1], [0, 0, 1, 1], [], []>} : vector<16x32xf32>, vector<32x32xf32>, vector<16x32xf32> -> vector<16x32xf32>
    %17 = vector.shape_cast %12 : vector<16x32xf32> to vector<2x8x32xf32>
    %18 = vector.shape_cast %14 : vector<16x32xf32> to vector<2x8x32xf32>
    %19 = vector.shape_cast %16 : vector<16x32xf32> to vector<2x8x32xf32>
    "tpu.trace_start"() <{level = 10 : i32, message = "bnd,bmd->bnm"}> : () -> ()
    %cst_26 = arith.constant dense<0.000000e+00> : vector<2x8x8xf32>
    %20 = tpu.matmul %17, %18, %cst_26 {dimension_numbers = #tpu.dot_dimension_numbers<[2], [2], [1], [1], [0, 0, 0, 1, 1, 1], [0], [0]>} : vector<2x8x32xf32>, vector<2x8x32xf32>, vector<2x8x8xf32> -> vector<2x8x8xf32>
    "tpu.trace_stop"() : () -> ()
    %cst_27 = arith.constant 0.176776692 : f32
    %21 = vector.broadcast %cst_27 : f32 to vector<2x8x8xf32>
    %22 = arith.mulf %20, %21 : vector<2x8x8xf32>
    %23 = arith.addf %22, %2 : vector<2x8x8xf32>
    %cst_28 = arith.constant 0.000000e+00 : f32
    %24 = vector.broadcast %cst_28 : f32 to vector<2x8x8xf32>
    %25 = arith.cmpf ogt, %1, %24 : vector<2x8x8xf32>
    %cst_29 = arith.constant -1.000000e+09 : f32
    %26 = vector.broadcast %cst_29 : f32 to vector<2x8x8xf32>
    %27 = arith.select %25, %23, %26 : vector<2x8x8xi1>, vector<2x8x8xf32>
    %cst_30 = arith.constant dense<0xFF800000> : vector<2x8xf32>
    %28 = vector.multi_reduction <maximumf>, %27, %cst_30 [2] : vector<2x8x8xf32> to vector<2x8xf32>
    %29 = vector.shape_cast %28 : vector<2x8xf32> to vector<2x8x1xf32>
    %30 = vector.broadcast %29 : vector<2x8x1xf32> to vector<2x8x8xf32>
    %31 = arith.subf %27, %30 : vector<2x8x8xf32>
    %32 = math.exp %31 : vector<2x8x8xf32>
    %cst_31 = arith.constant dense<0.000000e+00> : vector<2x8xf32>
    %33 = vector.multi_reduction <add>, %32, %cst_31 [2] : vector<2x8x8xf32> to vector<2x8xf32>
    %34 = vector.shape_cast %33 : vector<2x8xf32> to vector<2x8x1xf32>
    %35 = vector.broadcast %34 : vector<2x8x1xf32> to vector<2x8x8xf32>
    %36 = arith.divf %32, %35 : vector<2x8x8xf32>
    "tpu.trace_start"() <{level = 10 : i32, message = "bnm,bmd->bnd"}> : () -> ()
    %cst_32 = arith.constant dense<0.000000e+00> : vector<2x8x32xf32>
    %37 = tpu.matmul %36, %19, %cst_32 {dimension_numbers = #tpu.dot_dimension_numbers<[2], [1], [1], [2], [0, 0, 0, 1, 1, 2], [0], [0]>} : vector<2x8x8xf32>, vector<2x8x32xf32>, vector<2x8x32xf32> -> vector<2x8x32xf32>
    "tpu.trace_stop"() : () -> ()
    %38 = vector.shape_cast %37 : vector<2x8x32xf32> to vector<16x32xf32>
    %c0_33 = arith.constant 0 : index
    %c0_34 = arith.constant 0 : index
    %39 = vector.load %arg11[%c0_33, %c0_34] : memref<32x32xf32, #tpu.memory_space<vmem>>, vector<32x32xf32>
    %cst_35 = arith.constant dense<0.000000e+00> : vector<16x32xf32>
    %40 = tpu.matmul %38, %39, %cst_35 {dimension_numbers = #tpu.dot_dimension_numbers<[1], [0], [0], [1], [0, 0, 1, 1], [], []>} : vector<16x32xf32>, vector<32x32xf32>, vector<16x32xf32> -> vector<16x32xf32>
    %41 = arith.addf %10, %40 : vector<16x32xf32>
    %c0_36 = arith.constant 0 : index
    %c0_37 = arith.constant 0 : index
    %42 = vector.load %arg12[%c0_36, %c0_37] : memref<32x128xf32, #tpu.memory_space<vmem>>, vector<32x128xf32>
    %cst_38 = arith.constant dense<0.000000e+00> : vector<16x128xf32>
    %43 = tpu.matmul %41, %42, %cst_38 {dimension_numbers = #tpu.dot_dimension_numbers<[1], [0], [0], [1], [0, 0, 1, 1], [], []>} : vector<16x32xf32>, vector<32x128xf32>, vector<16x128xf32> -> vector<16x128xf32>
    %c0_39 = arith.constant 0 : index
    %c0_40 = arith.constant 0 : index
    %44 = vector.load %arg13[%c0_39, %c0_40] : memref<1x128xf32, #tpu.memory_space<vmem>>, vector<1x128xf32>
    %45 = vector.broadcast %44 : vector<1x128xf32> to vector<16x128xf32>
    %46 = arith.addf %43, %45 : vector<16x128xf32>
    %cst_41 = arith.constant 0.000000e+00 : f32
    %47 = vector.broadcast %cst_41 : f32 to vector<16x128xf32>
    %48 = arith.maximumf %46, %47 : vector<16x128xf32>
    %c0_42 = arith.constant 0 : index
    %c0_43 = arith.constant 0 : index
    %49 = vector.load %arg14[%c0_42, %c0_43] : memref<128x32xf32, #tpu.memory_space<vmem>>, vector<128x32xf32>
    %cst_44 = arith.constant dense<0.000000e+00> : vector<16x32xf32>
    %50 = tpu.matmul %48, %49, %cst_44 {dimension_numbers = #tpu.dot_dimension_numbers<[1], [0], [0], [1], [0, 0, 1, 1], [], []>} : vector<16x128xf32>, vector<128x32xf32>, vector<16x32xf32> -> vector<16x32xf32>
    %51 = arith.addf %41, %50 : vector<16x32xf32>
    %c0_45 = arith.constant 0 : index
    %c0_46 = arith.constant 0 : index
    %52 = vector.load %arg15[%c0_45, %c0_46] : memref<1x32xf32, #tpu.memory_space<vmem>>, vector<1x32xf32>
    %53 = vector.broadcast %52 : vector<1x32xf32> to vector<16x32xf32>
    %54 = arith.addf %51, %53 : vector<16x32xf32>
    %55 = vector.shape_cast %54 : vector<16x32xf32> to vector<2x8x32xf32>
    "tpu.trace_start"() <{level = 10 : i32, message = "bmh,bnh->bmn"}> : () -> ()
    %cst_47 = arith.constant dense<0.000000e+00> : vector<2x8x8xf32>
    %56 = tpu.matmul %55, %55, %cst_47 {dimension_numbers = #tpu.dot_dimension_numbers<[2], [2], [1], [1], [0, 0, 0, 1, 1, 1], [0], [0]>} : vector<2x8x32xf32>, vector<2x8x32xf32>, vector<2x8x8xf32> -> vector<2x8x8xf32>
    "tpu.trace_stop"() : () -> ()
    %57 = vector.extract_strided_slice %56 {offsets = [0, 0, 0], sizes = [2, 1, 8], strides = [1, 1, 1]} : vector<2x8x8xf32> to vector<2x1x8xf32>
    %58 = vector.shape_cast %57 : vector<2x1x8xf32> to vector<2x8xf32>
    %59 = tpu.transpose %58, [1, 0] : vector<2x8xf32> -> vector<8x2xf32>
    %60 = vector.extract_strided_slice %56 {offsets = [0, 1, 0], sizes = [2, 1, 8], strides = [1, 1, 1]} : vector<2x8x8xf32> to vector<2x1x8xf32>
    %61 = vector.shape_cast %60 : vector<2x1x8xf32> to vector<2x8xf32>
    %62 = tpu.transpose %61, [1, 0] : vector<2x8xf32> -> vector<8x2xf32>
    %63 = vector.extract_strided_slice %56 {offsets = [0, 2, 0], sizes = [2, 1, 8], strides = [1, 1, 1]} : vector<2x8x8xf32> to vector<2x1x8xf32>
    %64 = vector.shape_cast %63 : vector<2x1x8xf32> to vector<2x8xf32>
    %65 = tpu.transpose %64, [1, 0] : vector<2x8xf32> -> vector<8x2xf32>
    %66 = vector.extract_strided_slice %56 {offsets = [0, 3, 0], sizes = [2, 1, 8], strides = [1, 1, 1]} : vector<2x8x8xf32> to vector<2x1x8xf32>
    %67 = vector.shape_cast %66 : vector<2x1x8xf32> to vector<2x8xf32>
    %68 = tpu.transpose %67, [1, 0] : vector<2x8xf32> -> vector<8x2xf32>
    %69 = vector.extract_strided_slice %56 {offsets = [0, 4, 0], sizes = [2, 1, 8], strides = [1, 1, 1]} : vector<2x8x8xf32> to vector<2x1x8xf32>
    %70 = vector.shape_cast %69 : vector<2x1x8xf32> to vector<2x8xf32>
    %71 = tpu.transpose %70, [1, 0] : vector<2x8xf32> -> vector<8x2xf32>
    %72 = vector.extract_strided_slice %56 {offsets = [0, 5, 0], sizes = [2, 1, 8], strides = [1, 1, 1]} : vector<2x8x8xf32> to vector<2x1x8xf32>
    %73 = vector.shape_cast %72 : vector<2x1x8xf32> to vector<2x8xf32>
    %74 = tpu.transpose %73, [1, 0] : vector<2x8xf32> -> vector<8x2xf32>
    %75 = vector.extract_strided_slice %56 {offsets = [0, 6, 0], sizes = [2, 1, 8], strides = [1, 1, 1]} : vector<2x8x8xf32> to vector<2x1x8xf32>
    %76 = vector.shape_cast %75 : vector<2x1x8xf32> to vector<2x8xf32>
    %77 = tpu.transpose %76, [1, 0] : vector<2x8xf32> -> vector<8x2xf32>
    %78 = vector.extract_strided_slice %56 {offsets = [0, 7, 0], sizes = [2, 1, 8], strides = [1, 1, 1]} : vector<2x8x8xf32> to vector<2x1x8xf32>
    %79 = vector.shape_cast %78 : vector<2x1x8xf32> to vector<2x8xf32>
    %80 = tpu.transpose %79, [1, 0] : vector<2x8xf32> -> vector<8x2xf32>
    %81 = arith.addf %59, %62 : vector<8x2xf32>
    %82 = arith.addf %81, %65 : vector<8x2xf32>
    %83 = arith.addf %82, %68 : vector<8x2xf32>
    %84 = arith.addf %83, %71 : vector<8x2xf32>
    %85 = arith.addf %84, %74 : vector<8x2xf32>
    %86 = arith.addf %85, %77 : vector<8x2xf32>
    %87 = arith.addf %86, %80 : vector<8x2xf32>
    %cst_48 = arith.constant 1.250000e-01 : f32
    %88 = vector.broadcast %cst_48 : f32 to vector<8x2xf32>
    %89 = arith.mulf %87, %88 : vector<8x2xf32>
    %90 = vector.extract_strided_slice %4 {offsets = [0, 0, 0], sizes = [1, 8, 2], strides = [1, 1, 1]} : vector<2x8x2xf32> to vector<1x8x2xf32>
    %91 = vector.shape_cast %90 : vector<1x8x2xf32> to vector<8x2xf32>
    %92 = vector.extract_strided_slice %4 {offsets = [1, 0, 0], sizes = [1, 8, 2], strides = [1, 1, 1]} : vector<2x8x2xf32> to vector<1x8x2xf32>
    %93 = vector.shape_cast %92 : vector<1x8x2xf32> to vector<8x2xf32>
    %94 = tpu.iota {dimensions = array<i32: 0>} : vector<8x2xi32>
    %95 = arith.sitofp %94 : vector<8x2xi32> to vector<8x2xf32>
    %cst_49 = arith.constant 0.000000e+00 : f32
    %96 = vector.broadcast %cst_49 : f32 to vector<8x2xf32>
    %cst_50 = arith.constant 1.250000e-01 : f32
    %97 = vector.broadcast %cst_50 : f32 to vector<8x2xf32>
    %cst_51 = arith.constant -1.000000e+00 : f32
    %98 = vector.broadcast %cst_51 : f32 to vector<1x2xf32>
    %cst_52 = arith.constant 0.000000e+00 : f32
    %99 = vector.broadcast %cst_52 : f32 to vector<1x2xf32>
    %cst_53 = arith.constant 0.000000e+00 : f32
    %100 = vector.broadcast %cst_53 : f32 to vector<1x2xf32>
    %c0_i32 = arith.constant 0 : i32
    %101 = vector.broadcast %c0_i32 : i32 to vector<8x2xi32>
    %102 = vector.extract_strided_slice %97 {offsets = [0, 0], sizes = [1, 2], strides = [1, 1]} : vector<8x2xf32> to vector<1x2xf32>
    %103 = vector.broadcast %102 : vector<1x2xf32> to vector<8x2xf32>
    %104 = arith.mulf %103, %59 : vector<8x2xf32>
    %105 = vector.extract_strided_slice %97 {offsets = [1, 0], sizes = [1, 2], strides = [1, 1]} : vector<8x2xf32> to vector<1x2xf32>
    %106 = vector.broadcast %105 : vector<1x2xf32> to vector<8x2xf32>
    %107 = arith.mulf %106, %62 : vector<8x2xf32>
    %108 = arith.addf %104, %107 : vector<8x2xf32>
    %109 = vector.extract_strided_slice %97 {offsets = [2, 0], sizes = [1, 2], strides = [1, 1]} : vector<8x2xf32> to vector<1x2xf32>
    %110 = vector.broadcast %109 : vector<1x2xf32> to vector<8x2xf32>
    %111 = arith.mulf %110, %65 : vector<8x2xf32>
    %112 = arith.addf %108, %111 : vector<8x2xf32>
    %113 = vector.extract_strided_slice %97 {offsets = [3, 0], sizes = [1, 2], strides = [1, 1]} : vector<8x2xf32> to vector<1x2xf32>
    %114 = vector.broadcast %113 : vector<1x2xf32> to vector<8x2xf32>
    %115 = arith.mulf %114, %68 : vector<8x2xf32>
    %116 = arith.addf %112, %115 : vector<8x2xf32>
    %117 = vector.extract_strided_slice %97 {offsets = [4, 0], sizes = [1, 2], strides = [1, 1]} : vector<8x2xf32> to vector<1x2xf32>
    %118 = vector.broadcast %117 : vector<1x2xf32> to vector<8x2xf32>
    %119 = arith.mulf %118, %71 : vector<8x2xf32>
    %120 = arith.addf %116, %119 : vector<8x2xf32>
    %121 = vector.extract_strided_slice %97 {offsets = [5, 0], sizes = [1, 2], strides = [1, 1]} : vector<8x2xf32> to vector<1x2xf32>
    %122 = vector.broadcast %121 : vector<1x2xf32> to vector<8x2xf32>
    %123 = arith.mulf %122, %74 : vector<8x2xf32>
    %124 = arith.addf %120, %123 : vector<8x2xf32>
    %125 = vector.extract_strided_slice %97 {offsets = [6, 0], sizes = [1, 2], strides = [1, 1]} : vector<8x2xf32> to vector<1x2xf32>
    %126 = vector.broadcast %125 : vector<1x2xf32> to vector<8x2xf32>
    %127 = arith.mulf %126, %77 : vector<8x2xf32>
    %128 = arith.addf %124, %127 : vector<8x2xf32>
    %129 = vector.extract_strided_slice %97 {offsets = [7, 0], sizes = [1, 2], strides = [1, 1]} : vector<8x2xf32> to vector<1x2xf32>
    %130 = vector.broadcast %129 : vector<1x2xf32> to vector<8x2xf32>
    %131 = arith.mulf %130, %80 : vector<8x2xf32>
    %132 = arith.addf %128, %131 : vector<8x2xf32>
    %133 = arith.addf %89, %132 : vector<8x2xf32>
    %cst_54 = arith.constant 0.176776692 : f32
    %134 = vector.broadcast %cst_54 : f32 to vector<8x2xf32>
    %135 = arith.mulf %133, %134 : vector<8x2xf32>
    %136 = vector.broadcast %98 : vector<1x2xf32> to vector<8x2xf32>
    %137 = arith.cmpf one, %3, %136 : vector<8x2xf32>
    %cst_55 = arith.constant 0.000000e+00 : f32
    %138 = vector.broadcast %cst_55 : f32 to vector<1x2xf32>
    %139 = arith.cmpf oge, %98, %138 : vector<1x2xf32>
    %140 = vector.broadcast %139 : vector<1x2xi1> to vector<8x2xi1>
    %141 = arith.andi %137, %140 : vector<8x2xi1>
    %cst_56 = arith.constant 2.000000e+00 : f32
    %cst_57 = arith.constant 0.000000e+00 : f32
    %142 = vector.broadcast %cst_56 : f32 to vector<8x2xf32>
    %143 = vector.broadcast %cst_57 : f32 to vector<8x2xf32>
    %144 = arith.select %141, %142, %143 : vector<8x2xi1>, vector<8x2xf32>
    %145 = arith.subf %135, %144 : vector<8x2xf32>
    %cst_58 = arith.constant 5.000000e-01 : f32
    %146 = vector.broadcast %cst_58 : f32 to vector<8x2xf32>
    %147 = arith.cmpf ogt, %96, %146 : vector<8x2xf32>
    %cst_59 = arith.constant -1.000000e+09 : f32
    %148 = vector.broadcast %cst_59 : f32 to vector<8x2xf32>
    %149 = arith.select %147, %148, %145 : vector<8x2xi1>, vector<8x2xf32>
    %cst_60 = arith.constant dense<0xFF800000> : vector<2xf32>
    %150 = vector.multi_reduction <maximumf>, %149, %cst_60 [0] : vector<8x2xf32> to vector<2xf32>
    %151 = vector.shape_cast %150 : vector<2xf32> to vector<1x2xf32>
    %152 = vector.broadcast %151 : vector<1x2xf32> to vector<8x2xf32>
    %153 = arith.subf %149, %152 : vector<8x2xf32>
    %154 = math.exp %153 : vector<8x2xf32>
    %cst_61 = arith.constant dense<0.000000e+00> : vector<2xf32>
    %155 = vector.multi_reduction <add>, %154, %cst_61 [0] : vector<8x2xf32> to vector<2xf32>
    %156 = vector.shape_cast %155 : vector<2xf32> to vector<1x2xf32>
    %157 = math.log %156 : vector<1x2xf32>
    %158 = arith.addf %151, %157 : vector<1x2xf32>
    %159 = arith.subf %151, %158 : vector<1x2xf32>
    %160 = arith.addf %99, %159 : vector<1x2xf32>
    %161 = vector.broadcast %151 : vector<1x2xf32> to vector<8x2xf32>
    %162 = arith.cmpf oge, %149, %161 : vector<8x2xf32>
    %cst_62 = arith.constant 8.000000e+00 : f32
    %163 = vector.broadcast %cst_62 : f32 to vector<8x2xf32>
    %164 = arith.select %162, %95, %163 : vector<8x2xi1>, vector<8x2xf32>
    %cst_63 = arith.constant dense<0x7F800000> : vector<2xf32>
    %165 = vector.multi_reduction <minimumf>, %164, %cst_63 [0] : vector<8x2xf32> to vector<2xf32>
    %166 = vector.shape_cast %165 : vector<2xf32> to vector<1x2xf32>
    %167 = vector.broadcast %166 : vector<1x2xf32> to vector<8x2xf32>
    %168 = arith.cmpf oeq, %95, %167 : vector<8x2xf32>
    %169 = arith.extui %168 : vector<8x2xi1> to vector<8x2xi32>
    %170 = arith.sitofp %169 : vector<8x2xi32> to vector<8x2xf32>
    %171 = arith.mulf %170, %91 : vector<8x2xf32>
    %cst_64 = arith.constant dense<0.000000e+00> : vector<2xf32>
    %172 = vector.multi_reduction <add>, %171, %cst_64 [0] : vector<8x2xf32> to vector<2xf32>
    %173 = vector.shape_cast %172 : vector<2xf32> to vector<1x2xf32>
    %174 = arith.mulf %170, %93 : vector<8x2xf32>
    %cst_65 = arith.constant dense<0.000000e+00> : vector<2xf32>
    %175 = vector.multi_reduction <add>, %174, %cst_65 [0] : vector<8x2xf32> to vector<2xf32>
    %176 = vector.shape_cast %175 : vector<2xf32> to vector<1x2xf32>
    %177 = arith.mulf %170, %3 : vector<8x2xf32>
    %cst_66 = arith.constant dense<0.000000e+00> : vector<2xf32>
    %178 = vector.multi_reduction <add>, %177, %cst_66 [0] : vector<8x2xf32> to vector<2xf32>
    %179 = vector.shape_cast %178 : vector<2xf32> to vector<1x2xf32>
    %c0_i32_67 = arith.constant 0 : i32
    %180 = vector.broadcast %c0_i32_67 : i32 to vector<8x2xi32>
    %181 = arith.cmpi eq, %94, %180 : vector<8x2xi32>
    %182 = arith.fptosi %166 : vector<1x2xf32> to vector<1x2xi32>
    %183 = vector.shape_cast %182 : vector<1x2xi32> to vector<1x2xi32>
    %184 = vector.broadcast %183 : vector<1x2xi32> to vector<8x2xi32>
    %185 = arith.select %181, %184, %101 : vector<8x2xi1>, vector<8x2xi32>
    %186 = arith.addf %96, %170 : vector<8x2xf32>
    %187 = vector.extract_strided_slice %170 {offsets = [0, 0], sizes = [1, 2], strides = [1, 1]} : vector<8x2xf32> to vector<1x2xf32>
    %188 = vector.broadcast %187 : vector<1x2xf32> to vector<8x2xf32>
    %189 = arith.mulf %188, %59 : vector<8x2xf32>
    %190 = vector.extract_strided_slice %170 {offsets = [1, 0], sizes = [1, 2], strides = [1, 1]} : vector<8x2xf32> to vector<1x2xf32>
    %191 = vector.broadcast %190 : vector<1x2xf32> to vector<8x2xf32>
    %192 = arith.mulf %191, %62 : vector<8x2xf32>
    %193 = arith.addf %189, %192 : vector<8x2xf32>
    %194 = vector.extract_strided_slice %170 {offsets = [2, 0], sizes = [1, 2], strides = [1, 1]} : vector<8x2xf32> to vector<1x2xf32>
    %195 = vector.broadcast %194 : vector<1x2xf32> to vector<8x2xf32>
    %196 = arith.mulf %195, %65 : vector<8x2xf32>
    %197 = arith.addf %193, %196 : vector<8x2xf32>
    %198 = vector.extract_strided_slice %170 {offsets = [3, 0], sizes = [1, 2], strides = [1, 1]} : vector<8x2xf32> to vector<1x2xf32>
    %199 = vector.broadcast %198 : vector<1x2xf32> to vector<8x2xf32>
    %200 = arith.mulf %199, %68 : vector<8x2xf32>
    %201 = arith.addf %197, %200 : vector<8x2xf32>
    %202 = vector.extract_strided_slice %170 {offsets = [4, 0], sizes = [1, 2], strides = [1, 1]} : vector<8x2xf32> to vector<1x2xf32>
    %203 = vector.broadcast %202 : vector<1x2xf32> to vector<8x2xf32>
    %204 = arith.mulf %203, %71 : vector<8x2xf32>
    %205 = arith.addf %201, %204 : vector<8x2xf32>
    %206 = vector.extract_strided_slice %170 {offsets = [5, 0], sizes = [1, 2], strides = [1, 1]} : vector<8x2xf32> to vector<1x2xf32>
    %207 = vector.broadcast %206 : vector<1x2xf32> to vector<8x2xf32>
    %208 = arith.mulf %207, %74 : vector<8x2xf32>
    %209 = arith.addf %205, %208 : vector<8x2xf32>
    %210 = vector.extract_strided_slice %170 {offsets = [6, 0], sizes = [1, 2], strides = [1, 1]} : vector<8x2xf32> to vector<1x2xf32>
    %211 = vector.broadcast %210 : vector<1x2xf32> to vector<8x2xf32>
    %212 = arith.mulf %211, %77 : vector<8x2xf32>
    %213 = arith.addf %209, %212 : vector<8x2xf32>
    %214 = vector.extract_strided_slice %170 {offsets = [7, 0], sizes = [1, 2], strides = [1, 1]} : vector<8x2xf32> to vector<1x2xf32>
    %215 = vector.broadcast %214 : vector<1x2xf32> to vector<8x2xf32>
    %216 = arith.mulf %215, %80 : vector<8x2xf32>
    %217 = arith.addf %213, %216 : vector<8x2xf32>
    %218 = arith.addf %89, %217 : vector<8x2xf32>
    %cst_68 = arith.constant 0.176776692 : f32
    %219 = vector.broadcast %cst_68 : f32 to vector<8x2xf32>
    %220 = arith.mulf %218, %219 : vector<8x2xf32>
    %221 = vector.broadcast %179 : vector<1x2xf32> to vector<8x2xf32>
    %222 = arith.cmpf one, %3, %221 : vector<8x2xf32>
    %cst_69 = arith.constant 0.000000e+00 : f32
    %223 = vector.broadcast %cst_69 : f32 to vector<1x2xf32>
    %224 = arith.cmpf oge, %179, %223 : vector<1x2xf32>
    %225 = vector.broadcast %224 : vector<1x2xi1> to vector<8x2xi1>
    %226 = arith.andi %222, %225 : vector<8x2xi1>
    %cst_70 = arith.constant 2.000000e+00 : f32
    %cst_71 = arith.constant 0.000000e+00 : f32
    %227 = vector.broadcast %cst_70 : f32 to vector<8x2xf32>
    %228 = vector.broadcast %cst_71 : f32 to vector<8x2xf32>
    %229 = arith.select %226, %227, %228 : vector<8x2xi1>, vector<8x2xf32>
    %230 = arith.subf %220, %229 : vector<8x2xf32>
    %cst_72 = arith.constant 5.000000e-01 : f32
    %231 = vector.broadcast %cst_72 : f32 to vector<8x2xf32>
    %232 = arith.cmpf ogt, %186, %231 : vector<8x2xf32>
    %cst_73 = arith.constant -1.000000e+09 : f32
    %233 = vector.broadcast %cst_73 : f32 to vector<8x2xf32>
    %234 = arith.select %232, %233, %230 : vector<8x2xi1>, vector<8x2xf32>
    %cst_74 = arith.constant dense<0xFF800000> : vector<2xf32>
    %235 = vector.multi_reduction <maximumf>, %234, %cst_74 [0] : vector<8x2xf32> to vector<2xf32>
    %236 = vector.shape_cast %235 : vector<2xf32> to vector<1x2xf32>
    %237 = vector.broadcast %236 : vector<1x2xf32> to vector<8x2xf32>
    %238 = arith.subf %234, %237 : vector<8x2xf32>
    %239 = math.exp %238 : vector<8x2xf32>
    %cst_75 = arith.constant dense<0.000000e+00> : vector<2xf32>
    %240 = vector.multi_reduction <add>, %239, %cst_75 [0] : vector<8x2xf32> to vector<2xf32>
    %241 = vector.shape_cast %240 : vector<2xf32> to vector<1x2xf32>
    %242 = math.log %241 : vector<1x2xf32>
    %243 = arith.addf %236, %242 : vector<1x2xf32>
    %244 = arith.subf %236, %243 : vector<1x2xf32>
    %245 = arith.addf %160, %244 : vector<1x2xf32>
    %246 = vector.broadcast %236 : vector<1x2xf32> to vector<8x2xf32>
    %247 = arith.cmpf oge, %234, %246 : vector<8x2xf32>
    %cst_76 = arith.constant 8.000000e+00 : f32
    %248 = vector.broadcast %cst_76 : f32 to vector<8x2xf32>
    %249 = arith.select %247, %95, %248 : vector<8x2xi1>, vector<8x2xf32>
    %cst_77 = arith.constant dense<0x7F800000> : vector<2xf32>
    %250 = vector.multi_reduction <minimumf>, %249, %cst_77 [0] : vector<8x2xf32> to vector<2xf32>
    %251 = vector.shape_cast %250 : vector<2xf32> to vector<1x2xf32>
    %252 = vector.broadcast %251 : vector<1x2xf32> to vector<8x2xf32>
    %253 = arith.cmpf oeq, %95, %252 : vector<8x2xf32>
    %254 = arith.extui %253 : vector<8x2xi1> to vector<8x2xi32>
    %255 = arith.sitofp %254 : vector<8x2xi32> to vector<8x2xf32>
    %256 = arith.mulf %255, %91 : vector<8x2xf32>
    %cst_78 = arith.constant dense<0.000000e+00> : vector<2xf32>
    %257 = vector.multi_reduction <add>, %256, %cst_78 [0] : vector<8x2xf32> to vector<2xf32>
    %258 = vector.shape_cast %257 : vector<2xf32> to vector<1x2xf32>
    %259 = arith.mulf %255, %93 : vector<8x2xf32>
    %cst_79 = arith.constant dense<0.000000e+00> : vector<2xf32>
    %260 = vector.multi_reduction <add>, %259, %cst_79 [0] : vector<8x2xf32> to vector<2xf32>
    %261 = vector.shape_cast %260 : vector<2xf32> to vector<1x2xf32>
    %262 = arith.mulf %255, %3 : vector<8x2xf32>
    %cst_80 = arith.constant dense<0.000000e+00> : vector<2xf32>
    %263 = vector.multi_reduction <add>, %262, %cst_80 [0] : vector<8x2xf32> to vector<2xf32>
    %264 = vector.shape_cast %263 : vector<2xf32> to vector<1x2xf32>
    %265 = arith.subf %258, %173 : vector<1x2xf32>
    %266 = arith.mulf %265, %265 : vector<1x2xf32>
    %267 = arith.subf %261, %176 : vector<1x2xf32>
    %268 = arith.mulf %267, %267 : vector<1x2xf32>
    %269 = arith.addf %266, %268 : vector<1x2xf32>
    %270 = math.sqrt %269 : vector<1x2xf32>
    %271 = arith.addf %100, %270 : vector<1x2xf32>
    %c1_i32 = arith.constant 1 : i32
    %272 = vector.broadcast %c1_i32 : i32 to vector<8x2xi32>
    %273 = arith.cmpi eq, %94, %272 : vector<8x2xi32>
    %274 = arith.fptosi %251 : vector<1x2xf32> to vector<1x2xi32>
    %275 = vector.shape_cast %274 : vector<1x2xi32> to vector<1x2xi32>
    %276 = vector.broadcast %275 : vector<1x2xi32> to vector<8x2xi32>
    %277 = arith.select %273, %276, %185 : vector<8x2xi1>, vector<8x2xi32>
    %278 = arith.addf %186, %255 : vector<8x2xf32>
    %279 = vector.extract_strided_slice %255 {offsets = [0, 0], sizes = [1, 2], strides = [1, 1]} : vector<8x2xf32> to vector<1x2xf32>
    %280 = vector.broadcast %279 : vector<1x2xf32> to vector<8x2xf32>
    %281 = arith.mulf %280, %59 : vector<8x2xf32>
    %282 = vector.extract_strided_slice %255 {offsets = [1, 0], sizes = [1, 2], strides = [1, 1]} : vector<8x2xf32> to vector<1x2xf32>
    %283 = vector.broadcast %282 : vector<1x2xf32> to vector<8x2xf32>
    %284 = arith.mulf %283, %62 : vector<8x2xf32>
    %285 = arith.addf %281, %284 : vector<8x2xf32>
    %286 = vector.extract_strided_slice %255 {offsets = [2, 0], sizes = [1, 2], strides = [1, 1]} : vector<8x2xf32> to vector<1x2xf32>
    %287 = vector.broadcast %286 : vector<1x2xf32> to vector<8x2xf32>
    %288 = arith.mulf %287, %65 : vector<8x2xf32>
    %289 = arith.addf %285, %288 : vector<8x2xf32>
    %290 = vector.extract_strided_slice %255 {offsets = [3, 0], sizes = [1, 2], strides = [1, 1]} : vector<8x2xf32> to vector<1x2xf32>
    %291 = vector.broadcast %290 : vector<1x2xf32> to vector<8x2xf32>
    %292 = arith.mulf %291, %68 : vector<8x2xf32>
    %293 = arith.addf %289, %292 : vector<8x2xf32>
    %294 = vector.extract_strided_slice %255 {offsets = [4, 0], sizes = [1, 2], strides = [1, 1]} : vector<8x2xf32> to vector<1x2xf32>
    %295 = vector.broadcast %294 : vector<1x2xf32> to vector<8x2xf32>
    %296 = arith.mulf %295, %71 : vector<8x2xf32>
    %297 = arith.addf %293, %296 : vector<8x2xf32>
    %298 = vector.extract_strided_slice %255 {offsets = [5, 0], sizes = [1, 2], strides = [1, 1]} : vector<8x2xf32> to vector<1x2xf32>
    %299 = vector.broadcast %298 : vector<1x2xf32> to vector<8x2xf32>
    %300 = arith.mulf %299, %74 : vector<8x2xf32>
    %301 = arith.addf %297, %300 : vector<8x2xf32>
    %302 = vector.extract_strided_slice %255 {offsets = [6, 0], sizes = [1, 2], strides = [1, 1]} : vector<8x2xf32> to vector<1x2xf32>
    %303 = vector.broadcast %302 : vector<1x2xf32> to vector<8x2xf32>
    %304 = arith.mulf %303, %77 : vector<8x2xf32>
    %305 = arith.addf %301, %304 : vector<8x2xf32>
    %306 = vector.extract_strided_slice %255 {offsets = [7, 0], sizes = [1, 2], strides = [1, 1]} : vector<8x2xf32> to vector<1x2xf32>
    %307 = vector.broadcast %306 : vector<1x2xf32> to vector<8x2xf32>
    %308 = arith.mulf %307, %80 : vector<8x2xf32>
    %309 = arith.addf %305, %308 : vector<8x2xf32>
    %310 = arith.addf %89, %309 : vector<8x2xf32>
    %cst_81 = arith.constant 0.176776692 : f32
    %311 = vector.broadcast %cst_81 : f32 to vector<8x2xf32>
    %312 = arith.mulf %310, %311 : vector<8x2xf32>
    %313 = vector.broadcast %264 : vector<1x2xf32> to vector<8x2xf32>
    %314 = arith.cmpf one, %3, %313 : vector<8x2xf32>
    %cst_82 = arith.constant 0.000000e+00 : f32
    %315 = vector.broadcast %cst_82 : f32 to vector<1x2xf32>
    %316 = arith.cmpf oge, %264, %315 : vector<1x2xf32>
    %317 = vector.broadcast %316 : vector<1x2xi1> to vector<8x2xi1>
    %318 = arith.andi %314, %317 : vector<8x2xi1>
    %cst_83 = arith.constant 2.000000e+00 : f32
    %cst_84 = arith.constant 0.000000e+00 : f32
    %319 = vector.broadcast %cst_83 : f32 to vector<8x2xf32>
    %320 = vector.broadcast %cst_84 : f32 to vector<8x2xf32>
    %321 = arith.select %318, %319, %320 : vector<8x2xi1>, vector<8x2xf32>
    %322 = arith.subf %312, %321 : vector<8x2xf32>
    %cst_85 = arith.constant 5.000000e-01 : f32
    %323 = vector.broadcast %cst_85 : f32 to vector<8x2xf32>
    %324 = arith.cmpf ogt, %278, %323 : vector<8x2xf32>
    %cst_86 = arith.constant -1.000000e+09 : f32
    %325 = vector.broadcast %cst_86 : f32 to vector<8x2xf32>
    %326 = arith.select %324, %325, %322 : vector<8x2xi1>, vector<8x2xf32>
    %cst_87 = arith.constant dense<0xFF800000> : vector<2xf32>
    %327 = vector.multi_reduction <maximumf>, %326, %cst_87 [0] : vector<8x2xf32> to vector<2xf32>
    %328 = vector.shape_cast %327 : vector<2xf32> to vector<1x2xf32>
    %329 = vector.broadcast %328 : vector<1x2xf32> to vector<8x2xf32>
    %330 = arith.subf %326, %329 : vector<8x2xf32>
    %331 = math.exp %330 : vector<8x2xf32>
    %cst_88 = arith.constant dense<0.000000e+00> : vector<2xf32>
    %332 = vector.multi_reduction <add>, %331, %cst_88 [0] : vector<8x2xf32> to vector<2xf32>
    %333 = vector.shape_cast %332 : vector<2xf32> to vector<1x2xf32>
    %334 = math.log %333 : vector<1x2xf32>
    %335 = arith.addf %328, %334 : vector<1x2xf32>
    %336 = arith.subf %328, %335 : vector<1x2xf32>
    %337 = arith.addf %245, %336 : vector<1x2xf32>
    %338 = vector.broadcast %328 : vector<1x2xf32> to vector<8x2xf32>
    %339 = arith.cmpf oge, %326, %338 : vector<8x2xf32>
    %cst_89 = arith.constant 8.000000e+00 : f32
    %340 = vector.broadcast %cst_89 : f32 to vector<8x2xf32>
    %341 = arith.select %339, %95, %340 : vector<8x2xi1>, vector<8x2xf32>
    %cst_90 = arith.constant dense<0x7F800000> : vector<2xf32>
    %342 = vector.multi_reduction <minimumf>, %341, %cst_90 [0] : vector<8x2xf32> to vector<2xf32>
    %343 = vector.shape_cast %342 : vector<2xf32> to vector<1x2xf32>
    %344 = vector.broadcast %343 : vector<1x2xf32> to vector<8x2xf32>
    %345 = arith.cmpf oeq, %95, %344 : vector<8x2xf32>
    %346 = arith.extui %345 : vector<8x2xi1> to vector<8x2xi32>
    %347 = arith.sitofp %346 : vector<8x2xi32> to vector<8x2xf32>
    %348 = arith.mulf %347, %91 : vector<8x2xf32>
    %cst_91 = arith.constant dense<0.000000e+00> : vector<2xf32>
    %349 = vector.multi_reduction <add>, %348, %cst_91 [0] : vector<8x2xf32> to vector<2xf32>
    %350 = vector.shape_cast %349 : vector<2xf32> to vector<1x2xf32>
    %351 = arith.mulf %347, %93 : vector<8x2xf32>
    %cst_92 = arith.constant dense<0.000000e+00> : vector<2xf32>
    %352 = vector.multi_reduction <add>, %351, %cst_92 [0] : vector<8x2xf32> to vector<2xf32>
    %353 = vector.shape_cast %352 : vector<2xf32> to vector<1x2xf32>
    %354 = arith.mulf %347, %3 : vector<8x2xf32>
    %cst_93 = arith.constant dense<0.000000e+00> : vector<2xf32>
    %355 = vector.multi_reduction <add>, %354, %cst_93 [0] : vector<8x2xf32> to vector<2xf32>
    %356 = vector.shape_cast %355 : vector<2xf32> to vector<1x2xf32>
    %357 = arith.subf %350, %258 : vector<1x2xf32>
    %358 = arith.mulf %357, %357 : vector<1x2xf32>
    %359 = arith.subf %353, %261 : vector<1x2xf32>
    %360 = arith.mulf %359, %359 : vector<1x2xf32>
    %361 = arith.addf %358, %360 : vector<1x2xf32>
    %362 = math.sqrt %361 : vector<1x2xf32>
    %363 = arith.addf %271, %362 : vector<1x2xf32>
    %c2_i32 = arith.constant 2 : i32
    %364 = vector.broadcast %c2_i32 : i32 to vector<8x2xi32>
    %365 = arith.cmpi eq, %94, %364 : vector<8x2xi32>
    %366 = arith.fptosi %343 : vector<1x2xf32> to vector<1x2xi32>
    %367 = vector.shape_cast %366 : vector<1x2xi32> to vector<1x2xi32>
    %368 = vector.broadcast %367 : vector<1x2xi32> to vector<8x2xi32>
    %369 = arith.select %365, %368, %277 : vector<8x2xi1>, vector<8x2xi32>
    %370 = arith.addf %278, %347 : vector<8x2xf32>
    %371 = vector.extract_strided_slice %347 {offsets = [0, 0], sizes = [1, 2], strides = [1, 1]} : vector<8x2xf32> to vector<1x2xf32>
    %372 = vector.broadcast %371 : vector<1x2xf32> to vector<8x2xf32>
    %373 = arith.mulf %372, %59 : vector<8x2xf32>
    %374 = vector.extract_strided_slice %347 {offsets = [1, 0], sizes = [1, 2], strides = [1, 1]} : vector<8x2xf32> to vector<1x2xf32>
    %375 = vector.broadcast %374 : vector<1x2xf32> to vector<8x2xf32>
    %376 = arith.mulf %375, %62 : vector<8x2xf32>
    %377 = arith.addf %373, %376 : vector<8x2xf32>
    %378 = vector.extract_strided_slice %347 {offsets = [2, 0], sizes = [1, 2], strides = [1, 1]} : vector<8x2xf32> to vector<1x2xf32>
    %379 = vector.broadcast %378 : vector<1x2xf32> to vector<8x2xf32>
    %380 = arith.mulf %379, %65 : vector<8x2xf32>
    %381 = arith.addf %377, %380 : vector<8x2xf32>
    %382 = vector.extract_strided_slice %347 {offsets = [3, 0], sizes = [1, 2], strides = [1, 1]} : vector<8x2xf32> to vector<1x2xf32>
    %383 = vector.broadcast %382 : vector<1x2xf32> to vector<8x2xf32>
    %384 = arith.mulf %383, %68 : vector<8x2xf32>
    %385 = arith.addf %381, %384 : vector<8x2xf32>
    %386 = vector.extract_strided_slice %347 {offsets = [4, 0], sizes = [1, 2], strides = [1, 1]} : vector<8x2xf32> to vector<1x2xf32>
    %387 = vector.broadcast %386 : vector<1x2xf32> to vector<8x2xf32>
    %388 = arith.mulf %387, %71 : vector<8x2xf32>
    %389 = arith.addf %385, %388 : vector<8x2xf32>
    %390 = vector.extract_strided_slice %347 {offsets = [5, 0], sizes = [1, 2], strides = [1, 1]} : vector<8x2xf32> to vector<1x2xf32>
    %391 = vector.broadcast %390 : vector<1x2xf32> to vector<8x2xf32>
    %392 = arith.mulf %391, %74 : vector<8x2xf32>
    %393 = arith.addf %389, %392 : vector<8x2xf32>
    %394 = vector.extract_strided_slice %347 {offsets = [6, 0], sizes = [1, 2], strides = [1, 1]} : vector<8x2xf32> to vector<1x2xf32>
    %395 = vector.broadcast %394 : vector<1x2xf32> to vector<8x2xf32>
    %396 = arith.mulf %395, %77 : vector<8x2xf32>
    %397 = arith.addf %393, %396 : vector<8x2xf32>
    %398 = vector.extract_strided_slice %347 {offsets = [7, 0], sizes = [1, 2], strides = [1, 1]} : vector<8x2xf32> to vector<1x2xf32>
    %399 = vector.broadcast %398 : vector<1x2xf32> to vector<8x2xf32>
    %400 = arith.mulf %399, %80 : vector<8x2xf32>
    %401 = arith.addf %397, %400 : vector<8x2xf32>
    %402 = arith.addf %89, %401 : vector<8x2xf32>
    %cst_94 = arith.constant 0.176776692 : f32
    %403 = vector.broadcast %cst_94 : f32 to vector<8x2xf32>
    %404 = arith.mulf %402, %403 : vector<8x2xf32>
    %405 = vector.broadcast %356 : vector<1x2xf32> to vector<8x2xf32>
    %406 = arith.cmpf one, %3, %405 : vector<8x2xf32>
    %cst_95 = arith.constant 0.000000e+00 : f32
    %407 = vector.broadcast %cst_95 : f32 to vector<1x2xf32>
    %408 = arith.cmpf oge, %356, %407 : vector<1x2xf32>
    %409 = vector.broadcast %408 : vector<1x2xi1> to vector<8x2xi1>
    %410 = arith.andi %406, %409 : vector<8x2xi1>
    %cst_96 = arith.constant 2.000000e+00 : f32
    %cst_97 = arith.constant 0.000000e+00 : f32
    %411 = vector.broadcast %cst_96 : f32 to vector<8x2xf32>
    %412 = vector.broadcast %cst_97 : f32 to vector<8x2xf32>
    %413 = arith.select %410, %411, %412 : vector<8x2xi1>, vector<8x2xf32>
    %414 = arith.subf %404, %413 : vector<8x2xf32>
    %cst_98 = arith.constant 5.000000e-01 : f32
    %415 = vector.broadcast %cst_98 : f32 to vector<8x2xf32>
    %416 = arith.cmpf ogt, %370, %415 : vector<8x2xf32>
    %cst_99 = arith.constant -1.000000e+09 : f32
    %417 = vector.broadcast %cst_99 : f32 to vector<8x2xf32>
    %418 = arith.select %416, %417, %414 : vector<8x2xi1>, vector<8x2xf32>
    %cst_100 = arith.constant dense<0xFF800000> : vector<2xf32>
    %419 = vector.multi_reduction <maximumf>, %418, %cst_100 [0] : vector<8x2xf32> to vector<2xf32>
    %420 = vector.shape_cast %419 : vector<2xf32> to vector<1x2xf32>
    %421 = vector.broadcast %420 : vector<1x2xf32> to vector<8x2xf32>
    %422 = arith.subf %418, %421 : vector<8x2xf32>
    %423 = math.exp %422 : vector<8x2xf32>
    %cst_101 = arith.constant dense<0.000000e+00> : vector<2xf32>
    %424 = vector.multi_reduction <add>, %423, %cst_101 [0] : vector<8x2xf32> to vector<2xf32>
    %425 = vector.shape_cast %424 : vector<2xf32> to vector<1x2xf32>
    %426 = math.log %425 : vector<1x2xf32>
    %427 = arith.addf %420, %426 : vector<1x2xf32>
    %428 = arith.subf %420, %427 : vector<1x2xf32>
    %429 = arith.addf %337, %428 : vector<1x2xf32>
    %430 = vector.broadcast %420 : vector<1x2xf32> to vector<8x2xf32>
    %431 = arith.cmpf oge, %418, %430 : vector<8x2xf32>
    %cst_102 = arith.constant 8.000000e+00 : f32
    %432 = vector.broadcast %cst_102 : f32 to vector<8x2xf32>
    %433 = arith.select %431, %95, %432 : vector<8x2xi1>, vector<8x2xf32>
    %cst_103 = arith.constant dense<0x7F800000> : vector<2xf32>
    %434 = vector.multi_reduction <minimumf>, %433, %cst_103 [0] : vector<8x2xf32> to vector<2xf32>
    %435 = vector.shape_cast %434 : vector<2xf32> to vector<1x2xf32>
    %436 = vector.broadcast %435 : vector<1x2xf32> to vector<8x2xf32>
    %437 = arith.cmpf oeq, %95, %436 : vector<8x2xf32>
    %438 = arith.extui %437 : vector<8x2xi1> to vector<8x2xi32>
    %439 = arith.sitofp %438 : vector<8x2xi32> to vector<8x2xf32>
    %440 = arith.mulf %439, %91 : vector<8x2xf32>
    %cst_104 = arith.constant dense<0.000000e+00> : vector<2xf32>
    %441 = vector.multi_reduction <add>, %440, %cst_104 [0] : vector<8x2xf32> to vector<2xf32>
    %442 = vector.shape_cast %441 : vector<2xf32> to vector<1x2xf32>
    %443 = arith.mulf %439, %93 : vector<8x2xf32>
    %cst_105 = arith.constant dense<0.000000e+00> : vector<2xf32>
    %444 = vector.multi_reduction <add>, %443, %cst_105 [0] : vector<8x2xf32> to vector<2xf32>
    %445 = vector.shape_cast %444 : vector<2xf32> to vector<1x2xf32>
    %446 = arith.mulf %439, %3 : vector<8x2xf32>
    %cst_106 = arith.constant dense<0.000000e+00> : vector<2xf32>
    %447 = vector.multi_reduction <add>, %446, %cst_106 [0] : vector<8x2xf32> to vector<2xf32>
    %448 = vector.shape_cast %447 : vector<2xf32> to vector<1x2xf32>
    %449 = arith.subf %442, %350 : vector<1x2xf32>
    %450 = arith.mulf %449, %449 : vector<1x2xf32>
    %451 = arith.subf %445, %353 : vector<1x2xf32>
    %452 = arith.mulf %451, %451 : vector<1x2xf32>
    %453 = arith.addf %450, %452 : vector<1x2xf32>
    %454 = math.sqrt %453 : vector<1x2xf32>
    %455 = arith.addf %363, %454 : vector<1x2xf32>
    %c3_i32 = arith.constant 3 : i32
    %456 = vector.broadcast %c3_i32 : i32 to vector<8x2xi32>
    %457 = arith.cmpi eq, %94, %456 : vector<8x2xi32>
    %458 = arith.fptosi %435 : vector<1x2xf32> to vector<1x2xi32>
    %459 = vector.shape_cast %458 : vector<1x2xi32> to vector<1x2xi32>
    %460 = vector.broadcast %459 : vector<1x2xi32> to vector<8x2xi32>
    %461 = arith.select %457, %460, %369 : vector<8x2xi1>, vector<8x2xi32>
    %462 = arith.addf %370, %439 : vector<8x2xf32>
    %463 = vector.extract_strided_slice %439 {offsets = [0, 0], sizes = [1, 2], strides = [1, 1]} : vector<8x2xf32> to vector<1x2xf32>
    %464 = vector.broadcast %463 : vector<1x2xf32> to vector<8x2xf32>
    %465 = arith.mulf %464, %59 : vector<8x2xf32>
    %466 = vector.extract_strided_slice %439 {offsets = [1, 0], sizes = [1, 2], strides = [1, 1]} : vector<8x2xf32> to vector<1x2xf32>
    %467 = vector.broadcast %466 : vector<1x2xf32> to vector<8x2xf32>
    %468 = arith.mulf %467, %62 : vector<8x2xf32>
    %469 = arith.addf %465, %468 : vector<8x2xf32>
    %470 = vector.extract_strided_slice %439 {offsets = [2, 0], sizes = [1, 2], strides = [1, 1]} : vector<8x2xf32> to vector<1x2xf32>
    %471 = vector.broadcast %470 : vector<1x2xf32> to vector<8x2xf32>
    %472 = arith.mulf %471, %65 : vector<8x2xf32>
    %473 = arith.addf %469, %472 : vector<8x2xf32>
    %474 = vector.extract_strided_slice %439 {offsets = [3, 0], sizes = [1, 2], strides = [1, 1]} : vector<8x2xf32> to vector<1x2xf32>
    %475 = vector.broadcast %474 : vector<1x2xf32> to vector<8x2xf32>
    %476 = arith.mulf %475, %68 : vector<8x2xf32>
    %477 = arith.addf %473, %476 : vector<8x2xf32>
    %478 = vector.extract_strided_slice %439 {offsets = [4, 0], sizes = [1, 2], strides = [1, 1]} : vector<8x2xf32> to vector<1x2xf32>
    %479 = vector.broadcast %478 : vector<1x2xf32> to vector<8x2xf32>
    %480 = arith.mulf %479, %71 : vector<8x2xf32>
    %481 = arith.addf %477, %480 : vector<8x2xf32>
    %482 = vector.extract_strided_slice %439 {offsets = [5, 0], sizes = [1, 2], strides = [1, 1]} : vector<8x2xf32> to vector<1x2xf32>
    %483 = vector.broadcast %482 : vector<1x2xf32> to vector<8x2xf32>
    %484 = arith.mulf %483, %74 : vector<8x2xf32>
    %485 = arith.addf %481, %484 : vector<8x2xf32>
    %486 = vector.extract_strided_slice %439 {offsets = [6, 0], sizes = [1, 2], strides = [1, 1]} : vector<8x2xf32> to vector<1x2xf32>
    %487 = vector.broadcast %486 : vector<1x2xf32> to vector<8x2xf32>
    %488 = arith.mulf %487, %77 : vector<8x2xf32>
    %489 = arith.addf %485, %488 : vector<8x2xf32>
    %490 = vector.extract_strided_slice %439 {offsets = [7, 0], sizes = [1, 2], strides = [1, 1]} : vector<8x2xf32> to vector<1x2xf32>
    %491 = vector.broadcast %490 : vector<1x2xf32> to vector<8x2xf32>
    %492 = arith.mulf %491, %80 : vector<8x2xf32>
    %493 = arith.addf %489, %492 : vector<8x2xf32>
    %494 = arith.addf %89, %493 : vector<8x2xf32>
    %cst_107 = arith.constant 0.176776692 : f32
    %495 = vector.broadcast %cst_107 : f32 to vector<8x2xf32>
    %496 = arith.mulf %494, %495 : vector<8x2xf32>
    %497 = vector.broadcast %448 : vector<1x2xf32> to vector<8x2xf32>
    %498 = arith.cmpf one, %3, %497 : vector<8x2xf32>
    %cst_108 = arith.constant 0.000000e+00 : f32
    %499 = vector.broadcast %cst_108 : f32 to vector<1x2xf32>
    %500 = arith.cmpf oge, %448, %499 : vector<1x2xf32>
    %501 = vector.broadcast %500 : vector<1x2xi1> to vector<8x2xi1>
    %502 = arith.andi %498, %501 : vector<8x2xi1>
    %cst_109 = arith.constant 2.000000e+00 : f32
    %cst_110 = arith.constant 0.000000e+00 : f32
    %503 = vector.broadcast %cst_109 : f32 to vector<8x2xf32>
    %504 = vector.broadcast %cst_110 : f32 to vector<8x2xf32>
    %505 = arith.select %502, %503, %504 : vector<8x2xi1>, vector<8x2xf32>
    %506 = arith.subf %496, %505 : vector<8x2xf32>
    %cst_111 = arith.constant 5.000000e-01 : f32
    %507 = vector.broadcast %cst_111 : f32 to vector<8x2xf32>
    %508 = arith.cmpf ogt, %462, %507 : vector<8x2xf32>
    %cst_112 = arith.constant -1.000000e+09 : f32
    %509 = vector.broadcast %cst_112 : f32 to vector<8x2xf32>
    %510 = arith.select %508, %509, %506 : vector<8x2xi1>, vector<8x2xf32>
    %cst_113 = arith.constant dense<0xFF800000> : vector<2xf32>
    %511 = vector.multi_reduction <maximumf>, %510, %cst_113 [0] : vector<8x2xf32> to vector<2xf32>
    %512 = vector.shape_cast %511 : vector<2xf32> to vector<1x2xf32>
    %513 = vector.broadcast %512 : vector<1x2xf32> to vector<8x2xf32>
    %514 = arith.subf %510, %513 : vector<8x2xf32>
    %515 = math.exp %514 : vector<8x2xf32>
    %cst_114 = arith.constant dense<0.000000e+00> : vector<2xf32>
    %516 = vector.multi_reduction <add>, %515, %cst_114 [0] : vector<8x2xf32> to vector<2xf32>
    %517 = vector.shape_cast %516 : vector<2xf32> to vector<1x2xf32>
    %518 = math.log %517 : vector<1x2xf32>
    %519 = arith.addf %512, %518 : vector<1x2xf32>
    %520 = arith.subf %512, %519 : vector<1x2xf32>
    %521 = arith.addf %429, %520 : vector<1x2xf32>
    %522 = vector.broadcast %512 : vector<1x2xf32> to vector<8x2xf32>
    %523 = arith.cmpf oge, %510, %522 : vector<8x2xf32>
    %cst_115 = arith.constant 8.000000e+00 : f32
    %524 = vector.broadcast %cst_115 : f32 to vector<8x2xf32>
    %525 = arith.select %523, %95, %524 : vector<8x2xi1>, vector<8x2xf32>
    %cst_116 = arith.constant dense<0x7F800000> : vector<2xf32>
    %526 = vector.multi_reduction <minimumf>, %525, %cst_116 [0] : vector<8x2xf32> to vector<2xf32>
    %527 = vector.shape_cast %526 : vector<2xf32> to vector<1x2xf32>
    %528 = vector.broadcast %527 : vector<1x2xf32> to vector<8x2xf32>
    %529 = arith.cmpf oeq, %95, %528 : vector<8x2xf32>
    %530 = arith.extui %529 : vector<8x2xi1> to vector<8x2xi32>
    %531 = arith.sitofp %530 : vector<8x2xi32> to vector<8x2xf32>
    %532 = arith.mulf %531, %91 : vector<8x2xf32>
    %cst_117 = arith.constant dense<0.000000e+00> : vector<2xf32>
    %533 = vector.multi_reduction <add>, %532, %cst_117 [0] : vector<8x2xf32> to vector<2xf32>
    %534 = vector.shape_cast %533 : vector<2xf32> to vector<1x2xf32>
    %535 = arith.mulf %531, %93 : vector<8x2xf32>
    %cst_118 = arith.constant dense<0.000000e+00> : vector<2xf32>
    %536 = vector.multi_reduction <add>, %535, %cst_118 [0] : vector<8x2xf32> to vector<2xf32>
    %537 = vector.shape_cast %536 : vector<2xf32> to vector<1x2xf32>
    %538 = arith.mulf %531, %3 : vector<8x2xf32>
    %cst_119 = arith.constant dense<0.000000e+00> : vector<2xf32>
    %539 = vector.multi_reduction <add>, %538, %cst_119 [0] : vector<8x2xf32> to vector<2xf32>
    %540 = vector.shape_cast %539 : vector<2xf32> to vector<1x2xf32>
    %541 = arith.subf %534, %442 : vector<1x2xf32>
    %542 = arith.mulf %541, %541 : vector<1x2xf32>
    %543 = arith.subf %537, %445 : vector<1x2xf32>
    %544 = arith.mulf %543, %543 : vector<1x2xf32>
    %545 = arith.addf %542, %544 : vector<1x2xf32>
    %546 = math.sqrt %545 : vector<1x2xf32>
    %547 = arith.addf %455, %546 : vector<1x2xf32>
    %c4_i32 = arith.constant 4 : i32
    %548 = vector.broadcast %c4_i32 : i32 to vector<8x2xi32>
    %549 = arith.cmpi eq, %94, %548 : vector<8x2xi32>
    %550 = arith.fptosi %527 : vector<1x2xf32> to vector<1x2xi32>
    %551 = vector.shape_cast %550 : vector<1x2xi32> to vector<1x2xi32>
    %552 = vector.broadcast %551 : vector<1x2xi32> to vector<8x2xi32>
    %553 = arith.select %549, %552, %461 : vector<8x2xi1>, vector<8x2xi32>
    %554 = arith.addf %462, %531 : vector<8x2xf32>
    %555 = vector.extract_strided_slice %531 {offsets = [0, 0], sizes = [1, 2], strides = [1, 1]} : vector<8x2xf32> to vector<1x2xf32>
    %556 = vector.broadcast %555 : vector<1x2xf32> to vector<8x2xf32>
    %557 = arith.mulf %556, %59 : vector<8x2xf32>
    %558 = vector.extract_strided_slice %531 {offsets = [1, 0], sizes = [1, 2], strides = [1, 1]} : vector<8x2xf32> to vector<1x2xf32>
    %559 = vector.broadcast %558 : vector<1x2xf32> to vector<8x2xf32>
    %560 = arith.mulf %559, %62 : vector<8x2xf32>
    %561 = arith.addf %557, %560 : vector<8x2xf32>
    %562 = vector.extract_strided_slice %531 {offsets = [2, 0], sizes = [1, 2], strides = [1, 1]} : vector<8x2xf32> to vector<1x2xf32>
    %563 = vector.broadcast %562 : vector<1x2xf32> to vector<8x2xf32>
    %564 = arith.mulf %563, %65 : vector<8x2xf32>
    %565 = arith.addf %561, %564 : vector<8x2xf32>
    %566 = vector.extract_strided_slice %531 {offsets = [3, 0], sizes = [1, 2], strides = [1, 1]} : vector<8x2xf32> to vector<1x2xf32>
    %567 = vector.broadcast %566 : vector<1x2xf32> to vector<8x2xf32>
    %568 = arith.mulf %567, %68 : vector<8x2xf32>
    %569 = arith.addf %565, %568 : vector<8x2xf32>
    %570 = vector.extract_strided_slice %531 {offsets = [4, 0], sizes = [1, 2], strides = [1, 1]} : vector<8x2xf32> to vector<1x2xf32>
    %571 = vector.broadcast %570 : vector<1x2xf32> to vector<8x2xf32>
    %572 = arith.mulf %571, %71 : vector<8x2xf32>
    %573 = arith.addf %569, %572 : vector<8x2xf32>
    %574 = vector.extract_strided_slice %531 {offsets = [5, 0], sizes = [1, 2], strides = [1, 1]} : vector<8x2xf32> to vector<1x2xf32>
    %575 = vector.broadcast %574 : vector<1x2xf32> to vector<8x2xf32>
    %576 = arith.mulf %575, %74 : vector<8x2xf32>
    %577 = arith.addf %573, %576 : vector<8x2xf32>
    %578 = vector.extract_strided_slice %531 {offsets = [6, 0], sizes = [1, 2], strides = [1, 1]} : vector<8x2xf32> to vector<1x2xf32>
    %579 = vector.broadcast %578 : vector<1x2xf32> to vector<8x2xf32>
    %580 = arith.mulf %579, %77 : vector<8x2xf32>
    %581 = arith.addf %577, %580 : vector<8x2xf32>
    %582 = vector.extract_strided_slice %531 {offsets = [7, 0], sizes = [1, 2], strides = [1, 1]} : vector<8x2xf32> to vector<1x2xf32>
    %583 = vector.broadcast %582 : vector<1x2xf32> to vector<8x2xf32>
    %584 = arith.mulf %583, %80 : vector<8x2xf32>
    %585 = arith.addf %581, %584 : vector<8x2xf32>
    %586 = arith.addf %89, %585 : vector<8x2xf32>
    %cst_120 = arith.constant 0.176776692 : f32
    %587 = vector.broadcast %cst_120 : f32 to vector<8x2xf32>
    %588 = arith.mulf %586, %587 : vector<8x2xf32>
    %589 = vector.broadcast %540 : vector<1x2xf32> to vector<8x2xf32>
    %590 = arith.cmpf one, %3, %589 : vector<8x2xf32>
    %cst_121 = arith.constant 0.000000e+00 : f32
    %591 = vector.broadcast %cst_121 : f32 to vector<1x2xf32>
    %592 = arith.cmpf oge, %540, %591 : vector<1x2xf32>
    %593 = vector.broadcast %592 : vector<1x2xi1> to vector<8x2xi1>
    %594 = arith.andi %590, %593 : vector<8x2xi1>
    %cst_122 = arith.constant 2.000000e+00 : f32
    %cst_123 = arith.constant 0.000000e+00 : f32
    %595 = vector.broadcast %cst_122 : f32 to vector<8x2xf32>
    %596 = vector.broadcast %cst_123 : f32 to vector<8x2xf32>
    %597 = arith.select %594, %595, %596 : vector<8x2xi1>, vector<8x2xf32>
    %598 = arith.subf %588, %597 : vector<8x2xf32>
    %cst_124 = arith.constant 5.000000e-01 : f32
    %599 = vector.broadcast %cst_124 : f32 to vector<8x2xf32>
    %600 = arith.cmpf ogt, %554, %599 : vector<8x2xf32>
    %cst_125 = arith.constant -1.000000e+09 : f32
    %601 = vector.broadcast %cst_125 : f32 to vector<8x2xf32>
    %602 = arith.select %600, %601, %598 : vector<8x2xi1>, vector<8x2xf32>
    %cst_126 = arith.constant dense<0xFF800000> : vector<2xf32>
    %603 = vector.multi_reduction <maximumf>, %602, %cst_126 [0] : vector<8x2xf32> to vector<2xf32>
    %604 = vector.shape_cast %603 : vector<2xf32> to vector<1x2xf32>
    %605 = vector.broadcast %604 : vector<1x2xf32> to vector<8x2xf32>
    %606 = arith.subf %602, %605 : vector<8x2xf32>
    %607 = math.exp %606 : vector<8x2xf32>
    %cst_127 = arith.constant dense<0.000000e+00> : vector<2xf32>
    %608 = vector.multi_reduction <add>, %607, %cst_127 [0] : vector<8x2xf32> to vector<2xf32>
    %609 = vector.shape_cast %608 : vector<2xf32> to vector<1x2xf32>
    %610 = math.log %609 : vector<1x2xf32>
    %611 = arith.addf %604, %610 : vector<1x2xf32>
    %612 = arith.subf %604, %611 : vector<1x2xf32>
    %613 = arith.addf %521, %612 : vector<1x2xf32>
    %614 = vector.broadcast %604 : vector<1x2xf32> to vector<8x2xf32>
    %615 = arith.cmpf oge, %602, %614 : vector<8x2xf32>
    %cst_128 = arith.constant 8.000000e+00 : f32
    %616 = vector.broadcast %cst_128 : f32 to vector<8x2xf32>
    %617 = arith.select %615, %95, %616 : vector<8x2xi1>, vector<8x2xf32>
    %cst_129 = arith.constant dense<0x7F800000> : vector<2xf32>
    %618 = vector.multi_reduction <minimumf>, %617, %cst_129 [0] : vector<8x2xf32> to vector<2xf32>
    %619 = vector.shape_cast %618 : vector<2xf32> to vector<1x2xf32>
    %620 = vector.broadcast %619 : vector<1x2xf32> to vector<8x2xf32>
    %621 = arith.cmpf oeq, %95, %620 : vector<8x2xf32>
    %622 = arith.extui %621 : vector<8x2xi1> to vector<8x2xi32>
    %623 = arith.sitofp %622 : vector<8x2xi32> to vector<8x2xf32>
    %624 = arith.mulf %623, %91 : vector<8x2xf32>
    %cst_130 = arith.constant dense<0.000000e+00> : vector<2xf32>
    %625 = vector.multi_reduction <add>, %624, %cst_130 [0] : vector<8x2xf32> to vector<2xf32>
    %626 = vector.shape_cast %625 : vector<2xf32> to vector<1x2xf32>
    %627 = arith.mulf %623, %93 : vector<8x2xf32>
    %cst_131 = arith.constant dense<0.000000e+00> : vector<2xf32>
    %628 = vector.multi_reduction <add>, %627, %cst_131 [0] : vector<8x2xf32> to vector<2xf32>
    %629 = vector.shape_cast %628 : vector<2xf32> to vector<1x2xf32>
    %630 = arith.mulf %623, %3 : vector<8x2xf32>
    %cst_132 = arith.constant dense<0.000000e+00> : vector<2xf32>
    %631 = vector.multi_reduction <add>, %630, %cst_132 [0] : vector<8x2xf32> to vector<2xf32>
    %632 = vector.shape_cast %631 : vector<2xf32> to vector<1x2xf32>
    %633 = arith.subf %626, %534 : vector<1x2xf32>
    %634 = arith.mulf %633, %633 : vector<1x2xf32>
    %635 = arith.subf %629, %537 : vector<1x2xf32>
    %636 = arith.mulf %635, %635 : vector<1x2xf32>
    %637 = arith.addf %634, %636 : vector<1x2xf32>
    %638 = math.sqrt %637 : vector<1x2xf32>
    %639 = arith.addf %547, %638 : vector<1x2xf32>
    %c5_i32 = arith.constant 5 : i32
    %640 = vector.broadcast %c5_i32 : i32 to vector<8x2xi32>
    %641 = arith.cmpi eq, %94, %640 : vector<8x2xi32>
    %642 = arith.fptosi %619 : vector<1x2xf32> to vector<1x2xi32>
    %643 = vector.shape_cast %642 : vector<1x2xi32> to vector<1x2xi32>
    %644 = vector.broadcast %643 : vector<1x2xi32> to vector<8x2xi32>
    %645 = arith.select %641, %644, %553 : vector<8x2xi1>, vector<8x2xi32>
    %646 = arith.addf %554, %623 : vector<8x2xf32>
    %647 = vector.extract_strided_slice %623 {offsets = [0, 0], sizes = [1, 2], strides = [1, 1]} : vector<8x2xf32> to vector<1x2xf32>
    %648 = vector.broadcast %647 : vector<1x2xf32> to vector<8x2xf32>
    %649 = arith.mulf %648, %59 : vector<8x2xf32>
    %650 = vector.extract_strided_slice %623 {offsets = [1, 0], sizes = [1, 2], strides = [1, 1]} : vector<8x2xf32> to vector<1x2xf32>
    %651 = vector.broadcast %650 : vector<1x2xf32> to vector<8x2xf32>
    %652 = arith.mulf %651, %62 : vector<8x2xf32>
    %653 = arith.addf %649, %652 : vector<8x2xf32>
    %654 = vector.extract_strided_slice %623 {offsets = [2, 0], sizes = [1, 2], strides = [1, 1]} : vector<8x2xf32> to vector<1x2xf32>
    %655 = vector.broadcast %654 : vector<1x2xf32> to vector<8x2xf32>
    %656 = arith.mulf %655, %65 : vector<8x2xf32>
    %657 = arith.addf %653, %656 : vector<8x2xf32>
    %658 = vector.extract_strided_slice %623 {offsets = [3, 0], sizes = [1, 2], strides = [1, 1]} : vector<8x2xf32> to vector<1x2xf32>
    %659 = vector.broadcast %658 : vector<1x2xf32> to vector<8x2xf32>
    %660 = arith.mulf %659, %68 : vector<8x2xf32>
    %661 = arith.addf %657, %660 : vector<8x2xf32>
    %662 = vector.extract_strided_slice %623 {offsets = [4, 0], sizes = [1, 2], strides = [1, 1]} : vector<8x2xf32> to vector<1x2xf32>
    %663 = vector.broadcast %662 : vector<1x2xf32> to vector<8x2xf32>
    %664 = arith.mulf %663, %71 : vector<8x2xf32>
    %665 = arith.addf %661, %664 : vector<8x2xf32>
    %666 = vector.extract_strided_slice %623 {offsets = [5, 0], sizes = [1, 2], strides = [1, 1]} : vector<8x2xf32> to vector<1x2xf32>
    %667 = vector.broadcast %666 : vector<1x2xf32> to vector<8x2xf32>
    %668 = arith.mulf %667, %74 : vector<8x2xf32>
    %669 = arith.addf %665, %668 : vector<8x2xf32>
    %670 = vector.extract_strided_slice %623 {offsets = [6, 0], sizes = [1, 2], strides = [1, 1]} : vector<8x2xf32> to vector<1x2xf32>
    %671 = vector.broadcast %670 : vector<1x2xf32> to vector<8x2xf32>
    %672 = arith.mulf %671, %77 : vector<8x2xf32>
    %673 = arith.addf %669, %672 : vector<8x2xf32>
    %674 = vector.extract_strided_slice %623 {offsets = [7, 0], sizes = [1, 2], strides = [1, 1]} : vector<8x2xf32> to vector<1x2xf32>
    %675 = vector.broadcast %674 : vector<1x2xf32> to vector<8x2xf32>
    %676 = arith.mulf %675, %80 : vector<8x2xf32>
    %677 = arith.addf %673, %676 : vector<8x2xf32>
    %678 = arith.addf %89, %677 : vector<8x2xf32>
    %cst_133 = arith.constant 0.176776692 : f32
    %679 = vector.broadcast %cst_133 : f32 to vector<8x2xf32>
    %680 = arith.mulf %678, %679 : vector<8x2xf32>
    %681 = vector.broadcast %632 : vector<1x2xf32> to vector<8x2xf32>
    %682 = arith.cmpf one, %3, %681 : vector<8x2xf32>
    %cst_134 = arith.constant 0.000000e+00 : f32
    %683 = vector.broadcast %cst_134 : f32 to vector<1x2xf32>
    %684 = arith.cmpf oge, %632, %683 : vector<1x2xf32>
    %685 = vector.broadcast %684 : vector<1x2xi1> to vector<8x2xi1>
    %686 = arith.andi %682, %685 : vector<8x2xi1>
    %cst_135 = arith.constant 2.000000e+00 : f32
    %cst_136 = arith.constant 0.000000e+00 : f32
    %687 = vector.broadcast %cst_135 : f32 to vector<8x2xf32>
    %688 = vector.broadcast %cst_136 : f32 to vector<8x2xf32>
    %689 = arith.select %686, %687, %688 : vector<8x2xi1>, vector<8x2xf32>
    %690 = arith.subf %680, %689 : vector<8x2xf32>
    %cst_137 = arith.constant 5.000000e-01 : f32
    %691 = vector.broadcast %cst_137 : f32 to vector<8x2xf32>
    %692 = arith.cmpf ogt, %646, %691 : vector<8x2xf32>
    %cst_138 = arith.constant -1.000000e+09 : f32
    %693 = vector.broadcast %cst_138 : f32 to vector<8x2xf32>
    %694 = arith.select %692, %693, %690 : vector<8x2xi1>, vector<8x2xf32>
    %cst_139 = arith.constant dense<0xFF800000> : vector<2xf32>
    %695 = vector.multi_reduction <maximumf>, %694, %cst_139 [0] : vector<8x2xf32> to vector<2xf32>
    %696 = vector.shape_cast %695 : vector<2xf32> to vector<1x2xf32>
    %697 = vector.broadcast %696 : vector<1x2xf32> to vector<8x2xf32>
    %698 = arith.subf %694, %697 : vector<8x2xf32>
    %699 = math.exp %698 : vector<8x2xf32>
    %cst_140 = arith.constant dense<0.000000e+00> : vector<2xf32>
    %700 = vector.multi_reduction <add>, %699, %cst_140 [0] : vector<8x2xf32> to vector<2xf32>
    %701 = vector.shape_cast %700 : vector<2xf32> to vector<1x2xf32>
    %702 = math.log %701 : vector<1x2xf32>
    %703 = arith.addf %696, %702 : vector<1x2xf32>
    %704 = arith.subf %696, %703 : vector<1x2xf32>
    %705 = arith.addf %613, %704 : vector<1x2xf32>
    %706 = vector.broadcast %696 : vector<1x2xf32> to vector<8x2xf32>
    %707 = arith.cmpf oge, %694, %706 : vector<8x2xf32>
    %cst_141 = arith.constant 8.000000e+00 : f32
    %708 = vector.broadcast %cst_141 : f32 to vector<8x2xf32>
    %709 = arith.select %707, %95, %708 : vector<8x2xi1>, vector<8x2xf32>
    %cst_142 = arith.constant dense<0x7F800000> : vector<2xf32>
    %710 = vector.multi_reduction <minimumf>, %709, %cst_142 [0] : vector<8x2xf32> to vector<2xf32>
    %711 = vector.shape_cast %710 : vector<2xf32> to vector<1x2xf32>
    %712 = vector.broadcast %711 : vector<1x2xf32> to vector<8x2xf32>
    %713 = arith.cmpf oeq, %95, %712 : vector<8x2xf32>
    %714 = arith.extui %713 : vector<8x2xi1> to vector<8x2xi32>
    %715 = arith.sitofp %714 : vector<8x2xi32> to vector<8x2xf32>
    %716 = arith.mulf %715, %91 : vector<8x2xf32>
    %cst_143 = arith.constant dense<0.000000e+00> : vector<2xf32>
    %717 = vector.multi_reduction <add>, %716, %cst_143 [0] : vector<8x2xf32> to vector<2xf32>
    %718 = vector.shape_cast %717 : vector<2xf32> to vector<1x2xf32>
    %719 = arith.mulf %715, %93 : vector<8x2xf32>
    %cst_144 = arith.constant dense<0.000000e+00> : vector<2xf32>
    %720 = vector.multi_reduction <add>, %719, %cst_144 [0] : vector<8x2xf32> to vector<2xf32>
    %721 = vector.shape_cast %720 : vector<2xf32> to vector<1x2xf32>
    %722 = arith.mulf %715, %3 : vector<8x2xf32>
    %cst_145 = arith.constant dense<0.000000e+00> : vector<2xf32>
    %723 = vector.multi_reduction <add>, %722, %cst_145 [0] : vector<8x2xf32> to vector<2xf32>
    %724 = vector.shape_cast %723 : vector<2xf32> to vector<1x2xf32>
    %725 = arith.subf %718, %626 : vector<1x2xf32>
    %726 = arith.mulf %725, %725 : vector<1x2xf32>
    %727 = arith.subf %721, %629 : vector<1x2xf32>
    %728 = arith.mulf %727, %727 : vector<1x2xf32>
    %729 = arith.addf %726, %728 : vector<1x2xf32>
    %730 = math.sqrt %729 : vector<1x2xf32>
    %731 = arith.addf %639, %730 : vector<1x2xf32>
    %c6_i32 = arith.constant 6 : i32
    %732 = vector.broadcast %c6_i32 : i32 to vector<8x2xi32>
    %733 = arith.cmpi eq, %94, %732 : vector<8x2xi32>
    %734 = arith.fptosi %711 : vector<1x2xf32> to vector<1x2xi32>
    %735 = vector.shape_cast %734 : vector<1x2xi32> to vector<1x2xi32>
    %736 = vector.broadcast %735 : vector<1x2xi32> to vector<8x2xi32>
    %737 = arith.select %733, %736, %645 : vector<8x2xi1>, vector<8x2xi32>
    %738 = arith.addf %646, %715 : vector<8x2xf32>
    %739 = vector.extract_strided_slice %715 {offsets = [0, 0], sizes = [1, 2], strides = [1, 1]} : vector<8x2xf32> to vector<1x2xf32>
    %740 = vector.broadcast %739 : vector<1x2xf32> to vector<8x2xf32>
    %741 = arith.mulf %740, %59 : vector<8x2xf32>
    %742 = vector.extract_strided_slice %715 {offsets = [1, 0], sizes = [1, 2], strides = [1, 1]} : vector<8x2xf32> to vector<1x2xf32>
    %743 = vector.broadcast %742 : vector<1x2xf32> to vector<8x2xf32>
    %744 = arith.mulf %743, %62 : vector<8x2xf32>
    %745 = arith.addf %741, %744 : vector<8x2xf32>
    %746 = vector.extract_strided_slice %715 {offsets = [2, 0], sizes = [1, 2], strides = [1, 1]} : vector<8x2xf32> to vector<1x2xf32>
    %747 = vector.broadcast %746 : vector<1x2xf32> to vector<8x2xf32>
    %748 = arith.mulf %747, %65 : vector<8x2xf32>
    %749 = arith.addf %745, %748 : vector<8x2xf32>
    %750 = vector.extract_strided_slice %715 {offsets = [3, 0], sizes = [1, 2], strides = [1, 1]} : vector<8x2xf32> to vector<1x2xf32>
    %751 = vector.broadcast %750 : vector<1x2xf32> to vector<8x2xf32>
    %752 = arith.mulf %751, %68 : vector<8x2xf32>
    %753 = arith.addf %749, %752 : vector<8x2xf32>
    %754 = vector.extract_strided_slice %715 {offsets = [4, 0], sizes = [1, 2], strides = [1, 1]} : vector<8x2xf32> to vector<1x2xf32>
    %755 = vector.broadcast %754 : vector<1x2xf32> to vector<8x2xf32>
    %756 = arith.mulf %755, %71 : vector<8x2xf32>
    %757 = arith.addf %753, %756 : vector<8x2xf32>
    %758 = vector.extract_strided_slice %715 {offsets = [5, 0], sizes = [1, 2], strides = [1, 1]} : vector<8x2xf32> to vector<1x2xf32>
    %759 = vector.broadcast %758 : vector<1x2xf32> to vector<8x2xf32>
    %760 = arith.mulf %759, %74 : vector<8x2xf32>
    %761 = arith.addf %757, %760 : vector<8x2xf32>
    %762 = vector.extract_strided_slice %715 {offsets = [6, 0], sizes = [1, 2], strides = [1, 1]} : vector<8x2xf32> to vector<1x2xf32>
    %763 = vector.broadcast %762 : vector<1x2xf32> to vector<8x2xf32>
    %764 = arith.mulf %763, %77 : vector<8x2xf32>
    %765 = arith.addf %761, %764 : vector<8x2xf32>
    %766 = vector.extract_strided_slice %715 {offsets = [7, 0], sizes = [1, 2], strides = [1, 1]} : vector<8x2xf32> to vector<1x2xf32>
    %767 = vector.broadcast %766 : vector<1x2xf32> to vector<8x2xf32>
    %768 = arith.mulf %767, %80 : vector<8x2xf32>
    %769 = arith.addf %765, %768 : vector<8x2xf32>
    %770 = arith.addf %89, %769 : vector<8x2xf32>
    %cst_146 = arith.constant 0.176776692 : f32
    %771 = vector.broadcast %cst_146 : f32 to vector<8x2xf32>
    %772 = arith.mulf %770, %771 : vector<8x2xf32>
    %773 = vector.broadcast %724 : vector<1x2xf32> to vector<8x2xf32>
    %774 = arith.cmpf one, %3, %773 : vector<8x2xf32>
    %cst_147 = arith.constant 0.000000e+00 : f32
    %775 = vector.broadcast %cst_147 : f32 to vector<1x2xf32>
    %776 = arith.cmpf oge, %724, %775 : vector<1x2xf32>
    %777 = vector.broadcast %776 : vector<1x2xi1> to vector<8x2xi1>
    %778 = arith.andi %774, %777 : vector<8x2xi1>
    %cst_148 = arith.constant 2.000000e+00 : f32
    %cst_149 = arith.constant 0.000000e+00 : f32
    %779 = vector.broadcast %cst_148 : f32 to vector<8x2xf32>
    %780 = vector.broadcast %cst_149 : f32 to vector<8x2xf32>
    %781 = arith.select %778, %779, %780 : vector<8x2xi1>, vector<8x2xf32>
    %782 = arith.subf %772, %781 : vector<8x2xf32>
    %cst_150 = arith.constant 5.000000e-01 : f32
    %783 = vector.broadcast %cst_150 : f32 to vector<8x2xf32>
    %784 = arith.cmpf ogt, %738, %783 : vector<8x2xf32>
    %cst_151 = arith.constant -1.000000e+09 : f32
    %785 = vector.broadcast %cst_151 : f32 to vector<8x2xf32>
    %786 = arith.select %784, %785, %782 : vector<8x2xi1>, vector<8x2xf32>
    %cst_152 = arith.constant dense<0xFF800000> : vector<2xf32>
    %787 = vector.multi_reduction <maximumf>, %786, %cst_152 [0] : vector<8x2xf32> to vector<2xf32>
    %788 = vector.shape_cast %787 : vector<2xf32> to vector<1x2xf32>
    %789 = vector.broadcast %788 : vector<1x2xf32> to vector<8x2xf32>
    %790 = arith.subf %786, %789 : vector<8x2xf32>
    %791 = math.exp %790 : vector<8x2xf32>
    %cst_153 = arith.constant dense<0.000000e+00> : vector<2xf32>
    %792 = vector.multi_reduction <add>, %791, %cst_153 [0] : vector<8x2xf32> to vector<2xf32>
    %793 = vector.shape_cast %792 : vector<2xf32> to vector<1x2xf32>
    %794 = math.log %793 : vector<1x2xf32>
    %795 = arith.addf %788, %794 : vector<1x2xf32>
    %796 = arith.subf %788, %795 : vector<1x2xf32>
    %797 = arith.addf %705, %796 : vector<1x2xf32>
    %798 = vector.broadcast %788 : vector<1x2xf32> to vector<8x2xf32>
    %799 = arith.cmpf oge, %786, %798 : vector<8x2xf32>
    %cst_154 = arith.constant 8.000000e+00 : f32
    %800 = vector.broadcast %cst_154 : f32 to vector<8x2xf32>
    %801 = arith.select %799, %95, %800 : vector<8x2xi1>, vector<8x2xf32>
    %cst_155 = arith.constant dense<0x7F800000> : vector<2xf32>
    %802 = vector.multi_reduction <minimumf>, %801, %cst_155 [0] : vector<8x2xf32> to vector<2xf32>
    %803 = vector.shape_cast %802 : vector<2xf32> to vector<1x2xf32>
    %804 = vector.broadcast %803 : vector<1x2xf32> to vector<8x2xf32>
    %805 = arith.cmpf oeq, %95, %804 : vector<8x2xf32>
    %806 = arith.extui %805 : vector<8x2xi1> to vector<8x2xi32>
    %807 = arith.sitofp %806 : vector<8x2xi32> to vector<8x2xf32>
    %808 = arith.mulf %807, %91 : vector<8x2xf32>
    %cst_156 = arith.constant dense<0.000000e+00> : vector<2xf32>
    %809 = vector.multi_reduction <add>, %808, %cst_156 [0] : vector<8x2xf32> to vector<2xf32>
    %810 = vector.shape_cast %809 : vector<2xf32> to vector<1x2xf32>
    %811 = arith.mulf %807, %93 : vector<8x2xf32>
    %cst_157 = arith.constant dense<0.000000e+00> : vector<2xf32>
    %812 = vector.multi_reduction <add>, %811, %cst_157 [0] : vector<8x2xf32> to vector<2xf32>
    %813 = vector.shape_cast %812 : vector<2xf32> to vector<1x2xf32>
    %814 = arith.subf %810, %718 : vector<1x2xf32>
    %815 = arith.mulf %814, %814 : vector<1x2xf32>
    %816 = arith.subf %813, %721 : vector<1x2xf32>
    %817 = arith.mulf %816, %816 : vector<1x2xf32>
    %818 = arith.addf %815, %817 : vector<1x2xf32>
    %819 = math.sqrt %818 : vector<1x2xf32>
    %820 = arith.addf %731, %819 : vector<1x2xf32>
    %c7_i32 = arith.constant 7 : i32
    %821 = vector.broadcast %c7_i32 : i32 to vector<8x2xi32>
    %822 = arith.cmpi eq, %94, %821 : vector<8x2xi32>
    %823 = arith.fptosi %803 : vector<1x2xf32> to vector<1x2xi32>
    %824 = vector.shape_cast %823 : vector<1x2xi32> to vector<1x2xi32>
    %825 = vector.broadcast %824 : vector<1x2xi32> to vector<8x2xi32>
    %826 = arith.select %822, %825, %737 : vector<8x2xi1>, vector<8x2xi32>
    %827 = arith.subf %173, %810 : vector<1x2xf32>
    %828 = arith.mulf %827, %827 : vector<1x2xf32>
    %829 = arith.subf %176, %813 : vector<1x2xf32>
    %830 = arith.mulf %829, %829 : vector<1x2xf32>
    %831 = arith.addf %828, %830 : vector<1x2xf32>
    %832 = math.sqrt %831 : vector<1x2xf32>
    %833 = arith.addf %820, %832 : vector<1x2xf32>
    %c0_158 = arith.constant 0 : index
    %c0_159 = arith.constant 0 : index
    %834 = vector.load %arg16[%c0_158, %c0_159] : memref<1x2xf32, #tpu.memory_space<vmem>>, vector<1x2xf32>
    tpu.vector_store %arg16[%c0_158, %c0_159], %833 {strides = array<i32>} : memref<1x2xf32, #tpu.memory_space<vmem>>, vector<1x2xf32>,
    %c0_160 = arith.constant 0 : index
    %c0_161 = arith.constant 0 : index
    %835 = vector.load %arg17[%c0_160, %c0_161] : memref<1x2xf32, #tpu.memory_space<vmem>>, vector<1x2xf32>
    tpu.vector_store %arg17[%c0_160, %c0_161], %797 {strides = array<i32>} : memref<1x2xf32, #tpu.memory_space<vmem>>, vector<1x2xf32>,
    %c0_162 = arith.constant 0 : index
    %c0_163 = arith.constant 0 : index
    %836 = vector.load %arg18[%c0_162, %c0_163] : memref<8x2xi32, #tpu.memory_space<vmem>>, vector<8x2xi32>
    tpu.vector_store %arg18[%c0_162, %c0_163], %826 {strides = array<i32>} : memref<8x2xi32, #tpu.memory_space<vmem>>, vector<8x2xi32>,
    return
  }
  func.func @transform_0(%arg0: i32) -> (i32, i32, i32) {
    %c0_i32 = arith.constant 0 : i32
    %c0_i32_0 = arith.constant 0 : i32
    %c0_i32_1 = arith.constant 0 : i32
    return %arg0, %c0_i32, %c0_i32_0 : i32, i32, i32
  }
  func.func @transform_1(%arg0: i32) -> (i32, i32, i32) {
    %c0_i32 = arith.constant 0 : i32
    %c0_i32_0 = arith.constant 0 : i32
    %c0_i32_1 = arith.constant 0 : i32
    return %arg0, %c0_i32, %c0_i32_0 : i32, i32, i32
  }
  func.func @transform_2(%arg0: i32) -> (i32, i32, i32) {
    %c0_i32 = arith.constant 0 : i32
    %c0_i32_0 = arith.constant 0 : i32
    %c0_i32_1 = arith.constant 0 : i32
    return %arg0, %c0_i32, %c0_i32_0 : i32, i32, i32
  }
  func.func @transform_3(%arg0: i32) -> (i32, i32) {
    %c0_i32 = arith.constant 0 : i32
    %c0_i32_0 = arith.constant 0 : i32
    return %c0_i32, %arg0 : i32, i32
  }
  func.func @transform_4(%arg0: i32) -> (i32, i32, i32) {
    %c0_i32 = arith.constant 0 : i32
    %c0_i32_0 = arith.constant 0 : i32
    %c0_i32_1 = arith.constant 0 : i32
    return %c0_i32, %c0_i32_0, %arg0 : i32, i32, i32
  }
  func.func @transform_5(%arg0: i32) -> (i32, i32) {
    %c0_i32 = arith.constant 0 : i32
    %c0_i32_0 = arith.constant 0 : i32
    %c0_i32_1 = arith.constant 0 : i32
    return %c0_i32, %c0_i32_0 : i32, i32
  }
  func.func @transform_6(%arg0: i32) -> (i32, i32) {
    %c0_i32 = arith.constant 0 : i32
    %c0_i32_0 = arith.constant 0 : i32
    %c0_i32_1 = arith.constant 0 : i32
    return %c0_i32, %c0_i32_0 : i32, i32
  }
  func.func @transform_7(%arg0: i32) -> (i32, i32) {
    %c0_i32 = arith.constant 0 : i32
    %c0_i32_0 = arith.constant 0 : i32
    %c0_i32_1 = arith.constant 0 : i32
    return %c0_i32, %c0_i32_0 : i32, i32
  }
  func.func @transform_8(%arg0: i32) -> (i32, i32) {
    %c0_i32 = arith.constant 0 : i32
    %c0_i32_0 = arith.constant 0 : i32
    %c0_i32_1 = arith.constant 0 : i32
    return %c0_i32, %c0_i32_0 : i32, i32
  }
  func.func @transform_9(%arg0: i32) -> (i32, i32) {
    %c0_i32 = arith.constant 0 : i32
    %c0_i32_0 = arith.constant 0 : i32
    %c0_i32_1 = arith.constant 0 : i32
    return %c0_i32, %c0_i32_0 : i32, i32
  }
  func.func @transform_10(%arg0: i32) -> (i32, i32) {
    %c0_i32 = arith.constant 0 : i32
    %c0_i32_0 = arith.constant 0 : i32
    %c0_i32_1 = arith.constant 0 : i32
    return %c0_i32, %c0_i32_0 : i32, i32
  }
  func.func @transform_11(%arg0: i32) -> (i32, i32) {
    %c0_i32 = arith.constant 0 : i32
    %c0_i32_0 = arith.constant 0 : i32
    %c0_i32_1 = arith.constant 0 : i32
    return %c0_i32, %c0_i32_0 : i32, i32
  }
  func.func @transform_12(%arg0: i32) -> (i32, i32) {
    %c0_i32 = arith.constant 0 : i32
    %c0_i32_0 = arith.constant 0 : i32
    %c0_i32_1 = arith.constant 0 : i32
    return %c0_i32, %c0_i32_0 : i32, i32
  }
  func.func @transform_13(%arg0: i32) -> (i32, i32) {
    %c0_i32 = arith.constant 0 : i32
    %c0_i32_0 = arith.constant 0 : i32
    %c0_i32_1 = arith.constant 0 : i32
    return %c0_i32, %c0_i32_0 : i32, i32
  }
  func.func @transform_14(%arg0: i32) -> (i32, i32) {
    %c0_i32 = arith.constant 0 : i32
    %c0_i32_0 = arith.constant 0 : i32
    %c0_i32_1 = arith.constant 0 : i32
    return %c0_i32, %c0_i32_0 : i32, i32
  }
  func.func @transform_15(%arg0: i32) -> (i32, i32) {
    %c0_i32 = arith.constant 0 : i32
    %c0_i32_0 = arith.constant 0 : i32
    return %c0_i32, %arg0 : i32, i32
  }
  func.func @transform_16(%arg0: i32) -> (i32, i32) {
    %c0_i32 = arith.constant 0 : i32
    %c0_i32_0 = arith.constant 0 : i32
    return %c0_i32, %arg0 : i32, i32
  }
  func.func @transform_17(%arg0: i32) -> (i32, i32) {
    %c0_i32 = arith.constant 0 : i32
    %c0_i32_0 = arith.constant 0 : i32
    return %c0_i32, %arg0 : i32, i32
  }
}

</mosaic_0001>

<bundles_post_ra>
// kernel: tpu_custom_call.1
= control target key start
LH: loop header
LB: loop body
LE: loop exit
PB: predicated region body
PF: predicated region fallthrough
CT: control target
= control target key end

     0   :  { %s3843_s0 = inlined_call_operand.vmem [shape: f32[2,8,4], index: 0, kind: input, shape index: {}]   ;;  %s3844_s1 = inlined_call_operand.vmem [shape: f32[2,8,8], index: 1, kind: input, shape index: {}]   ;;  %s3845_s2 = inlined_call_operand.vmem [shape: f32[2,8,8], index: 2, kind: input, shape index: {}]   ;;  %s3846_s3 = inlined_call_operand.vmem [shape: f32[8,2], index: 3, kind: input, shape index: {}]   ;;  %s3847_s4 = inlined_call_operand.vmem [shape: f32[2,8,2], index: 4, kind: input, shape index: {}]   ;;  %s3848_s5 = inlined_call_operand.vmem [shape: f32[4,32], index: 5, kind: input, shape index: {}]   ;;  %s3849_s6 = inlined_call_operand.vmem [shape: f32[1,32], index: 6, kind: input, shape index: {}]   ;;  %s3850_s7 = inlined_call_operand.vmem [shape: f32[32,32], index: 7, kind: input, shape index: {}]   ;;  %s3851_s8 = inlined_call_operand.vmem [shape: f32[32,32], index: 8, kind: input, shape index: {}]   ;;  %s3852_s9 = inlined_call_operand.vmem [shape: f32[32,32], index: 9, kind: input, shape index: {}]   ;;  %s3853_s10 = inlined_call_operand.vmem [shape: f32[32,32], index: 10, kind: input, shape index: {}]   ;;  %s3854_s11 = inlined_call_operand.vmem [shape: f32[32,128], index: 11, kind: input, shape index: {}]   ;;  %s3855_s12 = inlined_call_operand.vmem [shape: f32[1,128], index: 12, kind: input, shape index: {}]   ;;  %s3856_s13 = inlined_call_operand.vmem [shape: f32[128,32], index: 13, kind: input, shape index: {}]   ;;  %s3857_s14 = inlined_call_operand.vmem [shape: f32[1,32], index: 14, kind: input, shape index: {}]   ;;  %s3858_s15 = inlined_call_operand.hbm [shape: f32[1,2], index: 15, kind: output, shape index: {0}]   ;;  %s3859_s16 = inlined_call_operand.hbm [shape: f32[1,2], index: 16, kind: output, shape index: {1}]   ;;  %s3860_s17 = inlined_call_operand.vmem [shape: s32[8,2], index: 17, kind: output, shape index: {2}]  }
   0x1   :  { %3863 = sst [smem:[#allocation8_spill]] %s3843_s0 }
   0x2   :  { %3864 = sst [smem:[#allocation9_spill]] %s3844_s1 }
   0x3   :  { %23 = vsyncpa [#allocation3], 0  ;;  %v64_v0 = vld [vmem:[%s3848_s5] sm:$0xf]  ;;  %vm79_vm0 = vcmask 1043456   ;;  %s3865_s28 = sld [smem:[#allocation8_spill]] }
   0x4   :  { %vm72_vm1 = vcmask 31744   ;;  %2617 = vmatprep.subr.msk.mxu0 %vm79_vm0, %v64_v0  ;;  %v158_v3 = vld [vmem:[%s3850_s7] sm:$0xff]  ;;  %v159_v4 = vld [vmem:[%s3850_s7 + $0x8] sm:$0xff] }
   0x5   :  { %v323_v5 = vld [vmem:[%s3852_s9] sm:$0xff]  ;;  %2618 = vmatpush3.msk.msra.mxu0 %vm79_vm0, %v64_v0  ;;  %v2742_v6 = vpack.c.bf16 %v159_v4, %v158_v3  ;;  %v324_v7 = vld [vmem:[%s3852_s9 + $0x8] sm:$0xff] }
   0x9   :  { %v55_v1 = vld [vmem:[%s3865_s28] sm:$0xff]  ;;  %v56_v2 = vld [vmem:[%s3865_s28 + $0x8] sm:$0xff] }
   0xa   :  { %2619 = vmatprep.mubr.msk.f32.mxu0 %vm72_vm1, %v55_v1 }
   0xb   :  { %24 = vsyncpa [#allocation5], 0  ;;  %2620 = vmatmul.mubr.msk.f32.vlgmr.msra.gmra.mrb[0].mxu0 %vm72_vm1, %v56_v2  ;;  %v2758_v8 = vpack.c.bf16 %v324_v7, %v323_v5  ;;  %2743 = vmatprep.subr.bf16.mxu0 %v2742_v6  ;;  %v160_v9 = vld [vmem:[%s3850_s7 + $0x10] sm:$0xff]  ;;  %v161_v10 = vld [vmem:[%s3850_s7 + $0x18] sm:$0xff]  ;;  %vm162_vm2 = vcmask 261120   ;;  %v2941_v26 = vmov 0.0  }
   0xc   :  { %2745 = vmatpush3.bf16.msra.mxu0 %v2742_v6  ;;  %v2746_v11 = vpack.c.bf16 %v161_v10, %v160_v9  ;;  %v325_v12 = vld [vmem:[%s3852_s9 + $0x10] sm:$0xff]  ;;  %v326_v13 = vld [vmem:[%s3852_s9 + $0x18] sm:$0xff]  ;;  %v244_v15 = vld [vmem:[%s3851_s8] sm:$0xff]  ;;  %vm2942_vm3 = vmmov 0   ;;  %s3866_s23 = sld [smem:[#allocation9_spill]]  ;;  %vm562_vm5 = vcmask 64512  }
   0xd   :  { %2759 = vmatprep.subr.bf16.mxu1 %v2758_v8  ;;  %v2762_v14 = vpack.c.bf16 %v326_v13, %v325_v12  ;;  %v245_v16 = vld [vmem:[%s3851_s8 + $0x8] sm:$0xff]  ;;  %v2520_v18 = vld [vmem:[%s3849_s6] ss:$0 sm:$0xff]  ;;  %v246_v20 = vld [vmem:[%s3851_s8 + $0x10] sm:$0xff]  ;;  %vm1163_vm7 = vcmask 1041409   ;;  %vm1486_vm8 = vcmask 15360  }
   0xe   :  { %2761 = vmatpush3.bf16.msra.mxu1 %v2758_v8  ;;  %2747 = vmatprep.subr.bf16.mxu0 %v2746_v11  ;;  %v2750_v17 = vpack.c.bf16 %v245_v16, %v244_v15  ;;  %v247_v21 = vld [vmem:[%s3851_s8 + $0x18] sm:$0xff]  ;;  %v59_v34 = vld [vmem:[%s3845_s2] sm:$0xff]  ;;  %v60_v40 = vld [vmem:[%s3845_s2 + $0x8] sm:$0xff] }
   0xf   :  { %2763 = vmatprep.subr.bf16.mxu1 %v2762_v14  ;;  %v2754_v25 = vpack.c.bf16 %v247_v21, %v246_v20  ;;  %v731_v59 = vld [vmem:[%s3853_s10] sm:$0xff]  ;;  %v732_v60 = vld [vmem:[%s3853_s10 + $0x8] sm:$0xff]  ;;  %v733_v4 = vld [vmem:[%s3853_s10 + $0x10] sm:$0xff] }
  0x10   :  { %2749 = vmatpush3.bf16.msra.mxu0 %v2746_v11  ;;  %v2766_v61 = vpack.c.bf16 %v732_v60, %v731_v59  ;;  %v734_v5 = vld [vmem:[%s3853_s10 + $0x18] sm:$0xff]  ;;  %v818_v7 = vld [vmem:[%s3854_s11] sm:$0xff]  ;;  %v819_v8 = vld [vmem:[%s3854_s11 + $0x8] sm:$0xff] }
  0x11   :  { %2751 = vmatprep.subr.bf16.mxu0 %v2750_v17  ;;  %v2770_v6 = vpack.c.bf16 %v734_v5, %v733_v4  ;;  %v2774_v9 = vpack.c.bf16 %v819_v8, %v818_v7  ;;  %v821_v15 = vld [vmem:[%s3854_s11 + $0x18] sm:$0xff] }
  0x12   :  { %2765 = vmatpush3.bf16.msra.mxu1 %v2762_v14  ;;  %v57_v33 = vld [vmem:[%s3866_s23] sm:$0xff]  ;;  %v58_v39 = vld [vmem:[%s3866_s23 + $0x8] sm:$0xff]  ;;  %v820_v14 = vld [vmem:[%s3854_s11 + $0x10] sm:$0xff] }
  0x13   :  { %vm558_vm4 = vcmp.gt.f32.partialorder %v57_v33, 0.0  ;;  %vm559_vm6 = vcmp.gt.f32.partialorder %v58_v39, 0.0  ;;  %2767 = vmatprep.subr.bf16.mxu1 %v2766_v61  ;;  %v2778_v16 = vpack.c.bf16 %v821_v15, %v820_v14  ;;  %v915_v21 = vld [vmem:[%s3856_s13 + $0x18] sm:$0xff]  ;;  %v921_v33 = vld [vmem:[%s3856_s13 + $0x48] sm:$0xff] }
  0x14   :  { %v925_v39 = vld [vmem:[%s3856_s13 + $0x68] sm:$0xff] }
  0xde   :  { %v2621_v19 = vpop.f32.mrb[0].mxu0 }
  0xdf   :  { %v149_v22 = vpop.f32.mrb[1].mxu0  ;;  %v3085_v24 = vadd.f32 %v2621_v19, %v2520_v18  ;;  %v914_v19 = vld [vmem:[%s3856_s13 + $0x10] sm:$0xff] }
  0xe0   :  { %v3083_v23 = vadd.f32 %v2520_v18, %v149_v22  ;;  %v913_v18 = vld [vmem:[%s3856_s13 + $0x8] sm:$0xff]  ;;  %v2786_v22 = vpack.c.bf16 %v915_v21, %v914_v19 }
  0xe2   :  { %2630 = vmatprep.mubr.msk.f32.mxu0 %vm162_vm2, %v3083_v23  ;;  %2652 = vmatprep.mubr.msk.f32.mxu1 %vm162_vm2, %v3083_v23 }
  0xe3   :  { %2631 = vmatmul.mubr.msk.f32.vlgmr.msra.gmra.mrb[2].mxu0 %vm162_vm2, %v3085_v24  ;;  %2653 = vmatmul.mubr.msk.f32.vlgmr.msra.gmra.mrb[0].mxu1 %vm162_vm2, %v3085_v24 }
  0xe4   :  { %2753 = vmatpush3.bf16.msra.mxu0 %v2750_v17  ;;  %2641 = vmatprep.mubr.msk.f32.mxu0 %vm162_vm2, %v3083_v23  ;;  %v912_v17 = vld [vmem:[%s3856_s13] sm:$0xff] }
  0xe5   :  { %2755 = vmatprep.subr.bf16.mxu0 %v2754_v25  ;;  %2769 = vmatpush3.bf16.msra.mxu1 %v2766_v61  ;;  %v2782_v20 = vpack.c.bf16 %v913_v18, %v912_v17 }
  0xe6   :  { %2771 = vmatprep.subr.bf16.mxu1 %v2770_v6 }
  0xe8   :  { %2757 = vmatpush3.bf16.msra.mxu0 %v2754_v25  ;;  %v916_v25 = vld [vmem:[%s3856_s13 + $0x20] sm:$0xff] }
  0xe9   :  { %2655 = vmatprep.subr.mxu0 %v2941_v26  ;;  %2773 = vmatpush3.bf16.msra.mxu1 %v2770_v6 }
  0xea   :  { %2783 = vmatprep.subr.bf16.mxu1 %v2782_v20 }
  0xeb   :  { %2642 = vmatmul.mubr.msk.f32.vlgmr.msra.gmra.mrb[4].mxu0 %vm162_vm2, %v3085_v24 }
  0xec   :  { %2657 = vmatprep.mubr.msk.f32.mxu0 %vm2942_vm3, %v2941_v26 }
 0x1b6   :  { %v2632_v27 = vpop.f32.mrb[2].mxu0  ;;  %v2654_v28 = vpop.f32.mrb[0].mxu1 }
 0x1b7   :  { %v235_v29 = vpop.f32.mrb[3].mxu0  ;;  %v393_v30 = vpop.f32.mrb[1].mxu1 }
 0x1be   :  { %v2643_v31 = vpop.f32.mrb[4].mxu0 }
 0x1bf   :  { %v314_v32 = vpop.f32.mrb[5].mxu0 }
 0x1c0   :  { %2656 = vmatpush3.xpose.msk.msra.mxu0 %vm162_vm2, %v314_v32  ;;  %v920_v32 = vld [vmem:[%s3856_s13 + $0x40] sm:$0xff] }
 0x1c1   :  { %2660 = vmatprep.subr.mxu0 %v2941_v26 }
 0x1c3   :  { %2658 = vmatmul.mubr.msk.f32.vlgmr.msra.gmra.mrb[6].mxu0 %vm162_vm2, %v235_v29  ;;  %v918_v29 = vld [vmem:[%s3856_s13 + $0x30] sm:$0xff] }
 0x1c4   :  { %2661 = vmatpush3.xpose.msk.msra.mxu0 %vm162_vm2, %v2643_v31  ;;  %2662 = vmatprep.mubr.msk.f32.mxu0 %vm2942_vm3, %v2941_v26 }
 0x1c5   :  { %2665 = vmatprep.subr.mxu0 %v2941_v26 }
 0x1c7   :  { %2663 = vmatmul.mubr.msk.f32.vlgmr.msra.gmra.mrb[8].mxu0 %vm162_vm2, %v2632_v27  ;;  %v917_v27 = vld [vmem:[%s3856_s13 + $0x28] sm:$0xff] }
 0x1c8   :  { %2666 = vmatpush3.msra.mxu0 %v393_v30  ;;  %2667 = vmatprep.mubr.msk.f32.mxu0 %vm2942_vm3, %v2941_v26  ;;  %v919_v30 = vld [vmem:[%s3856_s13 + $0x38] sm:$0xff] }
 0x1c9   :  { %2670 = vmatprep.subr.mxu0 %v2941_v26  ;;  %v2794_v31 = vpack.c.bf16 %v919_v30, %v918_v29 }
 0x296   :  { %v474_v35 = vpop.f32.mrb[6].mxu0 }
 0x297   :  { %v554_v36 = vmul.f32 0.17677669, %v474_v35  ;;  %v2659_v37 = vpop.f32.mrb[7].mxu0  ;;  %v922_v35 = vld [vmem:[%s3856_s13 + $0x50] sm:$0xff] }
 0x299   :  { %v556_v38 = vadd.f32 %v554_v36, %v59_v34  ;;  %v2798_v34 = vpack.c.bf16 %v921_v33, %v920_v32  ;;  %v923_v36 = vld [vmem:[%s3856_s13 + $0x58] sm:$0xff] }
 0x29a   :  { %v550_v41 = vpop.f32.mrb[8].mxu0  ;;  %v2802_v37 = vpack.c.bf16 %v923_v36, %v922_v35 }
 0x29b   :  { %v555_v42 = vmul.f32 0.17677669, %v550_v41  ;;  %v2664_v43 = vpop.f32.mrb[9].mxu0  ;;  %v560_v44 = vsel %vm558_vm4, %v556_v38, -1e+09  ;;  %v924_v38 = vld [vmem:[%s3856_s13 + $0x60] sm:$0xff] }
 0x29c   :  { %v563_v45 = vsel %vm562_vm5, %v560_v44, -inf }
 0x29d   :  { %v557_v46 = vadd.f32 %v555_v42, %v60_v40  ;;  %564 = vmax.xlane.f32.xlu0 %v563_v45  ;;  %v2806_v40 = vpack.c.bf16 %v925_v39, %v924_v38  ;;  %v926_v45 = vld [vmem:[%s3856_s13 + $0x70] sm:$0xff] }
 0x29f   :  { %v561_v47 = vsel %vm559_vm6, %v557_v46, -1e+09  ;;  %v927_v46 = vld [vmem:[%s3856_s13 + $0x78] sm:$0xff] }
 0x2a0   :  { %v566_v48 = vsel %vm562_vm5, %v561_v47, -inf }
 0x2a1   :  { %567 = vmax.xlane.f32.xlu0 %v566_v48 }
 0x32a   :  { %v565_v49 = vpop.xlane.xlu0 %564 }
 0x32b   :  { %v569_v50 = vsub.f32 %v560_v44, %v565_v49 }
 0x32d   :  { %v571_v51 = vmul.f32 1.442695, %v569_v50 }
 0x32e   :  { %v568_v52 = vpop.xlane.xlu0 %567 }
 0x32f   :  { %2834 = vpow2.f32 %v571_v51  ;;  %v570_v53 = vsub.f32 %v561_v47, %v568_v52  ;;  %v2810_v47 = vpack.c.bf16 %v927_v46, %v926_v45 }
 0x331   :  { %v573_v54 = vmul.f32 1.442695, %v570_v53 }
 0x333   :  { %2836 = vpow2.f32 %v573_v54  ;;  %v2541_v54 = vld [vmem:[%s3857_s14] ss:$0 sm:$0xff] }
 0x339   :  { %v2835_v55 = vpop.eup %2834 }
 0x33a   :  { %v575_v56 = vsel %vm562_vm5, %v2835_v55, 0.0 }
 0x33b   :  { %576 = vadd.xlane.f32.xlu1 %v575_v56 }
 0x33d   :  { %v2837_v57 = vpop.eup %2836 }
 0x33e   :  { %v578_v58 = vsel %vm562_vm5, %v2837_v57, 0.0 }
 0x33f   :  { %579 = vadd.xlane.f32.xlu1 %v578_v58 }
 0x3c8   :  { %v577_v62 = vpop.xlane.xlu1 %576 }
 0x3c9   :  { %2838 = vrcp.f32 %v577_v62 }
 0x3cc   :  { %v580_v63 = vpop.xlane.xlu1 %579 }
 0x3cd   :  { %2840 = vrcp.f32 %v580_v63 }
 0x3d3   :  { %v2839_v0 = vpop.eup %2838 }
 0x3d4   :  { %v582_v1 = vmul.f32 %v2839_v0, %v2835_v55 }
 0x3d6   :  { %2668 = vmatmul.mubr.msk.f32.vlgmr.msra.gmra.mrb[10].mxu0 %vm562_vm5, %v582_v1 }
 0x3d7   :  { %v2841_v2 = vpop.eup %2840  ;;  %2671 = vmatpush3.msra.mxu0 %v2654_v28  ;;  %2672 = vmatprep.mubr.msk.f32.mxu0 %vm2942_vm3, %v2941_v26  ;;  %v2790_v28 = vpack.c.bf16 %v917_v27, %v916_v25 }
 0x3d8   :  { %v584_v3 = vmul.f32 %v2841_v2, %v2837_v57  ;;  %2775 = vmatprep.subr.bf16.mxu0 %v2774_v9 }
 0x3da   :  { %2673 = vmatmul.mubr.msk.f32.vlgmr.msra.gmra.mrb[12].mxu0 %vm562_vm5, %v584_v3 }
 0x3db   :  { %2777 = vmatpush3.bf16.msra.mxu0 %v2774_v9 }
 0x3dc   :  { %2779 = vmatprep.subr.bf16.mxu0 %v2778_v16 }
 0x3df   :  { %2781 = vmatpush3.bf16.msra.mxu0 %v2778_v16 }
 0x3e0   :  { %2732 = vmatprep.subr.mxu0 %v2941_v26 }
 0x4a9   :  { %v654_v10 = vpop.f32.mrb[10].mxu0 }
 0x4aa   :  { %v2669_v11 = vpop.f32.mrb[11].mxu0  ;;  %2683 = vmatprep.mubr.msk.f32.mxu1 %vm162_vm2, %v654_v10 }
 0x4ad   :  { %v727_v12 = vpop.f32.mrb[12].mxu0 }
 0x4ae   :  { %v2674_v13 = vpop.f32.mrb[13].mxu0  ;;  %2684 = vmatmul.mubr.msk.f32.vlgmr.msra.gmra.mrb[2].mxu1 %vm162_vm2, %v727_v12 }
 0x4af   :  { %2785 = vmatpush3.bf16.msra.mxu1 %v2782_v20 }
 0x4b0   :  { %2787 = vmatprep.subr.bf16.mxu1 %v2786_v22 }
 0x4b3   :  { %2789 = vmatpush3.bf16.msra.mxu1 %v2786_v22 }
 0x4b4   :  { %2791 = vmatprep.subr.bf16.mxu1 %v2790_v28 }
 0x4b7   :  { %2793 = vmatpush3.bf16.msra.mxu1 %v2790_v28 }
 0x4b8   :  { %2795 = vmatprep.subr.bf16.mxu1 %v2794_v31 }
 0x4bb   :  { %2797 = vmatpush3.bf16.msra.mxu1 %v2794_v31 }
 0x4bc   :  { %2799 = vmatprep.subr.bf16.mxu1 %v2798_v34 }
 0x4bf   :  { %2801 = vmatpush3.bf16.msra.mxu1 %v2798_v34 }
 0x4c0   :  { %2803 = vmatprep.subr.bf16.mxu1 %v2802_v37 }
 0x4c3   :  { %2805 = vmatpush3.bf16.msra.mxu1 %v2802_v37 }
 0x4c4   :  { %2807 = vmatprep.subr.bf16.mxu1 %v2806_v40 }
 0x4c7   :  { %2809 = vmatpush3.bf16.msra.mxu1 %v2806_v40 }
 0x4c8   :  { %2811 = vmatprep.subr.bf16.mxu1 %v2810_v47 }
 0x4cb   :  { %2813 = vmatpush3.bf16.msra.mxu1 %v2810_v47 }
 0x581   :  { %v2685_v41 = vpop.f32.mrb[2].mxu1 }
 0x582   :  { %v807_v42 = vpop.f32.mrb[3].mxu1  ;;  %v817_v44 = vadd.f32 %v2685_v41, %v3085_v24 }
 0x583   :  { %v816_v43 = vadd.f32 %v807_v42, %v3083_v23  ;;  %v2538_v23 = vld [vmem:[%s3855_s12] ss:$0 sm:$0xff] }
 0x585   :  { %2694 = vmatprep.mubr.msk.f32.mxu0 %vm162_vm2, %v816_v43 }
 0x586   :  { %2695 = vmatmul.mubr.msk.f32.vlgmr.msra.gmra.mrb[14].mxu0 %vm162_vm2, %v817_v44 }
 0x587   :  { %2734 = vmatprep.mubr.msk.f32.mxu0 %vm2942_vm3, %v2941_v26 }
 0x659   :  { %v2696_v24 = vpop.f32.mrb[14].mxu0 }
 0x65a   :  { %v907_v48 = vadd.f32 %v2696_v24, %v2538_v23  ;;  %v901_v49 = vpop.f32.mrb[15].mxu0 }
 0x65b   :  { %v902_v50 = vadd.f32 %v2538_v23, %v901_v49 }
 0x65c   :  { %v911_v52 = vmax.f32 %v907_v48, 0.0 }
 0x65d   :  { %v910_v51 = vmax.f32 %v902_v50, 0.0 }
 0x65f   :  { %2729 = vmatprep.mubr.f32.mxu1 %v910_v51 }
 0x660   :  { %2730 = vmatmul.mubr.f32.vlgmr.msra.gmra.mrb[4].mxu1 %v911_v52 }
 0x733   :  { %v2731_v53 = vpop.f32.mrb[4].mxu1 }
 0x734   :  { %v994_v55 = vpop.f32.mrb[5].mxu1  ;;  %v1004_v57 = vadd.f32 %v2731_v53, %v817_v44 }
 0x735   :  { %v1003_v56 = vadd.f32 %v994_v55, %v816_v43 }
 0x736   :  { %v1013_v59 = vadd.f32 %v2541_v54, %v1004_v57 }
 0x737   :  { %v1012_v58 = vadd.f32 %v2541_v54, %v1003_v56 }
 0x739   :  { %2733 = vmatpush3.xpose.msk.msra.mxu0 %vm162_vm2, %v1012_v58 }
 0x73a   :  { %2737 = vmatprep.subr.mxu0 %v2941_v26 }
 0x73c   :  { %2735 = vmatmul.mubr.msk.f32.vlgmr.msra.gmra.mrb[16].mxu0 %vm162_vm2, %v1012_v58  ;;  %v1457_v58 = vlaneseq }
 0x73d   :  { %2738 = vmatpush3.xpose.msk.msra.mxu0 %vm162_vm2, %v1013_v59  ;;  %2739 = vmatprep.mubr.msk.f32.mxu0 %vm2942_vm3, %v2941_v26 }
 0x740   :  { %2740 = vmatmul.mubr.msk.f32.vlgmr.msra.gmra.mrb[18].mxu0 %vm162_vm2, %v1013_v59 }
 0x80f   :  { %v1083_v60 = vpop.f32.mrb[16].mxu0 }
 0x810   :  { %v2736_v61 = vpop.f32.mrb[17].mxu0  ;;  %v1198_v62 = vrot.slane %v1083_v60, 1  ;;  %v1305_v63 = vrot.slane %v1083_v60, 4  ;;  %v1233_v0 = vrot.slane %v1083_v60, 2  ;;  %v1377_v2 = vrot.slane %v1083_v60, 6 }
 0x811   :  { %v1269_v3 = vrot.slane %v1083_v60, 3  ;;  %v1341_v4 = vrot.slane %v1083_v60, 5  ;;  %v1413_v5 = vrot.slane %v1083_v60, 7  ;;  %v3271_v61 = vshrl.u32 %v1457_v58, 7 }
 0x813   :  { %v1156_v1 = vpop.f32.mrb[18].mxu0  ;;  %vm1545_vm11 = vcmp.eq.s32.totalorder %v3271_v61, 0  ;;  %vm1678_vm2 = vcmp.eq.s32.totalorder %v3271_v61, 1 }
 0x814   :  { %v2741_v6 = vpop.f32.mrb[19].mxu0  ;;  %v1199_v7 = vsel %vm1163_vm7, %v1156_v1, %v1198_v62  ;;  %v1162_v8 = vrot.slane %v1156_v1, 7  ;;  %v1306_v9 = vrot.slane %v1156_v1, 3  ;;  %v1234_v10 = vrot.slane %v1156_v1, 1 }
 0x815   :  { %1201 = vxpose.xlu1.b32.start.end [1/1] (short) (narrow) %v1199_v7, 8  ;;  %v1378_v11 = vrot.slane %v1156_v1, 5  ;;  %v1270_v12 = vrot.slane %v1156_v1, 2  ;;  %v1342_v13 = vrot.slane %v1156_v1, 4  ;;  %v1414_v14 = vrot.slane %v1156_v1, 6 }
 0x816   :  { %v1164_v15 = vsel %vm1163_vm7, %v1162_v8, %v1083_v60  ;;  %v1307_v16 = vsel %vm1163_vm7, %v1306_v9, %v1305_v63  ;;  %v1235_v17 = vsel %vm1163_vm7, %v1234_v10, %v1233_v0  ;;  %v3274_v0 = vcvt.s32.f32 %v3271_v61 }
 0x817   :  { %1166 = vxpose.xlu0.b32.start.end [1/1] (short) (narrow) %v1164_v15, 8  ;;  %v1379_v18 = vsel %vm1163_vm7, %v1378_v11, %v1377_v2  ;;  %v1271_v19 = vsel %vm1163_vm7, %v1270_v12, %v1269_v3  ;;  %v1343_v20 = vsel %vm1163_vm7, %v1342_v13, %v1341_v4  ;;  %v1415_v21 = vsel %vm1163_vm7, %v1414_v14, %v1413_v5  ;;  %v3291_v15 = vld [vmem:[%s3846_s3] sm:$0xff] }
 0x818   :  { %v3283_v11 = vsub.s32 0, %v3271_v61  ;;  %v3286_v12 = vsub.s32 1, %v3271_v61 }
 0x819   :  { %1309 = vxpose.xlu1.b32.start.end [1/1] (short) (narrow) %v1307_v16, 8  ;;  %v3294_v16 = vsub.s32 2, %v3271_v61 }
 0x81b   :  { %1237 = vxpose.xlu0.b32.start.end [1/1] (short) (narrow) %v1235_v17, 8  ;;  %v3297_v17 = vsub.s32 3, %v3271_v61 }
 0x81d   :  { %1381 = vxpose.xlu1.b32.start.end [1/1] (short) (narrow) %v1379_v18, 8 }
 0x81f   :  { %1273 = vxpose.xlu0.b32.start.end [1/1] (short) (narrow) %v1271_v19, 8 }
 0x823   :  { %1345 = vxpose.xlu0.b32.start.end [1/1] (short) (narrow) %v1343_v20, 8  ;;  %v3303_v20 = vsub.s32 4, %v3271_v61 }
 0x827   :  { %1417 = vxpose.xlu0.b32.start.end [1/1] (short) (narrow) %v1415_v21, 8 }
 0x895   :  { %v3237_v25 = vpop.trf.xlu1 }
 0x896   :  { %v1461_v28 = vmul.f32 0.125, %v3237_v25 }
 0x897   :  { %v3235_v22 = vpop.trf.xlu0 }
 0x898   :  { %v1460_v27 = vmul.f32 0.125, %v3235_v22  ;;  %v1449_v31 = vadd.f32 %v3237_v25, %v3235_v22 }
 0x899   :  { %v3243_v30 = vpop.trf.xlu1 }
 0x89a   :  { %v1462_v33 = vadd.f32 %v1461_v28, %v1460_v27  ;;  %v1467_v39 = vmul.f32 0.125, %v3243_v30 }
 0x89b   :  { %v3241_v29 = vpop.trf.xlu0 }
 0x89c   :  { %v1463_v32 = vmul.f32 0.125, %v3241_v29  ;;  %v1450_v34 = vadd.f32 %v1449_v31, %v3241_v29 }
 0x89d   :  { %v3254_v40 = vpop.trf.xlu1 }
 0x89e   :  { %v1464_v36 = vadd.f32 %v1463_v32, %v1462_v33  ;;  %v1471_v47 = vmul.f32 0.125, %v3254_v40  ;;  %v3315_v33 = vsub.s32 5, %v3271_v61 }
 0x89f   :  { %v3249_v35 = vpop.trf.xlu0 }
 0x8a0   :  { %v1451_v37 = vadd.f32 %v1450_v34, %v3249_v35  ;;  %v1465_v38 = vmul.f32 0.125, %v3249_v35 }
 0x8a2   :  { %v1466_v41 = vadd.f32 %v1465_v38, %v1464_v36  ;;  %v1452_v42 = vadd.f32 %v1451_v37, %v3243_v30 }
 0x8a3   :  { %v3257_v43 = vpop.trf.xlu0 }
 0x8a4   :  { %v1469_v44 = vmul.f32 0.125, %v3257_v43  ;;  %v1453_v45 = vadd.f32 %v1452_v42, %v3257_v43  ;;  %v1468_v46 = vadd.f32 %v1467_v39, %v1466_v41 }
 0x8a6   :  { %v1454_v23 = vadd.f32 %v1453_v45, %v3254_v40  ;;  %v1470_v24 = vadd.f32 %v1469_v44, %v1468_v46  ;;  %v3327_v45 = vsub.s32 6, %v3271_v61 }
 0x8a7   :  { %v3263_v48 = vpop.trf.xlu0 }
 0x8a8   :  { %v1472_v49 = vadd.f32 %v1471_v47, %v1470_v24  ;;  %v1455_v50 = vadd.f32 %v1454_v23, %v3263_v48  ;;  %v1473_v51 = vmul.f32 0.125, %v3263_v48  ;;  %v3333_v24 = vsub.s32 7, %v3271_v61 }
 0x8aa   :  { %v3267_v52 = vmul.f32 0.125, %v1455_v50  ;;  %v1474_v53 = vadd.f32 %v1473_v51, %v1472_v49 }
 0x8ac   :  { %v1475_v54 = vadd.f32 %v1474_v53, %v3267_v52 }
 0x8ae   :  { %v1476_v55 = vmul.f32 0.17677669, %v1475_v54 }
 0x8b0   :  { %v1487_v56 = vsel %vm1486_vm8, %v1476_v55, -inf }
 0x8b1   :  { %v1488_v57 = vrot.slane %v1487_v56, 4 }
 0x8b3   :  { %v1489_v59 = vmax.f32 %v1487_v56, %v1488_v57 }
 0x8b5   :  { %v1490_v60 = vrot.slane %v1489_v59, 2 }
 0x8b7   :  { %v1491_v62 = vmax.f32 %v1489_v59, %v1490_v60 }
 0x8b9   :  { %v1492_v63 = vrot.slane %v1491_v62, 1 }
 0x8bb   :  { %v3276_v1 = vmax.f32 %v1491_v62, %v1492_v63 }
 0x8bd   :  { %v1494_v2 = vsub.f32 %v1476_v55, %v3276_v1  ;;  %vm1509_vm9 = vcmp.ge.f32.partialorder %v1476_v55, %v3276_v1 }
 0x8be   :  { %v1510_v3 = vsel %vm1509_vm9, %v3274_v0, 8.0 }
 0x8bf   :  { %v1495_v4 = vmul.f32 1.442695, %v1494_v2  ;;  %v1511_v5 = vsel %vm1486_vm8, %v1510_v3, inf }
 0x8c0   :  { %v1512_v6 = vrot.slane %v1511_v5, 4 }
 0x8c1   :  { %2842 = vpow2.f32 %v1495_v4 }
 0x8c2   :  { %v1513_v7 = vmin.f32 %v1511_v5, %v1512_v6 }
 0x8c4   :  { %v1514_v8 = vrot.slane %v1513_v7, 2 }
 0x8c6   :  { %v1515_v9 = vmin.f32 %v1513_v7, %v1514_v8 }
 0x8c8   :  { %v1516_v10 = vrot.slane %v1515_v9, 1 }
 0x8ca   :  { %v1517_v13 = vmin.f32 %v1515_v9, %v1516_v10 }
 0x8cb   :  { %v2843_v14 = vpop.eup %2842 }
 0x8cc   :  { %vm1518_vm10 = vcmp.eq.f32.partialorder %v3274_v0, %v1517_v13  ;;  %v2814_v18 = vtrunc.f32 %v1517_v13  ;;  %v1497_v19 = vsel %vm1486_vm8, %v2843_v14, 0.0 }
 0x8cd   :  { %v3306_v21 = vsel %vm1518_vm10, 1.0, %v2941_v26  ;;  %v1498_v37 = vrot.slane %v1497_v19, 4  ;;  %vm1811_vm10 = vcmp.eq.s32.totalorder %v3271_v61, 2 }
 0x8ce   :  { %v1537_v27 = vmul.f32 %v3306_v21, %v3291_v15  ;;  %v2815_v28 = vcvt.f32.s32 %v2814_v18  ;;  %v1552_v31 = vrot.slane %v3306_v21, %v3283_v11  ;;  %v1557_v32 = vrot.slane %v3306_v21, %v3286_v12 }
 0x8cf   :  { %v1563_v34 = vrot.slane %v3306_v21, %v3294_v16  ;;  %v1569_v36 = vrot.slane %v3306_v21, %v3297_v17  ;;  %v1575_v23 = vrot.slane %v3306_v21, %v3303_v20  ;;  %v1581_v53 = vrot.slane %v3306_v21, %v3315_v33 }
 0x8d0   :  { %v1538_v38 = vsel %vm1486_vm8, %v1537_v27, 0.0  ;;  %v3322_v39 = vsel %vm1545_vm11, %v2815_v28, 0  ;;  %v1553_v41 = vmul.f32 %v1552_v31, %v3235_v22  ;;  %v1558_v42 = vmul.f32 %v1557_v32, %v3237_v25 }
 0x8d1   :  { %v1539_v44 = vrot.slane %v1538_v38, 4  ;;  %v1564_v47 = vmul.f32 %v1563_v34, %v3241_v29  ;;  %v1570_v51 = vmul.f32 %v1569_v36, %v3249_v35  ;;  %v1499_v54 = vadd.f32 %v1498_v37, %v1497_v19 }
 0x8d2   :  { %v1559_v46 = vadd.f32 %v1558_v42, %v1553_v41  ;;  %v1576_v57 = vmul.f32 %v1575_v23, %v3243_v30  ;;  %v1587_v58 = vrot.slane %v3306_v21, %v3327_v45  ;;  %v1582_v63 = vmul.f32 %v1581_v53, %v3257_v43 }
 0x8d3   :  { %v1540_v49 = vadd.f32 %v1539_v44, %v1538_v38  ;;  %v1500_v59 = vrot.slane %v1499_v54, 2  ;;  %v1593_v2 = vrot.slane %v3306_v21, %v3333_v24  ;;  %vm1605_vm15 = vcmp.gt.f32.partialorder %v3306_v21, 0.5 }
 0x8d4   :  { %v1565_v50 = vadd.f32 %v1564_v47, %v1559_v46  ;;  %v1588_v6 = vmul.f32 %v1587_v58, %v3254_v40 }
 0x8d5   :  { %v1541_v55 = vrot.slane %v1540_v49, 2  ;;  %v1501_v3 = vadd.f32 %v1500_v59, %v1499_v54  ;;  %v1594_v10 = vmul.f32 %v1593_v2, %v3263_v48 }
 0x8d6   :  { %v1571_v56 = vadd.f32 %v1570_v51, %v1565_v50  ;;  %v3363_v50 = vld [vmem:[%s3847_s4] sm:$0xff] }
 0x8d7   :  { %v1542_v60 = vadd.f32 %v1541_v55, %v1540_v49  ;;  %v1502_v7 = vrot.slane %v1501_v3, 1 }
 0x8d8   :  { %v1577_v62 = vadd.f32 %v1576_v57, %v1571_v56  ;;  %v3370_v56 = vld [vmem:[%s3847_s4 + $0x8] sm:$0xff]  ;;  %v1521_v57 = vmul.f32 %v3306_v21, %v3363_v50 }
 0x8d9   :  { %v1543_v4 = vrot.slane %v1542_v60, 1  ;;  %v1503_v13 = vadd.f32 %v1502_v7, %v1501_v3  ;;  %v1529_v59 = vmul.f32 %v3306_v21, %v3370_v56 }
 0x8da   :  { %v1583_v5 = vadd.f32 %v1582_v63, %v1577_v62  ;;  %v1522_v62 = vsel %vm1486_vm8, %v1521_v57, 0.0 }
 0x8db   :  { %v1544_v8 = vadd.f32 %v1543_v4, %v1542_v60  ;;  %2844 = vlog2.f32 %v1503_v13  ;;  %v1523_v2 = vrot.slane %v1522_v62, 4  ;;  %v1530_v3 = vsel %vm1486_vm8, %v1529_v59, 0.0 }
 0x8dc   :  { %v1589_v9 = vadd.f32 %v1588_v6, %v1583_v5  ;;  %v1531_v6 = vrot.slane %v1530_v3, 4 }
 0x8dd   :  { %vm1598_vm12 = vcmp.ne.f32.partialorder %v3291_v15, %v1544_v8  ;;  %vm1599_vm13 = vcmp.ge.f32.partialorder %v1544_v8, 0.0  ;;  %v1524_v8 = vadd.f32 %v1523_v2, %v1522_v62 }
 0x8de   :  { %v1595_v14 = vadd.f32 %v1594_v10, %v1589_v9  ;;  %vm1602_vm14 = vmand %vm1598_vm12, %vm1599_vm13 }
 0x8df   :  { %v1603_v27 = vsel %vm1602_vm14, 2.0, %v2941_v26 }
 0x8e0   :  { %v1596_v18 = vadd.f32 %v1595_v14, %v3267_v52 }
 0x8e2   :  { %v1597_v19 = vmul.f32 0.17677669, %v1596_v18 }
 0x8e4   :  { %v1604_v28 = vsub.f32 %v1597_v19, %v1603_v27  ;;  %v1532_v27 = vadd.f32 %v1531_v6, %v1530_v3 }
 0x8e5   :  { %v2845_v34 = vpop.eup %2844 }
 0x8e6   :  { %v1606_v31 = vsel %vm1605_vm15, -1e+09, %v1604_v28  ;;  %v1505_v37 = vmul.f32 0.6931472, %v2845_v34 }
 0x8e7   :  { %v1607_v32 = vsel %vm1486_vm8, %v1606_v31, -inf }
 0x8e8   :  { %v1608_v36 = vrot.slane %v1607_v32, 4  ;;  %v3352_v41 = vadd.f32 %v1505_v37, %v3276_v1 }
 0x8ea   :  { %v1609_v38 = vmax.f32 %v1607_v32, %v1608_v36  ;;  %v1507_v44 = vsub.f32 %v3276_v1, %v3352_v41  ;;  %v1525_v32 = vrot.slane %v1524_v8, 2 }
 0x8ec   :  { %v1610_v42 = vrot.slane %v1609_v38, 2 }
 0x8ee   :  { %v1611_v46 = vmax.f32 %v1609_v38, %v1610_v42 }
 0x8f0   :  { %v1612_v47 = vrot.slane %v1611_v46, 1 }
 0x8f2   :  { %v3356_v23 = vmax.f32 %v1611_v46, %v1612_v47 }
 0x8f4   :  { %v1614_v49 = vsub.f32 %v1606_v31, %v3356_v23  ;;  %vm1629_vm0 = vcmp.ge.f32.partialorder %v1606_v31, %v3356_v23 }
 0x8f5   :  { %v1630_v51 = vsel %vm1629_vm0, %v3274_v0, 8.0 }
 0x8f6   :  { %v1615_v53 = vmul.f32 1.442695, %v1614_v49  ;;  %v1631_v54 = vsel %vm1486_vm8, %v1630_v51, inf  ;;  %v1533_v51 = vrot.slane %v1532_v27, 2 }
 0x8f7   :  { %v1632_v55 = vrot.slane %v1631_v54, 4 }
 0x8f8   :  { %2846 = vpow2.f32 %v1615_v53 }
 0x8f9   :  { %v1633_v58 = vmin.f32 %v1631_v54, %v1632_v55 }
 0x8fb   :  { %v1634_v60 = vrot.slane %v1633_v58, 2 }
 0x8fd   :  { %v1635_v63 = vmin.f32 %v1633_v58, %v1634_v60  ;;  %v1526_v58 = vadd.f32 %v1525_v32, %v1524_v8 }
 0x8ff   :  { %v1636_v4 = vrot.slane %v1635_v63, 1 }
 0x901   :  { %v1637_v5 = vmin.f32 %v1635_v63, %v1636_v4 }
 0x902   :  { %v2847_v7 = vpop.eup %2846 }
 0x903   :  { %vm1638_vm1 = vcmp.eq.f32.partialorder %v3274_v0, %v1637_v5  ;;  %v2816_v9 = vtrunc.f32 %v1637_v5  ;;  %v1617_v13 = vsel %vm1486_vm8, %v2847_v7, 0.0 }
 0x904   :  { %v3381_v10 = vsel %vm1638_vm1, 1.0, %v2941_v26  ;;  %v1618_v38 = vrot.slane %v1617_v13, 4 }
 0x905   :  { %v1657_v14 = vmul.f32 %v3381_v10, %v3291_v15  ;;  %v2817_v18 = vcvt.f32.s32 %v2816_v9  ;;  %v1685_v19 = vrot.slane %v3381_v10, %v3283_v11  ;;  %v1690_v28 = vrot.slane %v3381_v10, %v3286_v12 }
 0x906   :  { %v1696_v31 = vrot.slane %v3381_v10, %v3294_v16  ;;  %v1702_v47 = vrot.slane %v3381_v10, %v3297_v17  ;;  %v1708_v49 = vrot.slane %v3381_v10, %v3303_v20  ;;  %v1714_v57 = vrot.slane %v3381_v10, %v3315_v33 }
 0x907   :  { %v1658_v34 = vsel %vm1486_vm8, %v1657_v14, 0.0  ;;  %v3394_v36 = vsel %vm1678_vm2, %v2817_v18, %v3322_v39  ;;  %v1686_v37 = vmul.f32 %v1685_v19, %v3235_v22  ;;  %v1691_v46 = vmul.f32 %v1690_v28, %v3237_v25 }
 0x908   :  { %v1659_v42 = vrot.slane %v1658_v34, 4  ;;  %v1697_v55 = vmul.f32 %v1696_v31, %v3241_v29  ;;  %v1641_v39 = vmul.f32 %v3381_v10, %v3363_v50  ;;  %v1649_v59 = vmul.f32 %v3381_v10, %v3370_v56 }
 0x909   :  { %v1692_v54 = vadd.f32 %v1691_v46, %v1686_v37  ;;  %v1619_v60 = vadd.f32 %v1618_v38, %v1617_v13  ;;  %v1703_v2 = vmul.f32 %v1702_v47, %v3249_v35  ;;  %v1709_v4 = vmul.f32 %v1708_v49, %v3243_v30 }
 0x90a   :  { %v1660_v53 = vadd.f32 %v1659_v42, %v1658_v34  ;;  %v1642_v3 = vsel %vm1486_vm8, %v1641_v39, 0.0  ;;  %v1650_v6 = vsel %vm1486_vm8, %v1649_v59, 0.0  ;;  %v1720_v8 = vrot.slane %v3381_v10, %v3327_v45 }
 0x90b   :  { %v1698_v63 = vadd.f32 %v1697_v55, %v1692_v54  ;;  %v1643_v5 = vrot.slane %v1642_v3, 4  ;;  %v1620_v7 = vrot.slane %v1619_v60, 2  ;;  %v1651_v18 = vrot.slane %v1650_v6, 4 }
 0x90c   :  { %v1661_v62 = vrot.slane %v1660_v53, 2  ;;  %v1715_v13 = vmul.f32 %v1714_v57, %v3257_v43  ;;  %v1534_v19 = vadd.f32 %v1533_v51, %v1532_v27  ;;  %v1726_v37 = vrot.slane %v3381_v10, %v3333_v24 }
 0x90d   :  { %v1704_v14 = vadd.f32 %v1703_v2, %v1698_v63  ;;  %v1644_v28 = vadd.f32 %v1643_v5, %v1642_v3  ;;  %v1621_v31 = vadd.f32 %v1620_v7, %v1619_v60  ;;  %v1652_v38 = vadd.f32 %v1651_v18, %v1650_v6 }
 0x90e   :  { %v1662_v9 = vadd.f32 %v1661_v62, %v1660_v53  ;;  %v1721_v53 = vmul.f32 %v1720_v8, %v3254_v40  ;;  %v1527_v55 = vrot.slane %v1526_v58, 1  ;;  %v1727_v27 = vmul.f32 %v1726_v37, %v3263_v48 }
 0x90f   :  { %v1710_v34 = vadd.f32 %v1709_v4, %v1704_v14  ;;  %v1645_v42 = vrot.slane %v1644_v28, 2  ;;  %v1622_v46 = vrot.slane %v1621_v31, 1  ;;  %v1653_v54 = vrot.slane %v1652_v38, 2 }
 0x910   :  { %v1663_v32 = vrot.slane %v1662_v9, 1  ;;  %v1535_v51 = vrot.slane %v1534_v19, 1  ;;  %v3421_v3 = vadd.f32 %v1527_v55, %v1526_v58 }
 0x911   :  { %v1716_v49 = vadd.f32 %v1715_v13, %v1710_v34  ;;  %v1646_v39 = vadd.f32 %v1645_v42, %v1644_v28  ;;  %v1623_v59 = vadd.f32 %v1622_v46, %v1621_v31  ;;  %v1654_v60 = vadd.f32 %v1653_v54, %v1652_v38 }
 0x912   :  { %v1664_v47 = vadd.f32 %v1663_v32, %v1662_v9  ;;  %v3426_v6 = vadd.f32 %v1535_v51, %v1534_v19  ;;  %v3432_v9 = vadd.f32 %v3381_v10, %v3306_v21 }
 0x913   :  { %v1722_v57 = vadd.f32 %v1721_v53, %v1716_v49  ;;  %v1647_v62 = vrot.slane %v1646_v39, 1  ;;  %2848 = vlog2.f32 %v1623_v59  ;;  %v1655_v2 = vrot.slane %v1654_v60, 1 }
 0x914   :  { %vm1731_vm3 = vcmp.ne.f32.partialorder %v3291_v15, %v1664_v47  ;;  %vm1732_vm4 = vcmp.ge.f32.partialorder %v1664_v47, 0.0  ;;  %vm1738_vm6 = vcmp.gt.f32.partialorder %v3432_v9, 0.5 }
 0x915   :  { %v1728_v63 = vadd.f32 %v1727_v27, %v1722_v57  ;;  %v3423_v4 = vadd.f32 %v1647_v62, %v1646_v39  ;;  %vm1735_vm5 = vmand %vm1731_vm3, %vm1732_vm4  ;;  %v3428_v7 = vadd.f32 %v1655_v2, %v1654_v60 }
 0x916   :  { %v1736_v18 = vsel %vm1735_vm5, 2.0, %v2941_v26  ;;  %vm1944_vm5 = vcmp.eq.s32.totalorder %v3271_v61, 3 }
 0x917   :  { %v1729_v5 = vadd.f32 %v1728_v63, %v3267_v52  ;;  %v1665_v14 = vsub.f32 %v3423_v4, %v3421_v3  ;;  %v1667_v58 = vsub.f32 %v3428_v7, %v3426_v6 }
 0x919   :  { %v1730_v8 = vmul.f32 0.17677669, %v1729_v5  ;;  %v1666_v13 = vmul.f32 %v1665_v14, %v1665_v14  ;;  %v1668_v31 = vmul.f32 %v1667_v58, %v1667_v58 }
 0x91b   :  { %v1737_v28 = vsub.f32 %v1730_v8, %v1736_v18  ;;  %v3440_v32 = vadd.f32 %v1668_v31, %v1666_v13 }
 0x91d   :  { %v1739_v19 = vsel %vm1738_vm6, -1e+09, %v1737_v28  ;;  %v2849_v34 = vpop.eup %2848  ;;  %vm1672_vm15 = vcmp.eq.f32.partialorder %v3440_v32, inf  ;;  %vm1674_vm2 = vcmp.eq.f32.partialorder %v3440_v32, 0.0 }
 0x91e   :  { %v1740_v21 = vsel %vm1486_vm8, %v1739_v19, -inf  ;;  %v1625_v37 = vmul.f32 0.6931472, %v2849_v34 }
 0x91f   :  { %v1741_v10 = vrot.slane %v1740_v21, 4 }
 0x920   :  { %v1626_v42 = vadd.f32 %v1625_v37, %v3356_v23 }
 0x921   :  { %v1742_v38 = vmax.f32 %v1740_v21, %v1741_v10 }
 0x922   :  { %v1627_v47 = vsub.f32 %v3356_v23, %v1626_v42 }
 0x923   :  { %v1743_v46 = vrot.slane %v1742_v38, 2 }
 0x924   :  { %v3448_v53 = vadd.f32 %v1627_v47, %v1507_v44 }
 0x925   :  { %v1744_v49 = vmax.f32 %v1742_v38, %v1743_v46 }
 0x927   :  { %v1745_v54 = vrot.slane %v1744_v49, 1 }
 0x929   :  { %v3450_v55 = vmax.f32 %v1744_v49, %v1745_v54 }
 0x92b   :  { %v1747_v39 = vsub.f32 %v1739_v19, %v3450_v55  ;;  %vm1762_vm7 = vcmp.ge.f32.partialorder %v1739_v19, %v3450_v55 }
 0x92c   :  { %v1763_v59 = vsel %vm1762_vm7, %v3274_v0, 8.0 }
 0x92d   :  { %v1748_v57 = vmul.f32 1.442695, %v1747_v39  ;;  %v1764_v27 = vsel %vm1486_vm8, %v1763_v59, inf }
 0x92e   :  { %v1765_v51 = vrot.slane %v1764_v27, 4 }
 0x92f   :  { %2850 = vpow2.f32 %v1748_v57 }
 0x930   :  { %v1766_v23 = vmin.f32 %v1764_v27, %v1765_v51 }
 0x932   :  { %v1767_v60 = vrot.slane %v1766_v23, 2 }
 0x934   :  { %v1768_v62 = vmin.f32 %v1766_v23, %v1767_v60 }
 0x936   :  { %v1769_v1 = vrot.slane %v1768_v62, 1 }
 0x938   :  { %v1770_v41 = vmin.f32 %v1768_v62, %v1769_v1 }
 0x939   :  { %v2851_v44 = vpop.eup %2850 }
 0x93a   :  { %vm1771_vm9 = vcmp.eq.f32.partialorder %v3274_v0, %v1770_v41  ;;  %v2818_v63 = vtrunc.f32 %v1770_v41  ;;  %v1750_v5 = vsel %vm1486_vm8, %v2851_v44, 0.0 }
 0x93b   :  { %v2548_v2 = vsel %vm1771_vm9, 1.0, %v2941_v26  ;;  %v1751_v34 = vrot.slane %v1750_v5, 4 }
 0x93c   :  { %v1790_v14 = vmul.f32 %v2548_v2, %v3291_v15  ;;  %v2819_v8 = vcvt.f32.s32 %v2818_v63  ;;  %v1818_v58 = vrot.slane %v2548_v2, %v3283_v11  ;;  %v1823_v18 = vrot.slane %v2548_v2, %v3286_v12 }
 0x93d   :  { %v1829_v13 = vrot.slane %v2548_v2, %v3294_v16  ;;  %v1835_v37 = vrot.slane %v2548_v2, %v3297_v17  ;;  %v1841_v38 = vrot.slane %v2548_v2, %v3303_v20  ;;  %v1774_v49 = vmul.f32 %v2548_v2, %v3363_v50 }
 0x93e   :  { %v1791_v28 = vsel %vm1486_vm8, %v1790_v14, 0.0  ;;  %v3466_v31 = vsel %vm1811_vm10, %v2819_v8, %v3394_v36  ;;  %v1819_v19 = vmul.f32 %v1818_v58, %v3235_v22  ;;  %v1824_v10 = vmul.f32 %v1823_v18, %v3237_v25 }
 0x93f   :  { %v1792_v21 = vrot.slane %v1791_v28, 4  ;;  %v1830_v47 = vmul.f32 %v1829_v13, %v3241_v29  ;;  %v1847_v54 = vrot.slane %v2548_v2, %v3315_v33  ;;  %v1782_v36 = vmul.f32 %v2548_v2, %v3370_v56 }
 0x940   :  { %v1825_v46 = vadd.f32 %v1824_v10, %v1819_v19  ;;  %v1752_v39 = vadd.f32 %v1751_v34, %v1750_v5  ;;  %v1836_v27 = vmul.f32 %v1835_v37, %v3249_v35  ;;  %v1775_v51 = vsel %vm1486_vm8, %v1774_v49, 0.0 }
 0x941   :  { %v1793_v42 = vadd.f32 %v1792_v21, %v1791_v28  ;;  %v1842_v23 = vmul.f32 %v1841_v38, %v3243_v30  ;;  %v1776_v60 = vrot.slane %v1775_v51, 4  ;;  %v1783_v62 = vsel %vm1486_vm8, %v1782_v36, 0.0 }
 0x942   :  { %v1831_v57 = vadd.f32 %v1830_v47, %v1825_v46  ;;  %v1753_v1 = vrot.slane %v1752_v39, 2  ;;  %v1853_v63 = vrot.slane %v2548_v2, %v3327_v45  ;;  %v1784_v14 = vrot.slane %v1783_v62, 4 }
 0x943   :  { %v1794_v59 = vrot.slane %v1793_v42, 2  ;;  %v1848_v8 = vmul.f32 %v1847_v54, %v3257_v43  ;;  %v1777_v5 = vadd.f32 %v1776_v60, %v1775_v51  ;;  %v1859_v28 = vrot.slane %v2548_v2, %v3333_v24 }
 0x944   :  { %v1837_v44 = vadd.f32 %v1836_v27, %v1831_v57  ;;  %v1754_v58 = vadd.f32 %v1753_v1, %v1752_v39  ;;  %v1785_v19 = vadd.f32 %v1784_v14, %v1783_v62  ;;  %v1854_v38 = vmul.f32 %v1853_v63, %v3254_v40 }
 0x945   :  { %v1795_v41 = vadd.f32 %v1794_v59, %v1793_v42  ;;  %v1778_v34 = vrot.slane %v1777_v5, 2  ;;  %v1860_v36 = vmul.f32 %v1859_v28, %v3263_v48  ;;  %v3492_v60 = vadd.f32 %v2548_v2, %v3432_v9 }
 0x946   :  { %v1843_v13 = vadd.f32 %v1842_v23, %v1837_v44  ;;  %v1755_v21 = vrot.slane %v1754_v58, 1  ;;  %v1786_v42 = vrot.slane %v1785_v19, 2 }
 0x947   :  { %v1796_v18 = vrot.slane %v1795_v41, 1  ;;  %v1779_v46 = vadd.f32 %v1778_v34, %v1777_v5  ;;  %vm1871_vm14 = vcmp.gt.f32.partialorder %v3492_v60, 0.5 }
 0x948   :  { %v1849_v37 = vadd.f32 %v1848_v8, %v1843_v13  ;;  %v1756_v47 = vadd.f32 %v1755_v21, %v1754_v58  ;;  %v1787_v54 = vadd.f32 %v1786_v42, %v1785_v19 }
 0x949   :  { %v1797_v10 = vadd.f32 %v1796_v18, %v1795_v41  ;;  %v1780_v39 = vrot.slane %v1779_v46, 1 }
 0x94a   :  { %v1855_v49 = vadd.f32 %v1854_v38, %v1849_v37  ;;  %2852 = vlog2.f32 %v1756_v47  ;;  %v1788_v57 = vrot.slane %v1787_v54, 1 }
 0x94b   :  { %vm1864_vm11 = vcmp.ne.f32.partialorder %v3291_v15, %v1797_v10  ;;  %vm1865_vm12 = vcmp.ge.f32.partialorder %v1797_v10, 0.0  ;;  %v3486_v27 = vadd.f32 %v1780_v39, %v1779_v46  ;;  %2854 = vrsqrt.f32 %v3440_v32 }
 0x94c   :  { %v1861_v59 = vadd.f32 %v1860_v36, %v1855_v49  ;;  %vm1868_vm13 = vmand %vm1864_vm11, %vm1865_vm12  ;;  %v3489_v23 = vadd.f32 %v1788_v57, %v1787_v54  ;;  %v1675_v49 = vand.u32 2147483648, %v3440_v32 }
 0x94d   :  { %v1798_v62 = vsub.f32 %v3486_v27, %v3423_v4  ;;  %v1869_v44 = vsel %vm1868_vm13, 2.0, %v2941_v26 }
 0x94e   :  { %v1862_v51 = vadd.f32 %v1861_v59, %v3267_v52  ;;  %v1800_v41 = vsub.f32 %v3489_v23, %v3428_v7 }
 0x94f   :  { %v1799_v63 = vmul.f32 %v1798_v62, %v1798_v62 }
 0x950   :  { %v1863_v1 = vmul.f32 0.17677669, %v1862_v51  ;;  %v1801_v8 = vmul.f32 %v1800_v41, %v1800_v41 }
 0x952   :  { %v1870_v14 = vsub.f32 %v1863_v1, %v1869_v44  ;;  %v1802_v58 = vadd.f32 %v1801_v8, %v1799_v63 }
 0x954   :  { %v1872_v5 = vsel %vm1871_vm14, -1e+09, %v1870_v14  ;;  %v2853_v9 = vpop.eup %2852  ;;  %2856 = vrsqrt.f32 %v1802_v58  ;;  %vm1805_vm1 = vcmp.eq.f32.partialorder %v1802_v58, inf  ;;  %vm1807_vm3 = vcmp.eq.f32.partialorder %v1802_v58, 0.0 }
 0x955   :  { %v1873_v2 = vsel %vm1486_vm8, %v1872_v5, -inf  ;;  %v1758_v4 = vmul.f32 0.6931472, %v2853_v9  ;;  %v2855_v19 = vpop.eup %2854 }
 0x956   :  { %v1874_v18 = vrot.slane %v1873_v2, 4  ;;  %v1671_v10 = vmul.f32 %v2855_v19, %v3440_v32 }
 0x957   :  { %v1759_v28 = vadd.f32 %v1758_v4, %v3450_v55 }
 0x958   :  { %v1875_v13 = vmax.f32 %v1873_v2, %v1874_v18  ;;  %v1673_v47 = vsel %vm1672_vm15, %v3440_v32, %v1671_v10  ;;  %vm2077_vm15 = vcmp.eq.s32.totalorder %v3271_v61, 4 }
 0x959   :  { %v1760_v34 = vsub.f32 %v3450_v55, %v1759_v28  ;;  %v1808_v55 = vand.u32 2147483648, %v1802_v58  ;;  %v1676_v51 = vsel %vm1674_vm2, %v1675_v49, %v1673_v47 }
 0x95a   :  { %v1876_v7 = vrot.slane %v1875_v13, 2 }
 0x95b   :  { %v3506_v37 = vadd.f32 %v1760_v34, %v3448_v53 }
 0x95c   :  { %v1877_v21 = vmax.f32 %v1875_v13, %v1876_v7 }
 0x95e   :  { %v1878_v38 = vrot.slane %v1877_v21, 1  ;;  %v2857_v42 = vpop.eup %2856 }
 0x95f   :  { %v1804_v36 = vmul.f32 %v2857_v42, %v1802_v58 }
 0x960   :  { %v3508_v46 = vmax.f32 %v1877_v21, %v1878_v38 }
 0x961   :  { %v1806_v39 = vsel %vm1805_vm1, %v1802_v58, %v1804_v36 }
 0x962   :  { %v1880_v54 = vsub.f32 %v1872_v5, %v3508_v46  ;;  %vm1895_vm0 = vcmp.ge.f32.partialorder %v1872_v5, %v3508_v46  ;;  %v1809_v62 = vsel %vm1807_vm3, %v1808_v55, %v1806_v39 }
 0x963   :  { %v1896_v53 = vsel %vm1895_vm0, %v3274_v0, 8.0  ;;  %v3518_v41 = vadd.f32 %v1809_v62, %v1676_v51 }
 0x964   :  { %v1881_v59 = vmul.f32 1.442695, %v1880_v54  ;;  %v1897_v57 = vsel %vm1486_vm8, %v1896_v53, inf }
 0x965   :  { %v1898_v1 = vrot.slane %v1897_v57, 4 }
 0x966   :  { %2858 = vpow2.f32 %v1881_v59 }
 0x967   :  { %v1899_v44 = vmin.f32 %v1897_v57, %v1898_v1 }
 0x969   :  { %v1900_v63 = vrot.slane %v1899_v44, 2 }
 0x96b   :  { %v1901_v14 = vmin.f32 %v1899_v44, %v1900_v63 }
 0x96d   :  { %v1902_v8 = vrot.slane %v1901_v14, 1 }
 0x96f   :  { %v1903_v5 = vmin.f32 %v1901_v14, %v1902_v8 }
 0x970   :  { %v2859_v9 = vpop.eup %2858 }
 0x971   :  { %vm1904_vm4 = vcmp.eq.f32.partialorder %v3274_v0, %v1903_v5  ;;  %v2820_v32 = vtrunc.f32 %v1903_v5  ;;  %v1883_v2 = vsel %vm1486_vm8, %v2859_v9, 0.0 }
 0x972   :  { %v2549_v58 = vsel %vm1904_vm4, 1.0, %v2941_v26  ;;  %v1884_v10 = vrot.slane %v1883_v2, 4 }
 0x973   :  { %v1923_v18 = vmul.f32 %v2549_v58, %v3291_v15  ;;  %v2821_v4 = vcvt.f32.s32 %v2820_v32  ;;  %v1951_v13 = vrot.slane %v2549_v58, %v3283_v11  ;;  %v1956_v28 = vrot.slane %v2549_v58, %v3286_v12 }
 0x974   :  { %v1962_v19 = vrot.slane %v2549_v58, %v3294_v16  ;;  %v1968_v47 = vrot.slane %v2549_v58, %v3297_v17  ;;  %v1974_v49 = vrot.slane %v2549_v58, %v3303_v20  ;;  %v1907_v53 = vmul.f32 %v2549_v58, %v3363_v50 }
 0x975   :  { %v1924_v7 = vsel %vm1486_vm8, %v1923_v18, 0.0  ;;  %v3530_v34 = vsel %vm1944_vm5, %v2821_v4, %v3466_v31  ;;  %v1952_v21 = vmul.f32 %v1951_v13, %v3235_v22  ;;  %v1957_v42 = vmul.f32 %v1956_v28, %v3237_v25 }
 0x976   :  { %v1925_v38 = vrot.slane %v1924_v7, 4  ;;  %v1963_v55 = vmul.f32 %v1962_v19, %v3241_v29  ;;  %v1980_v39 = vrot.slane %v2549_v58, %v3315_v33  ;;  %v1915_v31 = vmul.f32 %v2549_v58, %v3370_v56 }
 0x977   :  { %v1958_v54 = vadd.f32 %v1957_v42, %v1952_v21  ;;  %v1885_v59 = vadd.f32 %v1884_v10, %v1883_v2  ;;  %v1969_v62 = vmul.f32 %v1968_v47, %v3249_v35  ;;  %v1908_v1 = vsel %vm1486_vm8, %v1907_v53, 0.0 }
 0x978   :  { %v1926_v36 = vadd.f32 %v1925_v38, %v1924_v7  ;;  %v1975_v44 = vmul.f32 %v1974_v49, %v3243_v30  ;;  %v1909_v63 = vrot.slane %v1908_v1, 4  ;;  %v1916_v14 = vsel %vm1486_vm8, %v1915_v31, 0.0 }
 0x979   :  { %v1964_v51 = vadd.f32 %v1963_v55, %v1958_v54  ;;  %v1886_v8 = vrot.slane %v1885_v59, 2  ;;  %v1986_v32 = vrot.slane %v2549_v58, %v3327_v45  ;;  %v1917_v18 = vrot.slane %v1916_v14, 4 }
 0x97a   :  { %v1927_v57 = vrot.slane %v1926_v36, 2  ;;  %v1981_v4 = vmul.f32 %v1980_v39, %v3257_v43  ;;  %v1910_v2 = vadd.f32 %v1909_v63, %v1908_v1  ;;  %v1992_v7 = vrot.slane %v2549_v58, %v3333_v24 }
 0x97b   :  { %v1970_v9 = vadd.f32 %v1969_v62, %v1964_v51  ;;  %v1887_v13 = vadd.f32 %v1886_v8, %v1885_v59  ;;  %v1918_v21 = vadd.f32 %v1917_v18, %v1916_v14  ;;  %v1987_v49 = vmul.f32 %v1986_v32, %v3254_v40 }
 0x97c   :  { %v1928_v5 = vadd.f32 %v1927_v57, %v1926_v36  ;;  %v1911_v10 = vrot.slane %v1910_v2, 2  ;;  %v1993_v31 = vmul.f32 %v1992_v7, %v3263_v48  ;;  %v3556_v63 = vadd.f32 %v2549_v58, %v3492_v60 }
 0x97d   :  { %v1976_v19 = vadd.f32 %v1975_v44, %v1970_v9  ;;  %v1888_v38 = vrot.slane %v1887_v13, 1  ;;  %v1919_v36 = vrot.slane %v1918_v21, 2 }
 0x97e   :  { %v1929_v28 = vrot.slane %v1928_v5, 1  ;;  %v1912_v54 = vadd.f32 %v1911_v10, %v1910_v2  ;;  %vm2004_vm10 = vcmp.gt.f32.partialorder %v3556_v63, 0.5 }
 0x97f   :  { %v1982_v47 = vadd.f32 %v1981_v4, %v1976_v19  ;;  %v1889_v55 = vadd.f32 %v1888_v38, %v1887_v13  ;;  %v1920_v39 = vadd.f32 %v1919_v36, %v1918_v21 }
 0x980   :  { %v1930_v42 = vadd.f32 %v1929_v28, %v1928_v5  ;;  %v1913_v59 = vrot.slane %v1912_v54, 1 }
 0x981   :  { %v1988_v53 = vadd.f32 %v1987_v49, %v1982_v47  ;;  %2860 = vlog2.f32 %v1889_v55  ;;  %v1921_v51 = vrot.slane %v1920_v39, 1 }
 0x982   :  { %vm1997_vm6 = vcmp.ne.f32.partialorder %v3291_v15, %v1930_v42  ;;  %vm1998_vm7 = vcmp.ge.f32.partialorder %v1930_v42, 0.0  ;;  %v3550_v62 = vadd.f32 %v1913_v59, %v1912_v54 }
 0x983   :  { %v1994_v57 = vadd.f32 %v1993_v31, %v1988_v53  ;;  %vm2001_vm9 = vmand %vm1997_vm6, %vm1998_vm7  ;;  %v3553_v44 = vadd.f32 %v1921_v51, %v1920_v39 }
 0x984   :  { %v1931_v14 = vsub.f32 %v3550_v62, %v3486_v27  ;;  %v2002_v9 = vsel %vm2001_vm9, 2.0, %v2941_v26  ;;  %vm2210_vm9 = vcmp.eq.s32.totalorder %v3271_v61, 5 }
 0x985   :  { %v1995_v1 = vadd.f32 %v1994_v57, %v3267_v52  ;;  %v1933_v5 = vsub.f32 %v3553_v44, %v3489_v23 }
 0x986   :  { %v1932_v32 = vmul.f32 %v1931_v14, %v1931_v14 }
 0x987   :  { %v1996_v8 = vmul.f32 0.17677669, %v1995_v1  ;;  %v1934_v4 = vmul.f32 %v1933_v5, %v1933_v5 }
 0x989   :  { %v2003_v18 = vsub.f32 %v1996_v8, %v2002_v9  ;;  %v1935_v13 = vadd.f32 %v1934_v4, %v1932_v32 }
 0x98b   :  { %v2005_v2 = vsel %vm2004_vm10, -1e+09, %v2003_v18  ;;  %v2861_v28 = vpop.eup %2860  ;;  %2862 = vrsqrt.f32 %v1935_v13  ;;  %vm1938_vm12 = vcmp.eq.f32.partialorder %v1935_v13, inf  ;;  %v1941_v55 = vand.u32 2147483648, %v1935_v13 }
 0x98c   :  { %v2006_v60 = vsel %vm1486_vm8, %v2005_v2, -inf  ;;  %v1891_v19 = vmul.f32 0.6931472, %v2861_v28  ;;  %vm1940_vm13 = vcmp.eq.f32.partialorder %v1935_v13, 0.0 }
 0x98d   :  { %v2007_v58 = vrot.slane %v2006_v60, 4 }
 0x98e   :  { %v1892_v7 = vadd.f32 %v1891_v19, %v3508_v46 }
 0x98f   :  { %v2008_v27 = vmax.f32 %v2006_v60, %v2007_v58 }
 0x990   :  { %v1893_v23 = vsub.f32 %v3508_v46, %v1892_v7 }
 0x991   :  { %v2009_v21 = vrot.slane %v2008_v27, 2 }
 0x992   :  { %v3568_v38 = vadd.f32 %v1893_v23, %v3506_v37 }
 0x993   :  { %v2010_v10 = vmax.f32 %v2008_v27, %v2009_v21 }
 0x995   :  { %v2011_v42 = vrot.slane %v2010_v10, 1  ;;  %v2863_v47 = vpop.eup %2862 }
 0x996   :  { %v1937_v36 = vmul.f32 %v2863_v47, %v1935_v13 }
 0x997   :  { %v3570_v49 = vmax.f32 %v2010_v10, %v2011_v42 }
 0x998   :  { %v1939_v31 = vsel %vm1938_vm12, %v1935_v13, %v1937_v36 }
 0x999   :  { %v2013_v54 = vsub.f32 %v2005_v2, %v3570_v49  ;;  %vm2028_vm11 = vcmp.ge.f32.partialorder %v2005_v2, %v3570_v49  ;;  %v1942_v37 = vsel %vm1940_vm13, %v1941_v55, %v1939_v31 }
 0x99a   :  { %v2029_v53 = vsel %vm2028_vm11, %v3274_v0, 8.0  ;;  %v3577_v57 = vadd.f32 %v1942_v37, %v3518_v41 }
 0x99b   :  { %v2014_v46 = vmul.f32 1.442695, %v2013_v54  ;;  %v2030_v39 = vsel %vm1486_vm8, %v2029_v53, inf }
 0x99c   :  { %v2031_v59 = vrot.slane %v2030_v39, 4 }
 0x99d   :  { %2864 = vpow2.f32 %v2014_v46 }
 0x99e   :  { %v2032_v51 = vmin.f32 %v2030_v39, %v2031_v59 }
 0x9a0   :  { %v2033_v1 = vrot.slane %v2032_v51, 2 }
 0x9a2   :  { %v2034_v14 = vmin.f32 %v2032_v51, %v2033_v1 }
 0x9a4   :  { %v2035_v8 = vrot.slane %v2034_v14, 1 }
 0x9a6   :  { %v2036_v5 = vmin.f32 %v2034_v14, %v2035_v8 }
 0x9a7   :  { %v2865_v9 = vpop.eup %2864 }
 0x9a8   :  { %vm2037_vm14 = vcmp.eq.f32.partialorder %v3274_v0, %v2036_v5  ;;  %v2822_v32 = vtrunc.f32 %v2036_v5  ;;  %v2016_v4 = vsel %vm1486_vm8, %v2865_v9, 0.0 }
 0x9a9   :  { %v2550_v18 = vsel %vm2037_vm14, 1.0, %v2941_v26  ;;  %v2017_v7 = vrot.slane %v2016_v4, 4 }
 0x9aa   :  { %v2056_v2 = vmul.f32 %v2550_v18, %v3291_v15  ;;  %v2823_v41 = vcvt.f32.s32 %v2822_v32  ;;  %v2084_v13 = vrot.slane %v2550_v18, %v3283_v11  ;;  %v2089_v28 = vrot.slane %v2550_v18, %v3286_v12 }
 0x9ab   :  { %v2095_v60 = vrot.slane %v2550_v18, %v3294_v16  ;;  %v2101_v10 = vrot.slane %v2550_v18, %v3297_v17  ;;  %v2107_v42 = vrot.slane %v2550_v18, %v3303_v20  ;;  %v2040_v55 = vmul.f32 %v2550_v18, %v3363_v50 }
 0x9ac   :  { %v2057_v58 = vsel %vm1486_vm8, %v2056_v2, 0.0  ;;  %v3589_v19 = vsel %vm2077_vm15, %v2823_v41, %v3530_v34  ;;  %v2085_v27 = vmul.f32 %v2084_v13, %v3235_v22  ;;  %v2090_v23 = vmul.f32 %v2089_v28, %v3237_v25 }
 0x9ad   :  { %v2058_v21 = vrot.slane %v2057_v58, 4  ;;  %v2096_v54 = vmul.f32 %v2095_v60, %v3241_v29  ;;  %v2113_v53 = vrot.slane %v2550_v18, %v3315_v33  ;;  %v2048_v34 = vmul.f32 %v2550_v18, %v3370_v56 }
 0x9ae   :  { %v2091_v36 = vadd.f32 %v2090_v23, %v2085_v27  ;;  %v2018_v31 = vadd.f32 %v2017_v7, %v2016_v4  ;;  %v2102_v37 = vmul.f32 %v2101_v10, %v3249_v35  ;;  %v2041_v59 = vsel %vm1486_vm8, %v2040_v55, 0.0 }
 0x9af   :  { %v2059_v47 = vadd.f32 %v2058_v21, %v2057_v58  ;;  %v2108_v51 = vmul.f32 %v2107_v42, %v3243_v30  ;;  %v2042_v1 = vrot.slane %v2041_v59, 4  ;;  %v2049_v14 = vsel %vm1486_vm8, %v2048_v34, 0.0 }
 0x9b0   :  { %v2097_v39 = vadd.f32 %v2096_v54, %v2091_v36  ;;  %v2019_v8 = vrot.slane %v2018_v31, 2  ;;  %v2119_v32 = vrot.slane %v2550_v18, %v3327_v45  ;;  %v2050_v2 = vrot.slane %v2049_v14, 4 }
 0x9b1   :  { %v2060_v46 = vrot.slane %v2059_v47, 2  ;;  %v2114_v41 = vmul.f32 %v2113_v53, %v3257_v43  ;;  %v2043_v4 = vadd.f32 %v2042_v1, %v2041_v59  ;;  %v2125_v58 = vrot.slane %v2550_v18, %v3333_v24 }
 0x9b2   :  { %v2103_v9 = vadd.f32 %v2102_v37, %v2097_v39  ;;  %v2020_v13 = vadd.f32 %v2019_v8, %v2018_v31  ;;  %v2051_v27 = vadd.f32 %v2050_v2, %v2049_v14  ;;  %v2120_v42 = vmul.f32 %v2119_v32, %v3254_v40 }
 0x9b3   :  { %v2061_v5 = vadd.f32 %v2060_v46, %v2059_v47  ;;  %v2044_v7 = vrot.slane %v2043_v4, 2  ;;  %v2126_v34 = vmul.f32 %v2125_v58, %v3263_v48  ;;  %v3615_v1 = vadd.f32 %v2550_v18, %v3556_v63 }
 0x9b4   :  { %v2109_v60 = vadd.f32 %v2108_v51, %v2103_v9  ;;  %v2021_v21 = vrot.slane %v2020_v13, 1  ;;  %v2052_v47 = vrot.slane %v2051_v27, 2 }
 0x9b5   :  { %v2062_v28 = vrot.slane %v2061_v5, 1  ;;  %v2045_v36 = vadd.f32 %v2044_v7, %v2043_v4  ;;  %vm2137_vm3 = vcmp.gt.f32.partialorder %v3615_v1, 0.5 }
 0x9b6   :  { %v2115_v10 = vadd.f32 %v2114_v41, %v2109_v60  ;;  %v2022_v54 = vadd.f32 %v2021_v21, %v2020_v13  ;;  %v2053_v53 = vadd.f32 %v2052_v47, %v2051_v27 }
 0x9b7   :  { %v2063_v23 = vadd.f32 %v2062_v28, %v2061_v5  ;;  %v2046_v31 = vrot.slane %v2045_v36, 1 }
 0x9b8   :  { %v2121_v55 = vadd.f32 %v2120_v42, %v2115_v10  ;;  %2866 = vlog2.f32 %v2022_v54  ;;  %v2054_v39 = vrot.slane %v2053_v53, 1 }
 0x9b9   :  { %vm2130_vm0 = vcmp.ne.f32.partialorder %v3291_v15, %v2063_v23  ;;  %vm2131_vm1 = vcmp.ge.f32.partialorder %v2063_v23, 0.0  ;;  %v3609_v37 = vadd.f32 %v2046_v31, %v2045_v36 }
 0x9ba   :  { %v2127_v46 = vadd.f32 %v2126_v34, %v2121_v55  ;;  %vm2134_vm2 = vmand %vm2130_vm0, %vm2131_vm1  ;;  %v3612_v51 = vadd.f32 %v2054_v39, %v2053_v53 }
 0x9bb   :  { %v2064_v14 = vsub.f32 %v3609_v37, %v3550_v62  ;;  %v2135_v5 = vsel %vm2134_vm2, 2.0, %v2941_v26  ;;  %vm2343_vm2 = vcmp.eq.s32.totalorder %v3271_v61, 6 }
 0x9bc   :  { %v2128_v59 = vadd.f32 %v2127_v46, %v3267_v52  ;;  %v2066_v15 = vsub.f32 %v3612_v51, %v3553_v44 }
 0x9bd   :  { %v2065_v9 = vmul.f32 %v2064_v14, %v2064_v14 }
 0x9be   :  { %v2129_v8 = vmul.f32 0.17677669, %v2128_v59  ;;  %v2067_v2 = vmul.f32 %v2066_v15, %v2066_v15 }
 0x9c0   :  { %v2136_v32 = vsub.f32 %v2129_v8, %v2135_v5  ;;  %v2068_v4 = vadd.f32 %v2067_v2, %v2065_v9 }
 0x9c2   :  { %v2138_v41 = vsel %vm2137_vm3, -1e+09, %v2136_v32  ;;  %v2867_v13 = vpop.eup %2866  ;;  %2868 = vrsqrt.f32 %v2068_v4  ;;  %vm2071_vm5 = vcmp.eq.f32.partialorder %v2068_v4, inf  ;;  %v2074_v36 = vand.u32 2147483648, %v2068_v4 }
 0x9c3   :  { %v2139_v63 = vsel %vm1486_vm8, %v2138_v41, -inf  ;;  %v2024_v28 = vmul.f32 0.6931472, %v2867_v13  ;;  %vm2073_vm6 = vcmp.eq.f32.partialorder %v2068_v4, 0.0 }
 0x9c4   :  { %v2140_v18 = vrot.slane %v2139_v63, 4 }
 0x9c5   :  { %v2025_v60 = vadd.f32 %v2024_v28, %v3570_v49 }
 0x9c6   :  { %v2141_v62 = vmax.f32 %v2139_v63, %v2140_v18 }
 0x9c7   :  { %v2026_v44 = vsub.f32 %v3570_v49, %v2025_v60 }
 0x9c8   :  { %v2142_v58 = vrot.slane %v2141_v62, 2 }
 0x9c9   :  { %v3627_v7 = vadd.f32 %v2026_v44, %v3568_v38 }
 0x9ca   :  { %v2143_v27 = vmax.f32 %v2141_v62, %v2142_v58 }
 0x9cc   :  { %v2144_v21 = vrot.slane %v2143_v27, 1  ;;  %v2869_v23 = vpop.eup %2868 }
 0x9cd   :  { %v2070_v42 = vmul.f32 %v2869_v23, %v2068_v4 }
 0x9ce   :  { %v3629_v10 = vmax.f32 %v2143_v27, %v2144_v21 }
 0x9cf   :  { %v2072_v55 = vsel %vm2071_vm5, %v2068_v4, %v2070_v42 }
 0x9d0   :  { %v2146_v47 = vsub.f32 %v2138_v41, %v3629_v10  ;;  %vm2161_vm4 = vcmp.ge.f32.partialorder %v2138_v41, %v3629_v10  ;;  %v2075_v38 = vsel %vm2073_vm6, %v2074_v36, %v2072_v55 }
 0x9d1   :  { %v2162_v54 = vsel %vm2161_vm4, %v3274_v0, 8.0  ;;  %v3636_v31 = vadd.f32 %v2075_v38, %v3577_v57  ;;  %v3647_v57 = vld [vmem:[%s3846_s3] sm:$0xff] }
 0x9d2   :  { %v2147_v49 = vmul.f32 1.442695, %v2146_v47  ;;  %v2163_v34 = vsel %vm1486_vm8, %v2162_v54, inf }
 0x9d3   :  { %v2164_v53 = vrot.slane %v2163_v34, 4 }
 0x9d4   :  { %2870 = vpow2.f32 %v2147_v49 }
 0x9d5   :  { %v2165_v46 = vmin.f32 %v2163_v34, %v2164_v53 }
 0x9d7   :  { %v2166_v39 = vrot.slane %v2165_v46, 2 }
 0x9d9   :  { %v2167_v59 = vmin.f32 %v2165_v46, %v2166_v39 }
 0x9db   :  { %v2168_v14 = vrot.slane %v2167_v59, 1 }
 0x9dd   :  { %v2169_v8 = vmin.f32 %v2167_v59, %v2168_v14 }
 0x9de   :  { %v2871_v15 = vpop.eup %2870 }
 0x9df   :  { %vm2170_vm7 = vcmp.eq.f32.partialorder %v3274_v0, %v2169_v8  ;;  %v2824_v5 = vtrunc.f32 %v2169_v8  ;;  %v2149_v32 = vsel %vm1486_vm8, %v2871_v15, 0.0 }
 0x9e0   :  { %v3641_v9 = vsel %vm2170_vm7, 1.0, %v2941_v26  ;;  %v2150_v60 = vrot.slane %v2149_v32, 4 }
 0x9e1   :  { %v2189_v2 = vmul.f32 %v3647_v57, %v3641_v9  ;;  %v2825_v41 = vcvt.f32.s32 %v2824_v5  ;;  %v2217_v4 = vrot.slane %v3641_v9, %v3283_v11  ;;  %v2222_v13 = vrot.slane %v3641_v9, %v3286_v12 }
 0x9e2   :  { %v2228_v63 = vrot.slane %v3641_v9, %v3294_v16  ;;  %v2234_v27 = vrot.slane %v3641_v9, %v3297_v17  ;;  %v2240_v21 = vrot.slane %v3641_v9, %v3303_v20  ;;  %v2246_v36 = vrot.slane %v3641_v9, %v3315_v33 }
 0x9e3   :  { %v2190_v18 = vsel %vm1486_vm8, %v2189_v2, 0.0  ;;  %v3659_v28 = vsel %vm2210_vm9, %v2825_v41, %v3589_v19  ;;  %v2218_v62 = vmul.f32 %v2217_v4, %v3235_v22  ;;  %v2223_v44 = vmul.f32 %v2222_v13, %v3237_v25 }
 0x9e4   :  { %v2191_v58 = vrot.slane %v2190_v18, 4  ;;  %v2229_v47 = vmul.f32 %v2228_v63, %v3241_v29  ;;  %v2173_v19 = vmul.f32 %v3641_v9, %v3363_v50  ;;  %v2181_v54 = vmul.f32 %v3641_v9, %v3370_v56 }
 0x9e5   :  { %v2224_v42 = vadd.f32 %v2223_v44, %v2218_v62  ;;  %v2151_v55 = vadd.f32 %v2150_v60, %v2149_v32  ;;  %v2235_v38 = vmul.f32 %v2234_v27, %v3249_v35  ;;  %v2241_v46 = vmul.f32 %v2240_v21, %v3243_v30 }
 0x9e6   :  { %v2192_v23 = vadd.f32 %v2191_v58, %v2190_v18  ;;  %v2174_v53 = vsel %vm1486_vm8, %v2173_v19, 0.0  ;;  %v2182_v59 = vsel %vm1486_vm8, %v2181_v54, 0.0  ;;  %v2252_v15 = vrot.slane %v3641_v9, %v3327_v45 }
 0x9e7   :  { %v2230_v34 = vadd.f32 %v2229_v47, %v2224_v42  ;;  %v2175_v39 = vrot.slane %v2174_v53, 4  ;;  %v2152_v14 = vrot.slane %v2151_v55, 2  ;;  %v2183_v5 = vrot.slane %v2182_v59, 4 }
 0x9e8   :  { %v2193_v49 = vrot.slane %v2192_v23, 2  ;;  %v2247_v56 = vmul.f32 %v2246_v36, %v3257_v43  ;;  %v2258_v13 = vrot.slane %v3641_v9, %v3333_v24  ;;  %v2253_v44 = vmul.f32 %v2252_v15, %v3254_v40 }
 0x9e9   :  { %v2236_v8 = vadd.f32 %v2235_v38, %v2230_v34  ;;  %v2176_v32 = vadd.f32 %v2175_v39, %v2174_v53  ;;  %v2153_v2 = vadd.f32 %v2152_v14, %v2151_v55  ;;  %v2184_v63 = vadd.f32 %v2183_v5, %v2182_v59 }
 0x9ea   :  { %v2194_v50 = vadd.f32 %v2193_v49, %v2192_v23  ;;  %v2259_v47 = vmul.f32 %v2258_v13, %v3263_v48  ;;  %v3693_v53 = vadd.f32 %v3641_v9, %v3615_v1 }
 0x9eb   :  { %v2242_v4 = vadd.f32 %v2241_v46, %v2236_v8  ;;  %v2177_v18 = vrot.slane %v2176_v32, 2  ;;  %v2154_v62 = vrot.slane %v2153_v2, 1  ;;  %v2185_v27 = vrot.slane %v2184_v63, 2 }
 0x9ec   :  { %v2195_v41 = vrot.slane %v2194_v50, 1  ;;  %vm2270_vm13 = vcmp.gt.f32.partialorder %v3693_v53, 0.5 }
 0x9ed   :  { %v2248_v58 = vadd.f32 %v2247_v56, %v2242_v4  ;;  %v2178_v21 = vadd.f32 %v2177_v18, %v2176_v32  ;;  %v2155_v23 = vadd.f32 %v2154_v62, %v2153_v2  ;;  %v2186_v19 = vadd.f32 %v2185_v27, %v2184_v63 }
 0x9ee   :  { %v2196_v60 = vadd.f32 %v2195_v41, %v2194_v50 }
 0x9ef   :  { %v2254_v42 = vadd.f32 %v2253_v44, %v2248_v58  ;;  %v2179_v36 = vrot.slane %v2178_v21, 1  ;;  %2872 = vlog2.f32 %v2155_v23  ;;  %v2187_v55 = vrot.slane %v2186_v19, 1 }
 0x9f0   :  { %vm2263_vm10 = vcmp.ne.f32.partialorder %v3647_v57, %v2196_v60  ;;  %vm2264_vm11 = vcmp.ge.f32.partialorder %v2196_v60, 0.0 }
 0x9f1   :  { %v2260_v54 = vadd.f32 %v2259_v47, %v2254_v42  ;;  %v3686_v49 = vadd.f32 %v2179_v36, %v2178_v21  ;;  %vm2267_vm12 = vmand %vm2263_vm10, %vm2264_vm11  ;;  %v3689_v38 = vadd.f32 %v2187_v55, %v2186_v19 }
 0x9f2   :  { %v2268_v14 = vsel %vm2267_vm12, 2.0, %v2941_v26  ;;  %vm2468_vm12 = vcmp.eq.s32.totalorder %v3271_v61, 7 }
 0x9f3   :  { %v2261_v34 = vadd.f32 %v2260_v54, %v3267_v52  ;;  %v2197_v46 = vsub.f32 %v3686_v49, %v3609_v37  ;;  %v2199_v59 = vsub.f32 %v3689_v38, %v3612_v51 }
 0x9f5   :  { %v2262_v39 = vmul.f32 0.17677669, %v2261_v34  ;;  %v2198_v50 = vmul.f32 %v2197_v46, %v2197_v46  ;;  %v2200_v15 = vmul.f32 %v2199_v59, %v2199_v59 }
 0x9f7   :  { %v2269_v8 = vsub.f32 %v2262_v39, %v2268_v14  ;;  %v2201_v56 = vadd.f32 %v2200_v15, %v2198_v50 }
 0x9f9   :  { %v2271_v5 = vsel %vm2270_vm13, -1e+09, %v2269_v8  ;;  %v2873_v32 = vpop.eup %2872  ;;  %2874 = vrsqrt.f32 %v2201_v56  ;;  %vm2204_vm15 = vcmp.eq.f32.partialorder %v2201_v56, inf  ;;  %v2207_v27 = vand.u32 2147483648, %v2201_v56 }
 0x9fa   :  { %v2272_v1 = vsel %vm1486_vm8, %v2271_v5, -inf  ;;  %v2157_v2 = vmul.f32 0.6931472, %v2873_v32  ;;  %vm2206_vm0 = vcmp.eq.f32.partialorder %v2201_v56, 0.0 }
 0x9fb   :  { %v2273_v9 = vrot.slane %v2272_v1, 4 }
 0x9fc   :  { %v2158_v41 = vadd.f32 %v2157_v2, %v3629_v10 }
 0x9fd   :  { %v2274_v37 = vmax.f32 %v2272_v1, %v2273_v9 }
 0x9fe   :  { %v2159_v51 = vsub.f32 %v3629_v10, %v2158_v41 }
 0x9ff   :  { %v2275_v4 = vrot.slane %v2274_v37, 2 }
 0xa00   :  { %v3705_v63 = vadd.f32 %v2159_v51, %v3627_v7 }
 0xa01   :  { %v2276_v13 = vmax.f32 %v2274_v37, %v2275_v4 }
 0xa03   :  { %v2277_v18 = vrot.slane %v2276_v13, 1  ;;  %v2875_v62 = vpop.eup %2874 }
 0xa04   :  { %v2203_v58 = vmul.f32 %v2875_v62, %v2201_v56 }
 0xa05   :  { %v3707_v60 = vmax.f32 %v2276_v13, %v2277_v18 }
 0xa06   :  { %v2205_v23 = vsel %vm2204_vm15, %v2201_v56, %v2203_v58 }
 0xa07   :  { %v2279_v44 = vsub.f32 %v2271_v5, %v3707_v60  ;;  %vm2294_vm14 = vcmp.ge.f32.partialorder %v2271_v5, %v3707_v60  ;;  %v2208_v7 = vsel %vm2206_vm0, %v2207_v27, %v2205_v23 }
 0xa08   :  { %v2295_v21 = vsel %vm2294_vm14, %v3274_v0, 8.0  ;;  %v3714_v19 = vadd.f32 %v2208_v7, %v3636_v31 }
 0xa09   :  { %v2280_v10 = vmul.f32 1.442695, %v2279_v44  ;;  %v2296_v42 = vsel %vm1486_vm8, %v2295_v21, inf }
 0xa0a   :  { %v2297_v47 = vrot.slane %v2296_v42, 4 }
 0xa0b   :  { %2876 = vpow2.f32 %v2280_v10 }
 0xa0c   :  { %v2298_v36 = vmin.f32 %v2296_v42, %v2297_v47 }
 0xa0e   :  { %v2299_v54 = vrot.slane %v2298_v36, 2 }
 0xa10   :  { %v2300_v55 = vmin.f32 %v2298_v36, %v2299_v54 }
 0xa12   :  { %v2301_v34 = vrot.slane %v2300_v55, 1 }
 0xa14   :  { %v2302_v46 = vmin.f32 %v2300_v55, %v2301_v34 }
 0xa15   :  { %v2877_v39 = vpop.eup %2876 }
 0xa16   :  { %vm2303_vm1 = vcmp.eq.f32.partialorder %v3274_v0, %v2302_v46  ;;  %v2826_v59 = vtrunc.f32 %v2302_v46  ;;  %v2282_v50 = vsel %vm1486_vm8, %v2877_v39, 0.0 }
 0xa17   :  { %v3719_v14 = vsel %vm2303_vm1, 1.0, %v2941_v26  ;;  %v2283_v2 = vrot.slane %v2282_v50, 4 }
 0xa18   :  { %v2322_v31 = vmul.f32 %v3647_v57, %v3719_v14  ;;  %v2827_v8 = vcvt.f32.s32 %v2826_v59  ;;  %v2350_v15 = vrot.slane %v3719_v14, %v3283_v11  ;;  %v2355_v5 = vrot.slane %v3719_v14, %v3286_v12 }
 0xa19   :  { %v2361_v56 = vrot.slane %v3719_v14, %v3294_v16  ;;  %v2367_v11 = vrot.slane %v3719_v14, %v3297_v17  ;;  %v2373_v12 = vrot.slane %v3719_v14, %v3303_v20  ;;  %v3753_v17 = vld [vmem:[%s3847_s4 + $0x8] sm:$0xff]  ;;  %v2385_v42 = vrot.slane %v3719_v14, %v3327_v45 }
 0xa1a   :  { %v2323_v32 = vsel %vm1486_vm8, %v2322_v31, 0.0  ;;  %v3732_v1 = vsel %vm2343_vm2, %v2827_v8, %v3659_v28  ;;  %v2351_v9 = vmul.f32 %v2350_v15, %v3235_v22  ;;  %v2356_v41 = vmul.f32 %v2355_v5, %v3237_v25  ;;  %v3744_v28 = vld [vmem:[%s3847_s4] sm:$0xff] }
 0xa1b   :  { %v2324_v37 = vrot.slane %v2323_v32, 4  ;;  %v2362_v16 = vmul.f32 %v2361_v56, %v3241_v29  ;;  %v2306_v22 = vmul.f32 %v3744_v28, %v3719_v14  ;;  %v2379_v25 = vrot.slane %v3719_v14, %v3315_v33 }
 0xa1c   :  { %v2357_v51 = vadd.f32 %v2356_v41, %v2351_v9  ;;  %v2314_v20 = vmul.f32 %v3753_v17, %v3719_v14  ;;  %v2284_v29 = vadd.f32 %v2283_v2, %v2282_v50  ;;  %v2368_v62 = vmul.f32 %v2367_v11, %v3249_v35 }
 0xa1d   :  { %v2325_v4 = vadd.f32 %v2324_v37, %v2323_v32  ;;  %v2307_v58 = vsel %vm1486_vm8, %v2306_v22, 0.0  ;;  %v2374_v44 = vmul.f32 %v2373_v12, %v3243_v30  ;;  %v2380_v47 = vmul.f32 %v2379_v25, %v3257_v43 }
 0xa1e   :  { %v2363_v18 = vadd.f32 %v2362_v16, %v2357_v51  ;;  %v2308_v27 = vrot.slane %v2307_v58, 4  ;;  %v2315_v33 = vsel %vm1486_vm8, %v2314_v20, 0.0  ;;  %v2285_v21 = vrot.slane %v2284_v29, 2 }
 0xa1f   :  { %v2326_v13 = vrot.slane %v2325_v4, 2  ;;  %v2316_v7 = vrot.slane %v2315_v33, 4  ;;  %v2391_v34 = vrot.slane %v3719_v14, %v3333_v24  ;;  %v2386_v31 = vmul.f32 %v2385_v42, %v3254_v40 }
 0xa20   :  { %v2369_v10 = vadd.f32 %v2368_v62, %v2363_v18  ;;  %v2309_v36 = vadd.f32 %v2308_v27, %v2307_v58  ;;  %v2286_v54 = vadd.f32 %v2285_v21, %v2284_v29  ;;  %v2346_v41 = vadd.f32 %v3719_v14, %v3693_v53 }
 0xa21   :  { %v2327_v23 = vadd.f32 %v2326_v13, %v2325_v4  ;;  %v2317_v30 = vadd.f32 %v2316_v7, %v2315_v33  ;;  %v2392_v43 = vmul.f32 %v2391_v34, %v3263_v48 }
 0xa22   :  { %v2375_v35 = vadd.f32 %v2374_v44, %v2369_v10  ;;  %v2310_v46 = vrot.slane %v2309_v36, 2  ;;  %v2287_v39 = vrot.slane %v2286_v54, 1  ;;  %vm2403_vm6 = vcmp.gt.f32.partialorder %v2346_v41, 0.5 }
 0xa23   :  { %v2328_v55 = vrot.slane %v2327_v23, 1  ;;  %v2318_v8 = vrot.slane %v2317_v30, 2 }
 0xa24   :  { %v2381_v50 = vadd.f32 %v2380_v47, %v2375_v35  ;;  %v2311_v15 = vadd.f32 %v2310_v46, %v2309_v36  ;;  %v2288_v45 = vadd.f32 %v2287_v39, %v2286_v54 }
 0xa25   :  { %v2329_v59 = vadd.f32 %v2328_v55, %v2327_v23  ;;  %v2319_v56 = vadd.f32 %v2318_v8, %v2317_v30 }
 0xa26   :  { %v2387_v5 = vadd.f32 %v2386_v31, %v2381_v50  ;;  %v2312_v32 = vrot.slane %v2311_v15, 1  ;;  %2878 = vlog2.f32 %v2288_v45 }
 0xa27   :  { %vm2396_vm3 = vcmp.ne.f32.partialorder %v3647_v57, %v2329_v59  ;;  %vm2397_vm4 = vcmp.ge.f32.partialorder %v2329_v59, 0.0  ;;  %v2320_v9 = vrot.slane %v2319_v56, 1 }
 0xa28   :  { %v2393_v24 = vadd.f32 %v2392_v43, %v2387_v5  ;;  %v3769_v2 = vadd.f32 %v2312_v32, %v2311_v15  ;;  %vm2400_vm5 = vmand %vm2396_vm3, %vm2397_vm4 }
 0xa29   :  { %v3772_v40 = vadd.f32 %v2320_v9, %v2319_v56  ;;  %v2401_v12 = vsel %vm2400_vm5, 2.0, %v2941_v26 }
 0xa2a   :  { %v2394_v37 = vadd.f32 %v2393_v24, %v3267_v52  ;;  %v2330_v48 = vsub.f32 %v3769_v2, %v3686_v49 }
 0xa2b   :  { %v2332_v57 = vsub.f32 %v3772_v40, %v3689_v38 }
 0xa2c   :  { %v2395_v11 = vmul.f32 0.17677669, %v2394_v37  ;;  %v2331_v4 = vmul.f32 %v2330_v48, %v2330_v48 }
 0xa2d   :  { %v2333_v16 = vmul.f32 %v2332_v57, %v2332_v57 }
 0xa2e   :  { %v2402_v51 = vsub.f32 %v2395_v11, %v2401_v12 }
 0xa2f   :  { %v2334_v22 = vadd.f32 %v2333_v16, %v2331_v4 }
 0xa30   :  { %v2404_v52 = vsel %vm2403_vm6, -1e+09, %v2402_v51  ;;  %v2879_v25 = vpop.eup %2878 }
 0xa31   :  { %v2405_v20 = vsel %vm1486_vm8, %v2404_v52, -inf  ;;  %2880 = vrsqrt.f32 %v2334_v22  ;;  %v2290_v53 = vmul.f32 0.6931472, %v2879_v25  ;;  %vm2337_vm9 = vcmp.eq.f32.partialorder %v2334_v22, inf }
 0xa32   :  { %v2406_v29 = vrot.slane %v2405_v20, 4  ;;  %v2340_v21 = vand.u32 2147483648, %v2334_v22  ;;  %vm2339_vm10 = vcmp.eq.f32.partialorder %v2334_v22, 0.0 }
 0xa33   :  { %v2291_v49 = vadd.f32 %v2290_v53, %v3707_v60 }
 0xa34   :  { %v2407_v14 = vmax.f32 %v2405_v20, %v2406_v29 }
 0xa35   :  { %v2292_v38 = vsub.f32 %v3707_v60, %v2291_v49 }
 0xa36   :  { %v2408_v13 = vrot.slane %v2407_v14, 2 }
 0xa37   :  { %v3785_v62 = vadd.f32 %v2292_v38, %v3705_v63 }
 0xa38   :  { %v2409_v18 = vmax.f32 %v2407_v14, %v2408_v13 }
 0xa3a   :  { %v2410_v58 = vrot.slane %v2409_v18, 1 }
 0xa3b   :  { %v2881_v44 = vpop.eup %2880 }
 0xa3c   :  { %v3787_v27 = vmax.f32 %v2409_v18, %v2410_v58  ;;  %v2336_v33 = vmul.f32 %v2881_v44, %v2334_v22 }
 0xa3e   :  { %vm2427_vm7 = vcmp.ge.f32.partialorder %v2404_v52, %v3787_v27  ;;  %v2412_v23 = vsub.f32 %v2404_v52, %v3787_v27  ;;  %v2338_v42 = vsel %vm2337_vm9, %v2334_v22, %v2336_v33 }
 0xa3f   :  { %v2428_v10 = vsel %vm2427_vm7, %v3274_v0, 8.0  ;;  %v2341_v7 = vsel %vm2339_vm10, %v2340_v21, %v2338_v42 }
 0xa40   :  { %v2429_v60 = vsel %vm1486_vm8, %v2428_v10, inf  ;;  %v2413_v63 = vmul.f32 1.442695, %v2412_v23  ;;  %v3794_v36 = vadd.f32 %v2341_v7, %v3714_v19 }
 0xa41   :  { %v2430_v47 = vrot.slane %v2429_v60, 4 }
 0xa42   :  { %2882 = vpow2.f32 %v2413_v63 }
 0xa43   :  { %v2431_v54 = vmin.f32 %v2429_v60, %v2430_v47 }
 0xa45   :  { %v2432_v55 = vrot.slane %v2431_v54, 2 }
 0xa47   :  { %v2433_v35 = vmin.f32 %v2431_v54, %v2432_v55 }
 0xa49   :  { %v2434_v34 = vrot.slane %v2433_v35, 1 }
 0xa4b   :  { %v2435_v30 = vmin.f32 %v2433_v35, %v2434_v34 }
 0xa4c   :  { %v2883_v46 = vpop.eup %2882 }
 0xa4d   :  { %v2828_v39 = vtrunc.f32 %v2435_v30  ;;  %vm2436_vm11 = vcmp.eq.f32.partialorder %v3274_v0, %v2435_v30  ;;  %v2415_v59 = vsel %vm1486_vm8, %v2883_v46, 0.0 }
 0xa4e   :  { %v2553_v50 = vsel %vm2436_vm11, 1.0, %v2941_v26  ;;  %v2416_v31 = vrot.slane %v2415_v59, 4 }
 0xa4f   :  { %v2829_v8 = vcvt.f32.s32 %v2828_v39  ;;  %v2439_v19 = vmul.f32 %v3744_v28, %v2553_v50  ;;  %v2447_v15 = vmul.f32 %v3753_v17, %v2553_v50 }
 0xa50   :  { %v2417_v45 = vadd.f32 %v2416_v31, %v2415_v59 }
 0xa51   :  { %v2470_v5 = vsel %vm2468_vm12, %v2829_v8, %v3732_v1  ;;  %v2440_v43 = vsel %vm1486_vm8, %v2439_v19, 0.0  ;;  %v2448_v56 = vsel %vm1486_vm8, %v2447_v15, 0.0 }
 0xa52   :  { %2487 = vst.msk [vmem:[%s3860_s17] sm:$0xff] %vm1486_vm8, %v2470_v5  ;;  %v2441_v61 = vrot.slane %v2440_v43, 4  ;;  %v2449_v26 = vrot.slane %v2448_v56, 4  ;;  %v2418_v0 = vrot.slane %v2417_v45, 2  ;;  %s2943_s17 = smov [#allocation4]   ;;  %vm2484_vm8 = vcmask 8192  }
 0xa53   :  { %s2504_s23 = sshll.u32 %s2943_s17, 4  ;;  %s2505_s23 = int_to_ptr.vmem [resolvable:$true] %s2504_s23 }
 0xa54   :  { %v2442_v32 = vadd.f32 %v2441_v61, %v2440_v43  ;;  %v2450_v24 = vadd.f32 %v2449_v26, %v2448_v56  ;;  %v2419_v28 = vadd.f32 %v2418_v0, %v2417_v45  ;;  %s2893_s24 = scalar_lea.vmem %s2505_s23, 16  ;;  %s2897_s25 = scalar_lea.vmem %s2505_s23, 32 }
 0xa55   :  { %p2894_p0 = scmp.ne.s32.totalorder %s2505_s23, %s2893_s24  ;;  %p2898_p1 = scmp.lt.s32.totalorder %s2505_s23, %s2505_s23 }
 0xa56   :  { %v2443_v9 = vrot.slane %v2442_v32, 2  ;;  %v2451_v17 = vrot.slane %v2450_v24, 2  ;;  %v2420_v37 = vrot.slane %v2419_v28, 1  ;;  %p2899_p2 = scmp.lt.s32.totalorder %s2897_s25, %s2893_s24 }
 0xa58   :  { %v2444_v41 = vadd.f32 %v2443_v9, %v2442_v32  ;;  %v2452_v1 = vadd.f32 %v2451_v17, %v2450_v24  ;;  %v2421_v48 = vadd.f32 %v2420_v37, %v2419_v28  ;;  %p2900_p3 = por %p2899_p2, %p2898_p1 }
 0xa5a   :  { %v2445_v11 = vrot.slane %v2444_v41, 1  ;;  %v2453_v57 = vrot.slane %v2452_v1, 1  ;;  %2884 = vlog2.f32 %v2421_v48  ;;  %p2901_p4 = pnand %p2900_p3, %p2894_p0 }
 0xa5c   :  { %v2446_v12 = vadd.f32 %v2445_v11, %v2444_v41  ;;  %v2454_v4 = vadd.f32 %v2453_v57, %v2452_v1 }
 0xa5e   :  { %v2455_v51 = vsub.f32 %v2446_v12, %v3769_v2  ;;  %v2457_v16 = vsub.f32 %v2454_v4, %v3772_v40  ;;  %v2471_v52 = vsub.f32 %v3421_v3, %v2446_v12  ;;  %v2473_v22 = vsub.f32 %v3426_v6, %v2454_v4 }
 0xa60   :  { %v2456_v25 = vmul.f32 %v2455_v51, %v2455_v51  ;;  %v2458_v20 = vmul.f32 %v2457_v16, %v2457_v16  ;;  %v2472_v29 = vmul.f32 %v2471_v52, %v2471_v52  ;;  %v2474_v53 = vmul.f32 %v2473_v22, %v2473_v22 }
 0xa62   :  { %v2459_v14 = vadd.f32 %v2458_v20, %v2456_v25  ;;  %v2475_v49 = vadd.f32 %v2474_v53, %v2472_v29 }
 0xa64   :  { %v2885_v13 = vpop.eup %2884  ;;  %2886 = vrsqrt.f32 %v2459_v14 }
 0xa65   :  { %2888 = vrsqrt.f32 %v2475_v49  ;;  %v2423_v38 = vmul.f32 0.6931472, %v2885_v13 }
 0xa67   :  { %v2424_v18 = vadd.f32 %v2423_v38, %v3787_v27 }
 0xa69   :  { %v2425_v2 = vsub.f32 %v3787_v27, %v2424_v18 }
 0xa6b   :  { %v2426_v3 = vadd.f32 %v2425_v2, %v3785_v62 }
 0xa6d   :  { %2486 = vst.msk [vmem:[#allocation4] sm:$0x1] %vm2484_vm8, %v2426_v3 }
 0xa6e   :  { %v2887_v6 = vpop.eup %2886 }
 0xa6f   :  { %v2889_v40 = vpop.eup %2888  ;;  %v2461_v58 = vmul.f32 %v2887_v6, %v2459_v14 }
 0xa70   :  { %2904 = shalt.err (!%p2901_p4)
}
 0xa71   :  { %s2905_s28 = scalar_lea.hbm %s3859_s16, 16 }
 0xa72   :  { %p2906_p5 = scmp.ne.s32.totalorder %s3859_s16, %s2905_s28  ;;  %p2909_p6 = scmp.lt.u32.totalorder %s2905_s28, %s3859_s16 }
 0xa74   :  { %p2911_p7 = pnand %p2909_p6, %p2906_p5 }
 0xa76   :  { %2914 = shalt.err (!%p2911_p7)
}
 0xa77   :  { %2507 = dma.vmem_to_hbm [thread:$0]  %s2505_s23, 16, %s3859_s16, [#allocation5]   ;;  %vm2462_vm13 = vcmp.eq.f32.partialorder %v2459_v14, inf  ;;  %v2465_v62 = vand.u32 2147483648, %v2459_v14  ;;  %v2477_v44 = vmul.f32 %v2889_v40, %v2475_v49  ;;  %vm2464_vm14 = vcmp.eq.f32.partialorder %v2459_v14, 0.0 }
 0xa78   :  { %v2463_v27 = vsel %vm2462_vm13, %v2459_v14, %v2461_v58  ;;  %vm2478_vm15 = vcmp.eq.f32.partialorder %v2475_v49, inf  ;;  %v2481_v23 = vand.u32 2147483648, %v2475_v49  ;;  %s2944_s19 = smov [#allocation2]   ;;  %vm2480_vm0 = vcmp.eq.f32.partialorder %v2475_v49, 0.0 }
 0xa79   :  { %v2466_v33 = vsel %vm2464_vm14, %v2465_v62, %v2463_v27  ;;  %v2479_v21 = vsel %vm2478_vm15, %v2475_v49, %v2477_v44  ;;  %s2494_s1 = sshll.u32 %s2944_s19, 4  ;;  %s2495_s1 = int_to_ptr.vmem [resolvable:$true] %s2494_s1 }
 0xa7a   :  { %v2467_v10 = vadd.f32 %v2466_v33, %v3794_v36  ;;  %v2482_v42 = vsel %vm2480_vm0, %v2481_v23, %v2479_v21  ;;  %s2915_s16 = scalar_lea.vmem %s2495_s1, 16  ;;  %s2919_s12 = scalar_lea.vmem %s2495_s1, 32 }
 0xa7b   :  { %p2916_p8 = scmp.ne.s32.totalorder %s2495_s1, %s2915_s16  ;;  %p2920_p9 = scmp.lt.s32.totalorder %s2495_s1, %s2495_s1 }
 0xa7c   :  { %v2483_v60 = vadd.f32 %v2482_v42, %v2467_v10  ;;  %p2921_p10 = scmp.lt.s32.totalorder %s2919_s12, %s2915_s16 }
 0xa7e   :  { %2485 = vst.msk [vmem:[#allocation2] sm:$0x1] %vm2484_vm8, %v2483_v60  ;;  %p2922_p11 = por %p2921_p10, %p2920_p9 }
 0xa80   :  { %p2923_p12 = pnand %p2922_p11, %p2916_p8 }
 0xa82   :  { %2926 = shalt.err (!%p2923_p12)
}
 0xa83   :  { %s2927_s7 = scalar_lea.hbm %s3858_s15, 16 }
 0xa84   :  { %p2928_p13 = scmp.ne.s32.totalorder %s3858_s15, %s2927_s7  ;;  %p2931_p0 = scmp.lt.u32.totalorder %s2927_s7, %s3858_s15 }
 0xa86   :  { %p2933_p1 = pnand %p2931_p0, %p2928_p13 }
 0xa88   :  { %2936 = shalt.err (!%p2933_p1)
}
 0xa89   :  { %2497 = dma.vmem_to_hbm [thread:$0]  %s2495_s1, 16, %s3858_s15, [#allocation3]  }
 0xa8a   :  { %2937 = dma.done.wait [#allocation3], 16  }
 0xa8b   :  { %2938 = vsyncadd [#allocation3], 4294967280 }
 0xa8c   :  { %2939 = dma.done.wait [#allocation5], 16  }
 0xa8d   :  { %2940 = vsyncadd [#allocation5], 4294967280 }
 0xa8e   :  { %2518 = vsyncpa [#allocation3], 1 }
 0xa8f   :  { %2519 = vsyncpa [#allocation5], 1 }

</bundles_post_ra>
